<compile_context>
chip_gen: v7x
topology: tpu7x:2x2x1
jax: 0.10.0
libtpu: 0.0.40
codegen_flags: <defaults>
</compile_context>

<pallas_src>
import jax
import jax.numpy as jnp
from jax.experimental import pallas as pl
from jax.experimental.pallas import tpu as pltpu

LANE = 128     # TPU lane width
NEG_INF = -1e30


def make_cnn1d_kernel(tb, s_pad, max_fs, f_pad):
    """Fused im2col conv (one MXU matmul) + masked max-pool + bias/ReLU + FC."""

    def kernel(x_ref, w_ref, maskf_ref, bconv_ref, wfc_ref, bfc_ref, o_ref):
        # x_ref: [tb*s_pad, E] bf16 (halved HBM->VMEM DMA).  One hoisted upcast
        # to f32 so the sublane rolls below never operate on packed bf16 rows.
        x = x_ref[...].astype(jnp.float32)
        n_rows = x.shape[0]

        # im2col slab: tap k = x shifted by k along the flattened (batch-major)
        # time axis via XLU sublane rotate.  Wrapped / cross-batch / padded-time
        # rows only reach positions that the mask (or the zero-padded tap
        # weights) neutralises before the max-pool.
        taps = [x]
        for k in range(1, max_fs):
            taps.append(pltpu.roll(x, shift=n_rows - k, axis=0))
        xi = jnp.concatenate(taps, axis=1).astype(jnp.bfloat16)  # [rows, max_fs*E]

        # One MXU matmul (K = max_fs*E) for ALL filter sizes at once against the
        # packed, zero-padded tap weights; f32 accumulation.
        acc = jnp.dot(xi, w_ref[...], preferred_element_type=jnp.float32)
        # Pre-tiled flat validity mask (0 valid / -1e30 invalid): plain 2-D add.
        acc = acc + maskf_ref[...]

        # Max-pool over time.  s_pad % 8 == 0 keeps this reshape a free relayout.
        pooled = jnp.max(acc.reshape(tb, s_pad, f_pad), axis=1)      # [tb, f_pad]
        # Bias + ReLU after the pool is exact (constant per channel, monotone).
        pooled = jnp.maximum(pooled + bconv_ref[...], 0.0)

        # FC (dropout = identity at inference), output padded to 128 lanes so
        # the store below is a full-width unmasked vst.
        out = jnp.dot(pooled.astype(jnp.bfloat16), wfc_ref[...],
                      preferred_element_type=jnp.float32) + bfc_ref[...]
        o_ref[...] = out.astype(o_ref.dtype)

    return kernel


def cnn1d_forward(embedded, conv_params, fc_w, fc_b, filter_sizes, *, tb=32):
    """embedded: [B, S, E] float32 (post-embedding lookup).

    conv_params: list of (w, b) with w: [fs, E, F], b: [1, F]
    fc_w: [len(filter_sizes)*F, output_dim], fc_b: [1, output_dim]
    Returns [B, output_dim] float32.
    """
    B, S, E = embedded.shape
    filter_sizes = tuple(filter_sizes)
    max_fs = max(filter_sizes)
    assert S >= max_fs, "sequence must be at least as long as the largest filter"
    n_filters = conv_params[0][0].shape[2]
    sum_f = n_filters * len(filter_sizes)
    output_dim = fc_w.shape[1]

    # Lane / sublane friendly padded sizes.
    f_pad = pl.cdiv(sum_f, LANE) * LANE          # conv channels -> 128 lanes
    o_pad = pl.cdiv(output_dim, LANE) * LANE     # FC outputs    -> 128 lanes
    s_pad = pl.cdiv(S, 8) * 8                    # time          -> sublane tile
    assert (tb * s_pad) % 8 == 0

    # Pack all filter sizes into one [max_fs*E, f_pad] per-tap weight (taps
    # beyond a conv's own filter size are zero), one packed bias, and a
    # per-(position, channel) validity mask (0 valid / -1e30 invalid).
    w2d = jnp.zeros((max_fs * E, f_pad), jnp.float32)
    b_conv = jnp.zeros((1, f_pad), jnp.float32)
    mask_s = jnp.zeros((s_pad, f_pad), jnp.float32)   # padded lanes stay valid(0)
    t_idx = jnp.arange(s_pad)[:, None]
    for i, ((w, b), fs) in enumerate(zip(conv_params, filter_sizes)):
        lo, hi = i * n_filters, (i + 1) * n_filters
        w_full = jnp.zeros((max_fs, E, n_filters), jnp.float32).at[:fs].set(w)
        w2d = w2d.at[:, lo:hi].set(w_full.reshape(max_fs * E, n_filters))
        b_conv = b_conv.at[:, lo:hi].set(b)
        # valid conv positions: t <= S - fs (original S, not the padded one)
        col_mask = jnp.where(t_idx <= S - fs, 0.0, NEG_INF)          # [s_pad, 1]
        mask_s = mask_s.at[:, lo:hi].set(
            jnp.broadcast_to(col_mask, (s_pad, n_filters)))
    w2d = w2d.astype(jnp.bfloat16)               # bf16 MXU operand (f32 accum)
    mask_flat = jnp.tile(mask_s, (tb, 1))        # pre-tiled flat [tb*s_pad, f_pad]

    # Lane-padded FC weights / bias (zero rows for padded channels, zero cols
    # for padded outputs -> they contribute exactly 0).
    wfc = (jnp.zeros((f_pad, o_pad), jnp.float32)
           .at[:sum_f, :output_dim].set(fc_w).astype(jnp.bfloat16))
    bfc = jnp.zeros((1, o_pad), jnp.float32).at[:, :output_dim].set(fc_b)

    # Pad batch to the batch tile and seq to the sublane tile, fold batch into
    # the matmul M dimension, ship the slab as bf16 (half the DMA bytes).
    b_pad = pl.cdiv(B, tb) * tb
    embedded = jnp.pad(embedded, ((0, b_pad - B), (0, s_pad - S), (0, 0)))
    x2d = embedded.astype(jnp.bfloat16).reshape(b_pad * s_pad, E)

    kernel = make_cnn1d_kernel(tb, s_pad, max_fs, f_pad)

    out = pl.pallas_call(
        kernel,
        out_shape=jax.ShapeDtypeStruct((b_pad, o_pad), jnp.float32),
        grid_spec=pltpu.PrefetchScalarGridSpec(
            num_scalar_prefetch=0,
            grid=(b_pad // tb,),
            in_specs=[
                pl.BlockSpec((tb * s_pad, E), lambda i: (i, 0)),
                # Loop-invariant operands (constant index_map -> no re-DMA).
                pl.BlockSpec(w2d.shape, lambda i: (0, 0)),
                pl.BlockSpec(mask_flat.shape, lambda i: (0, 0)),
                pl.BlockSpec(b_conv.shape, lambda i: (0, 0)),
                pl.BlockSpec(wfc.shape, lambda i: (0, 0)),
                pl.BlockSpec(bfc.shape, lambda i: (0, 0)),
            ],
            out_specs=pl.BlockSpec((tb, o_pad), lambda i: (i, 0)),
        ),
        compiler_params=pltpu.CompilerParams(
            # Batch axis is independent across steps.  On v7x, switch to
            # pltpu.CORE_PARALLEL if a profile shows only one TC active.
            dimension_semantics=("parallel",),
            # Explicit scoped-VMEM budget: safe on v5e/v6e (128 MiB physical)
            # and within v7x's 64 MiB physical.  Re-derive TB against this
            # before scaling up.
            vmem_limit_bytes=32 * 1024 * 1024),
    )(x2d, w2d, mask_flat, b_conv, wfc, bfc)

    return out[:B, :output_dim]


def reference_forward(embedded, conv_params, fc_w, fc_b, filter_sizes):
    """Pure-JAX f32 reference matching the PyTorch forward (eval mode)."""
    S = embedded.shape[1]
    pooled = []
    for (w, b), fs in zip(conv_params, filter_sizes):
        L = S - fs + 1
        acc = jnp.zeros((embedded.shape[0], L, w.shape[2]), jnp.float32)
        for k in range(fs):
            acc = acc + jnp.einsum("ble,ef->blf", embedded[:, k:k + L, :], w[k])
        acc = jax.nn.relu(acc + b[None, :, :])
        pooled.append(jnp.max(acc, axis=1))
    cat = jnp.concatenate(pooled, axis=1)
    return cat @ fc_w + fc_b


if __name__ == "__main__":
    # Module hyperparameters (small, consistent with CNN1d.__init__).
    vocab_size = 50
    embedding_dim = 32
    n_filters = 8
    filter_sizes = (3, 4, 5)
    output_dim = 1
    pad_idx = 0
    seq_len = 16
    batch = 64          # tb=32 -> TB*S = 512 rows/step, 2 grid steps (v7x: 2 TCs)
    tb = 32

    key = jax.random.PRNGKey(0)
    k_emb, k_text, k_fc, k_fcb, *k_convs = jax.random.split(
        key, 4 + 2 * len(filter_sizes))

    # Deterministic parameter init (synthetic, not a checkpoint load).
    embedding = 0.1 * jax.random.normal(
        k_emb, (vocab_size, embedding_dim), jnp.float32)
    embedding = embedding.at[pad_idx].set(0.0)  # padding_idx row is zero

    conv_params = []
    for i, fs in enumerate(filter_sizes):
        kw, kb = k_convs[2 * i], k_convs[2 * i + 1]
        # PyTorch Conv1d weight layout is [out_ch, in_ch, fs]; transpose to
        # [fs, in_ch, out_ch] so each tap is an [E, F] matmul operand.
        w_pt = 0.1 * jax.random.normal(
            kw, (n_filters, embedding_dim, fs), jnp.float32)
        w = jnp.transpose(w_pt, (2, 1, 0))                 # [fs, E, F]
        b = 0.1 * jax.random.normal(kb, (1, n_filters), jnp.float32)
        conv_params.append((w, b))

    # PyTorch Linear weight is [out, in]; store transposed [in, out].
    fc_w = 0.1 * jax.random.normal(
        k_fc, (len(filter_sizes) * n_filters, output_dim), jnp.float32)
    fc_b = 0.1 * jax.random.normal(k_fcb, (1, output_dim), jnp.float32)

    # Input tokens and embedding lookup (gather is glue, stays in plain JAX).
    text = jax.random.randint(k_text, (batch, seq_len), 0, vocab_size)
    embedded = embedding[text]  # [B, S, E]

    out = cnn1d_forward(embedded, conv_params, fc_w, fc_b, filter_sizes, tb=tb)
    out = jax.block_until_ready(out)

    ref = reference_forward(embedded, conv_params, fc_w, fc_b, filter_sizes)
    assert out.shape == (batch, output_dim)
    # bf16 MXU operands / bf16 input slab in the kernel vs f32 reference.
    assert jnp.allclose(out, ref, atol=1e-2, rtol=1e-2), (
        f"max abs err = {jnp.max(jnp.abs(out - ref))}")

    print("KERNEL_OK")
</pallas_src>

<mosaic_0001>
module attributes {stable_mosaic.version = 11 : i64} {
  func.func @kernel(%arg0: i32, %arg1: memref<512x32xbf16, #tpu.memory_space<vmem>>, %arg2: memref<160x128xbf16, #tpu.memory_space<vmem>>, %arg3: memref<512x128xf32, #tpu.memory_space<vmem>>, %arg4: memref<1x128xf32, #tpu.memory_space<vmem>>, %arg5: memref<128x128xbf16, #tpu.memory_space<vmem>>, %arg6: memref<1x128xf32, #tpu.memory_space<vmem>>, %arg7: memref<32x128xf32, #tpu.memory_space<vmem>>) attributes {dimension_semantics = [#tpu.dimension_semantics<parallel>], iteration_bounds = array<i64: 2>, scalar_prefetch = 0 : i64, scratch_operands = 0 : i64, tpu.core_type = #tpu.core_type<tc>, window_params = [{transform_indices = @transform_0, window_bounds = array<i64: 512, 32>}, {pipeline_mode = #tpu.pipeline_mode<synchronous>, transform_indices = @transform_1, window_bounds = array<i64: 160, 128>}, {pipeline_mode = #tpu.pipeline_mode<synchronous>, transform_indices = @transform_2, window_bounds = array<i64: 512, 128>}, {pipeline_mode = #tpu.pipeline_mode<synchronous>, transform_indices = @transform_3, window_bounds = array<i64: 1, 128>}, {pipeline_mode = #tpu.pipeline_mode<synchronous>, transform_indices = @transform_4, window_bounds = array<i64: 128, 128>}, {pipeline_mode = #tpu.pipeline_mode<synchronous>, transform_indices = @transform_5, window_bounds = array<i64: 1, 128>}, {transform_indices = @transform_6, window_bounds = array<i64: 32, 128>}]} {
    %c0 = arith.constant 0 : index
    %c0_0 = arith.constant 0 : index
    %0 = vector.load %arg1[%c0, %c0_0] : memref<512x32xbf16, #tpu.memory_space<vmem>>, vector<512x32xbf16>
    %1 = arith.extf %0 : vector<512x32xbf16> to vector<512x32xf32>
    %c511_i32 = arith.constant 511 : i32
    %2 = tpu.dynamic_rotate %1 by %c511_i32 dim 0 : vector<512x32xf32>, i32 -> vector<512x32xf32>
    %c510_i32 = arith.constant 510 : i32
    %3 = tpu.dynamic_rotate %1 by %c510_i32 dim 0 : vector<512x32xf32>, i32 -> vector<512x32xf32>
    %c509_i32 = arith.constant 509 : i32
    %4 = tpu.dynamic_rotate %1 by %c509_i32 dim 0 : vector<512x32xf32>, i32 -> vector<512x32xf32>
    %c508_i32 = arith.constant 508 : i32
    %5 = tpu.dynamic_rotate %1 by %c508_i32 dim 0 : vector<512x32xf32>, i32 -> vector<512x32xf32>
    %6 = tpu.concatenate %1, %2, %3, %4, %5 in 1 : vector<512x32xf32>, vector<512x32xf32>, vector<512x32xf32>, vector<512x32xf32>, vector<512x32xf32> -> vector<512x160xf32>
    %7 = arith.truncf %6 : vector<512x160xf32> to vector<512x160xbf16>
    %c0_1 = arith.constant 0 : index
    %c0_2 = arith.constant 0 : index
    %8 = vector.load %arg2[%c0_1, %c0_2] : memref<160x128xbf16, #tpu.memory_space<vmem>>, vector<160x128xbf16>
    %cst = arith.constant dense<0.000000e+00> : vector<512x128xf32>
    %9 = tpu.matmul %7, %8, %cst {dimension_numbers = #tpu.dot_dimension_numbers<[1], [0], [0], [1], [0, 0, 1, 1], [], []>} : vector<512x160xbf16>, vector<160x128xbf16>, vector<512x128xf32> -> vector<512x128xf32>
    %c0_3 = arith.constant 0 : index
    %c0_4 = arith.constant 0 : index
    %10 = vector.load %arg3[%c0_3, %c0_4] : memref<512x128xf32, #tpu.memory_space<vmem>>, vector<512x128xf32>
    %11 = arith.addf %9, %10 : vector<512x128xf32>
    %12 = vector.shape_cast %11 : vector<512x128xf32> to vector<32x16x128xf32>
    %cst_5 = arith.constant dense<0xFF800000> : vector<32x128xf32>
    %13 = vector.multi_reduction <maximumf>, %12, %cst_5 [1] : vector<32x16x128xf32> to vector<32x128xf32>
    %c0_6 = arith.constant 0 : index
    %c0_7 = arith.constant 0 : index
    %14 = vector.load %arg4[%c0_6, %c0_7] : memref<1x128xf32, #tpu.memory_space<vmem>>, vector<1x128xf32>
    %15 = vector.broadcast %14 : vector<1x128xf32> to vector<32x128xf32>
    %16 = arith.addf %13, %15 : vector<32x128xf32>
    %cst_8 = arith.constant 0.000000e+00 : f32
    %17 = vector.broadcast %cst_8 : f32 to vector<32x128xf32>
    %18 = arith.maximumf %16, %17 : vector<32x128xf32>
    %19 = arith.truncf %18 : vector<32x128xf32> to vector<32x128xbf16>
    %c0_9 = arith.constant 0 : index
    %c0_10 = arith.constant 0 : index
    %20 = vector.load %arg5[%c0_9, %c0_10] : memref<128x128xbf16, #tpu.memory_space<vmem>>, vector<128x128xbf16>
    %cst_11 = arith.constant dense<0.000000e+00> : vector<32x128xf32>
    %21 = tpu.matmul %19, %20, %cst_11 {dimension_numbers = #tpu.dot_dimension_numbers<[1], [0], [0], [1], [0, 0, 1, 1], [], []>} : vector<32x128xbf16>, vector<128x128xbf16>, vector<32x128xf32> -> vector<32x128xf32>
    %c0_12 = arith.constant 0 : index
    %c0_13 = arith.constant 0 : index
    %22 = vector.load %arg6[%c0_12, %c0_13] : memref<1x128xf32, #tpu.memory_space<vmem>>, vector<1x128xf32>
    %23 = vector.broadcast %22 : vector<1x128xf32> to vector<32x128xf32>
    %24 = arith.addf %21, %23 : vector<32x128xf32>
    %c0_14 = arith.constant 0 : index
    %c0_15 = arith.constant 0 : index
    %25 = vector.load %arg7[%c0_14, %c0_15] : memref<32x128xf32, #tpu.memory_space<vmem>>, vector<32x128xf32>
    tpu.vector_store %arg7[%c0_14, %c0_15], %24 {strides = array<i32>} : memref<32x128xf32, #tpu.memory_space<vmem>>, vector<32x128xf32>,
    return
  }
  func.func @transform_0(%arg0: i32) -> (i32, i32) {
    %c0_i32 = arith.constant 0 : i32
    %c0_i32_0 = arith.constant 0 : i32
    return %arg0, %c0_i32 : i32, i32
  }
  func.func @transform_1(%arg0: i32) -> (i32, i32) {
    %c0_i32 = arith.constant 0 : i32
    %c0_i32_0 = arith.constant 0 : i32
    %c0_i32_1 = arith.constant 0 : i32
    return %c0_i32, %c0_i32_0 : i32, i32
  }
  func.func @transform_2(%arg0: i32) -> (i32, i32) {
    %c0_i32 = arith.constant 0 : i32
    %c0_i32_0 = arith.constant 0 : i32
    %c0_i32_1 = arith.constant 0 : i32
    return %c0_i32, %c0_i32_0 : i32, i32
  }
  func.func @transform_3(%arg0: i32) -> (i32, i32) {
    %c0_i32 = arith.constant 0 : i32
    %c0_i32_0 = arith.constant 0 : i32
    %c0_i32_1 = arith.constant 0 : i32
    return %c0_i32, %c0_i32_0 : i32, i32
  }
  func.func @transform_4(%arg0: i32) -> (i32, i32) {
    %c0_i32 = arith.constant 0 : i32
    %c0_i32_0 = arith.constant 0 : i32
    %c0_i32_1 = arith.constant 0 : i32
    return %c0_i32, %c0_i32_0 : i32, i32
  }
  func.func @transform_5(%arg0: i32) -> (i32, i32) {
    %c0_i32 = arith.constant 0 : i32
    %c0_i32_0 = arith.constant 0 : i32
    %c0_i32_1 = arith.constant 0 : i32
    return %c0_i32, %c0_i32_0 : i32, i32
  }
  func.func @transform_6(%arg0: i32) -> (i32, i32) {
    %c0_i32 = arith.constant 0 : i32
    %c0_i32_0 = arith.constant 0 : i32
    return %arg0, %c0_i32 : i32, i32
  }
}

</mosaic_0001>

<bundles_post_ra>
// kernel: tpu_custom_call.1
= control target key start
LH: loop header
LB: loop body
LE: loop exit
PB: predicated region body
PF: predicated region fallthrough
CT: control target
= control target key end

     0   :  { %11 = vsyncpa [#allocation3], 0  ;;  %s6940_s0 = inlined_call_operand.vmem [shape: bf16[1024,32], index: 0, kind: input, shape index: {}]   ;;  %s6941_s1 = inlined_call_operand.vmem [shape: bf16[160,128], index: 1, kind: input, shape index: {}]   ;;  %s6942_s2 = inlined_call_operand.vmem [shape: f32[512,128], index: 2, kind: input, shape index: {}]   ;;  %s6943_s3 = inlined_call_operand.vmem [shape: f32[1,128], index: 3, kind: input, shape index: {}]   ;;  %s6944_s4 = inlined_call_operand.hbm [shape: bf16[128,128], index: 4, kind: input, shape index: {}]   ;;  %s6945_s5 = inlined_call_operand.vmem [shape: f32[1,128], index: 5, kind: input, shape index: {}]   ;;  %s6946_s6 = inlined_call_operand.hbm [shape: f32[64,128], index: 6, kind: output, shape index: {}]  }
   0x1   :  { %12 = vsyncpa [#allocation4], 0 }
   0x2   :  { %14 = vsyncpa [#allocation4 + $0x1], 0  ;;  %s4115_s21 = smov 0   ;;  %s4117_s22 = smov 0  }
   0x3   :  { %s4119_s23 = smov 0   ;;  %s4121_s24 = smov 0  }
   0x4 LB: > { %s4136_s25 = sadd.s32 4294967295, %s4068_s24   ;;  %s3141_s26 = sadd.s32 4294967294, %s4068_s24   ;;  %s4068_s24 = sphi %s4121_s24, %s7365_s24   ;;  %s4064_s23 = sphi %s4119_s23, %s7364_s23   ;;  %s4060_s22 = sphi %s4117_s22, %s7363_s22   ;;  %s4056_s21 = sphi %s4115_s21, %s7362_s21  }
   0x5   : > { %s4140_s27 = sadd.s32 1, %s4068_s24   ;;  %s158_s28 = sadd.s32 1, %s4064_s23 }
   0x6   : > { %s155_s29 = ssub.s32 %s4068_s24, %s4140_s27  ;;  %p168_p0 = scmp.ne.s32.totalorder %s4064_s23, %s4060_s22 }
   0x7   : > { %p156_p1 = scmp.eq.s32.totalorder %s155_s29, 0  ;;  %p169_p2 = scmp.eq.s32.totalorder %s4136_s25, 1 }
   0x8   : > { %p174_p3 = scmp.ne.s32.totalorder %s4060_s22, %s4056_s21  ;;  %p175_p4 = scmp.eq.s32.totalorder %s3141_s26, 1 }
   0x9   : > { %s4151_s30 = scalar_select %p156_p1, %s4064_s23, %s158_s28  }
   0xa   : > { %p4153_p5 = por %p169_p2, %p168_p0  ;;  %p4157_p6 = por %p175_p4, %p174_p3 }
   0xb   : > { %p3142_p7 = scmp.ge.s32.totalorder %s4068_s24, 1  ;;  %p182_p8 = scmp.lt.s32.totalorder %s4068_s24, 3 }
   0xc   : > { %s7092_s7 = scalar_select %p4153_p5, 1, 0 }
   0xd   : > { %s7093_s8 = scalar_select %p4157_p6, 1, 0 }
   0xe   : > { %p6947_p9 = scmp.eq.s32.totalorder %s4136_s25, 0  ;;  %p4164_p10 = pnand %p3142_p7, %p182_p8 }
   0xf   : > { %s4070_s10 = smov [#allocation2]   ;;  %s3974_s15 = scalar_lea.hbm %s6944_s4, 1024 }
  0x10   : > { %s7094_s9 = scalar_select %p4164_p10, 1, 0 }
  0x11   : > { %s203_s11 = sshll.u32 %s4070_s10, 4  ;;  %p3423_p11 = pneg %p4164_p10  ;;  %s204_s11 = int_to_ptr.vmem [resolvable:$true] %s203_s11 }
  0x12   : > { %p3975_p13 = scmp.ne.s32.totalorder %s6944_s4, %s3974_s15  ;;  %p3981_p3 = scmp.lt.u32.totalorder %s3974_s15, %s6944_s4 }
  0x13   : > { %p4172_p12 = pnand %p6947_p9, %p3423_p11 }
  0x15   : > { %p3976_p0 = pneg %p4172_p12 }
  0x17   : > { %p3977_p1 = pnand %p3976_p0, %p3975_p13 }
  0x19   : > { %p3978_p2 = pneg %p3977_p1 }
  0x1b   : > { %p3983_p4 = pnand %p3981_p3, %p3978_p2 }
  0x1d   : > { %3986 = shalt.err (!%p3983_p4)
}
  0x1e   : > { %s3987_s20 = scalar_lea.vmem %s204_s11, 1024  ;;  %p3995_p9 = scmp.lt.s32.totalorder %s204_s11, %s204_s11 }
  0x1f   : > { %p3988_p7 = scmp.ne.s32.totalorder %s204_s11, %s3987_s20  ;;  %p3996_p6 = scmp.lt.s32.totalorder %s3987_s20, %s3987_s20 }
  0x21   : > { %p3990_p8 = pnand %p3988_p7, %p3976_p0  ;;  %p3997_p5 = por %p3996_p6, %p3995_p9 }
  0x23   : > { %p3991_p11 = pneg %p3990_p8 }
  0x25   : > { %p3998_p10 = pnand %p3997_p5, %p3991_p11 }
  0x27   : > { %4001 = shalt.err (!%p3998_p10)
}
  0x28   : > { %s4071_s26 = smov 64   ;;  %s4072_s28 = smov 4  }
  0x29   : > { %3426 = dma.hbm_to_vmem [thread:$0]  (!%p4172_p12), %s6944_s4, 1024, %s204_s11, [#allocation3], %s4071_s26, %s4071_s26, %s4072_s28  }
  0x2a   : > { %p7096_p13 = scmp.ne.s32.totalorder %s7094_s9, 0 }
  0x2c   : > { %231 = sbr.rel (%p7096_p13) target bundleno = 864 (0x360), region = 44 }
  0x33   : > { %p7097_p1 = scmp.eq.s32.totalorder %s4136_s25, 0 }
  0x35   : > { %4047 = dma.done.wait (%p7097_p1), [#allocation3], 1024   ;;  %p7098_p0 = pmov %p7097_p1 }
  0x36   : > { %s3148_s13 = sshll.u32 %s4136_s25, 6  ;;  %v461_v0 = vlaneseq  ;;  %v4073_v1 = vmov 0   ;;  %v3955_v36 = vld [vmem:[%s6941_s1] sm:$0xff]   ;;  %s4074_s17 = smov 32   ;;  %v3956_v45 = vld [vmem:[%s6941_s1 + $0x8] sm:$0xff]   ;;  %v3957_v62 = vld [vmem:[%s6941_s1 + $0x10] sm:$0xff]  }
  0x37   : > { %4049 = vsyncadd (%p7098_p0), [#allocation3], 4294966272  ;;  %p262_p5 = scmp.lt.s32.totalorder %s3148_s13, 127  ;;  %2182 = vmatprep.subr.bf16.mxu0 %v4073_v1  ;;  %3397 = vmatprep.subr.bf16.mxu1 %v4073_v1  ;;  %s4075_s18 = smov 96   ;;  %vm1683_vm4 = vcmask 261120   ;;  %vm1748_vm5 = vcmask 523264  }
  0x38   : > { %v4201_v2 = vshrl.u32 %v461_v0, 7  ;;  %2183 = vmatpush1.bf16.msra.mxu0 %v3955_v36  ;;  %3407 = vmatpush1.bf16.msra.mxu1 %v3955_v36  ;;  %s4076_s26 = smov 64   ;;  %vm1813_vm6 = vcmask 785408   ;;  %vm2886_vm7 = vcmask 1041409   ;;  %vm2889_vm8 = vcmask 1042434   ;;  %s258_s10 = sand.u32 1, %s4060_s22  }
  0x39   : > { %s7367_s13 = smov (!%p262_p5, %s3148_s13), 127  ;;  %2184 = vmatprep.subr.bf16.mxu0 %v4073_v1  ;;  %3398 = vmatprep.subr.bf16.mxu1 %v4073_v1  ;;  %vm2892_vm9 = vcmask 1043459   ;;  %vm2895_vm10 = vcmask 1044484   ;;  %vm2898_vm11 = vcmask 1045509   ;;  %vm2901_vm12 = vcmask 1046534   ;;  %p7360_p9 = scmp.ne.s32.totalorder %s7092_s7, 0 }
  0x3a   : > { %s3149_s9 = sshll.u32 %s7367_s13, 2  ;;  %vm463_vm0 = vcmp.lt.s32.totalorder %v4201_v2, 7  ;;  %vm721_vm1 = vcmp.lt.s32.totalorder %v4201_v2, 5  ;;  %vm592_vm2 = vcmp.lt.s32.totalorder %v4201_v2, 6  ;;  %vm850_vm3 = vcmp.lt.s32.totalorder %v4201_v2, 4  ;;  %s3147_s13 = sshll.u32 %s258_s10, 5 }
  0x3b   : > { %s4206_s14 = scalar_lea.vmem %s6940_s0, %s3149_s9  ;;  %vm2904_vm13 = vcmask 1047559   ;;  %s4077_s19 = smov [#allocation5]  }
  0x3c   : > { %v3209_v3 = vld [vmem:[%s4206_s14] sm:$0xff]   ;;  %v3336_v4 = vld [vmem:[%s4206_s14 + $0x8] sm:$0xff]   ;;  %v3337_v5 = vld [vmem:[%s4206_s14 + $0x10] sm:$0xff]   ;;  %2185 = vmatpush1.bf16.msra.mxu0 %v3956_v45  ;;  %3408 = vmatpush1.bf16.msra.mxu1 %v3956_v45  ;;  %s4006_s20 = sshll.u32 %s4077_s19, 4  ;;  %s4007_s20 = int_to_ptr.vmem [resolvable:$false] %s4006_s20 }
  0x3d   : > { %v4214_v6 = vunpack.c.l.bf16 %v3209_v3  ;;  %v4216_v7 = vunpack.c.h.bf16 %v3209_v3  ;;  %v4218_v8 = vunpack.c.l.bf16 %v3336_v4  ;;  %v4220_v9 = vunpack.c.h.bf16 %v3336_v4  ;;  %v4223_v10 = vld [vmem:[%s4206_s14 + $0x18] sm:$0xff]   ;;  %v3352_v11 = vld [vmem:[%s4206_s14 + $0x88] sm:$0xff]   ;;  %v3353_v50 = vld [vmem:[%s4206_s14 + $0x90] sm:$0xff]   ;;  %2186 = vmatprep.subr.bf16.mxu0 %v4073_v1  ;;  %3399 = vmatprep.subr.bf16.mxu1 %v4073_v1  ;;  %s4008_s28 = scalar_lea.vmem %s4007_s20, 1024 }
  0x3e   : > { %v4226_v12 = vunpack.c.l.bf16 %v3337_v5  ;;  %v4228_v13 = vunpack.c.h.bf16 %v3337_v5  ;;  %v4231_v14 = vunpack.c.l.bf16 %v4223_v10  ;;  %v4233_v15 = vunpack.c.l.bf16 %v3352_v11 }
  0x3f   : > { %7099 = vst [vmem:[#allocation8_spill] sm:$0xff] %v4214_v6  ;;  %7100 = vst [vmem:[#allocation9_spill] sm:$0xff] %v4216_v7  ;;  %v6952_v16 = vrot.slane %v4214_v6, 1  ;;  %v398_v17 = vrot.slane %v4216_v7, 1  ;;  %v399_v18 = vrot.slane %v4218_v8, 1  ;;  %v6950_v19 = vrot.slane %v4214_v6, 3 }
  0x40   : > { %7101 = vst [vmem:[#allocation10_spill] sm:$0xff] %v4218_v8  ;;  %7102 = vst [vmem:[#allocation11_spill] sm:$0xff] %v4228_v13  ;;  %v658_v20 = vrot.slane %v4216_v7, 3  ;;  %v659_v21 = vrot.slane %v4218_v8, 3  ;;  %v6951_v22 = vrot.slane %v4214_v6, 2  ;;  %v529_v23 = vrot.slane %v4216_v7, 2  ;;  %2187 = vmatpush1.bf16.msra.mxu0 %v3957_v62  ;;  %3409 = vmatpush1.bf16.msra.mxu1 %v3957_v62 }
  0x41   : > { %7103 = vst [vmem:[#allocation12_spill] sm:$0xff] %v4231_v14  ;;  %v525_v24 = vsel %vm463_vm0, %v398_v17, %v399_v18  ;;  %v526_v25 = vsel %vm463_vm0, %v6952_v16, %v398_v17  ;;  %v530_v26 = vrot.slane %v4218_v8, 2  ;;  %v400_v27 = vrot.slane %v4220_v9, 1  ;;  %2188 = vmatprep.subr.bf16.mxu0 %v4073_v1  ;;  %3400 = vmatprep.subr.bf16.mxu1 %v4073_v1 }
  0x42   : > { %v3475_v28 = vpack.i.bf16 %v525_v24, %v526_v25  ;;  %v783_v29 = vsel %vm721_vm1, %v658_v20, %v659_v21  ;;  %v784_v30 = vsel %vm721_vm1, %v6950_v19, %v658_v20  ;;  %v655_v31 = vsel %vm592_vm2, %v6951_v22, %v529_v23  ;;  %v3339_v25 = vld [vmem:[%s4206_s14 + $0x20] sm:$0xff]  }
  0x43   : > { %v3485_v32 = vpack.i.bf16 %v783_v29, %v784_v30  ;;  %v654_v33 = vsel %vm592_vm2, %v529_v23, %v530_v26  ;;  %v401_v34 = vrot.slane %v4226_v12, 1  ;;  %v524_v35 = vsel %vm463_vm0, %v399_v18, %v400_v27  ;;  %v3958_v30 = vld [vmem:[%s6941_s1 + $0x18] sm:$0xff]  }
  0x44   : > { %3476 = vrot.lane.b32.xlu0 %v3475_v28, %s4074_s17  ;;  %v3480_v37 = vpack.i.bf16 %v654_v33, %v655_v31  ;;  %v531_v38 = vrot.slane %v4220_v9, 2  ;;  %v532_v39 = vrot.slane %v4226_v12, 2  ;;  %v660_v40 = vrot.slane %v4220_v9, 3  ;;  %2189 = vmatpush1.bf16.msra.mxu0 %v3958_v30 }
  0x45   : > { %3486 = vrot.lane.b32.xlu1 %v3485_v32, %s4075_s18  ;;  %v523_v41 = vsel %vm463_vm0, %v400_v27, %v401_v34  ;;  %v661_v42 = vrot.slane %v4226_v12, 3  ;;  %v402_v43 = vrot.slane %v4228_v13, 1  ;;  %v403_v44 = vrot.slane %v4231_v14, 1  ;;  %2190 = vmatprep.subr.bf16.mxu0 %v4073_v1 }
  0x46   : > { %v3490_v46 = vpack.i.bf16 %v523_v41, %v524_v35  ;;  %v652_v47 = vsel %vm592_vm2, %v531_v38, %v532_v39  ;;  %v653_v48 = vsel %vm592_vm2, %v530_v26, %v531_v38  ;;  %v782_v49 = vsel %vm721_vm1, %v659_v21, %v660_v40  ;;  %v4357_v35 = vld [vmem:[%s4206_s14 + $0x98] sm:$0xff]   ;;  %3410 = vmatpush1.bf16.msra.mxu1 %v3958_v30 }
  0x47   : > { %v3495_v51 = vpack.i.bf16 %v652_v47, %v653_v48  ;;  %v781_v52 = vsel %vm721_vm1, %v660_v40, %v661_v42  ;;  %v521_v53 = vsel %vm463_vm0, %v402_v43, %v403_v44  ;;  %v522_v55 = vsel %vm463_vm0, %v401_v34, %v402_v43  ;;  %3401 = vmatprep.subr.bf16.mxu1 %v4073_v1 }
  0x48   : > { %3481 = vrot.lane.b32.xlu0 %v3480_v37, %s4076_s26  ;;  %v3500_v54 = vpack.i.bf16 %v781_v52, %v782_v49  ;;  %v533_v56 = vrot.slane %v4228_v13, 2  ;;  %v534_v57 = vrot.slane %v4231_v14, 2  ;;  %v662_v58 = vrot.slane %v4228_v13, 3  ;;  %v3959_v52 = vld [vmem:[%s6941_s1 + $0x20] sm:$0xff]  }
  0x49   : > { %3491 = vrot.lane.b32.xlu1 %v3490_v46, %s4074_s17  ;;  %v663_v59 = vrot.slane %v4231_v14, 3  ;;  %v4305_v60 = vunpack.c.h.bf16 %v3352_v11  ;;  %v4307_v61 = vunpack.c.l.bf16 %v3353_v50  ;;  %v6955_v3 = vrot.slane %v4233_v15, 1  ;;  %2191 = vmatpush1.bf16.msra.mxu0 %v3959_v52 }
  0x4a   : > { %v650_v63 = vsel %vm592_vm2, %v533_v56, %v534_v57  ;;  %v651_v0 = vsel %vm592_vm2, %v532_v39, %v533_v56  ;;  %v6954_v4 = vrot.slane %v4233_v15, 2  ;;  %v3505_v5 = vpack.i.bf16 %v521_v53, %v522_v55  ;;  %v4403_v56 = vld [vmem:[%s4206_s14 + $0x28] sm:$0xff]   ;;  %2192 = vmatprep.subr.bf16.mxu0 %v4073_v1  ;;  %3411 = vmatpush1.bf16.msra.mxu1 %v3959_v52 }
  0x4b   : > { %7104 = vst [vmem:[#allocation13_spill] sm:$0xff] %v4305_v60  ;;  %7105 = vst [vmem:[#allocation14_spill] sm:$0xff] %v4307_v61  ;;  %v3510_v11 = vpack.i.bf16 %v650_v63, %v651_v0  ;;  %v779_v17 = vsel %vm721_vm1, %v662_v58, %v663_v59  ;;  %v432_v18 = vrot.slane %v4305_v60, 1  ;;  %v780_v20 = vsel %vm721_vm1, %v661_v42, %v662_v58  ;;  %v4413_v63 = vld [vmem:[%s4206_s14 + $0xa0] sm:$0xff]   ;;  %v3960_v0 = vld [vmem:[%s6941_s1 + $0x28] sm:$0xff]  }
  0x4c   : > { %3496 = vrot.lane.b32.xlu0 %v3495_v51, %s4076_s26  ;;  %v433_v21 = vrot.slane %v4307_v61, 1  ;;  %v563_v23 = vrot.slane %v4305_v60, 2  ;;  %v564_v24 = vrot.slane %v4307_v61, 2  ;;  %v6953_v27 = vrot.slane %v4233_v15, 3  ;;  %3402 = vmatprep.subr.bf16.mxu1 %v4073_v1 }
  0x4d   : > { %3501 = vrot.lane.b32.xlu1 %v3500_v54, %s4075_s18  ;;  %v492_v26 = vsel %vm463_vm0, %v6955_v3, %v432_v18  ;;  %v692_v28 = vrot.slane %v4305_v60, 3  ;;  %v693_v29 = vrot.slane %v4307_v61, 3  ;;  %v4354_v34 = vunpack.c.h.bf16 %v4223_v10  ;;  %2193 = vmatpush1.bf16.msra.mxu0 %v3960_v0 }
  0x4e   : > { %v491_v31 = vsel %vm463_vm0, %v432_v18, %v433_v21  ;;  %v620_v32 = vsel %vm592_vm2, %v563_v23, %v564_v24  ;;  %v621_v33 = vsel %vm592_vm2, %v6954_v4, %v563_v23  ;;  %v3515_v36 = vpack.i.bf16 %v779_v17, %v780_v20  ;;  %2194 = vmatprep.subr.bf16.mxu0 %v4073_v1 }
  0x4f   : > { %7106 = vst [vmem:[#allocation15_spill] sm:$0xff] %v4354_v34  ;;  %v3520_v37 = vpack.i.bf16 %v491_v31, %v492_v26  ;;  %v3525_v38 = vpack.i.bf16 %v620_v32, %v621_v33  ;;  %v749_v39 = vsel %vm721_vm1, %v692_v28, %v693_v29  ;;  %v750_v10 = vsel %vm721_vm1, %v6953_v27, %v692_v28 }
  0x50   : > { %3506 = vrot.lane.b32.xlu0 %v3505_v5, %s4074_s17  ;;  %v4369_v40 = vunpack.c.l.bf16 %v3339_v25  ;;  %v404_v41 = vrot.slane %v4354_v34, 1  ;;  %v535_v42 = vrot.slane %v4354_v34, 2  ;;  %v664_v43 = vrot.slane %v4354_v34, 3  ;;  %3412 = vmatpush1.bf16.msra.mxu1 %v3960_v0  ;;  %v4522_v0 = vld [vmem:[%s4206_s14 + $0x30] sm:$0xff]  }
  0x51   : > { %3511 = vrot.lane.b32.xlu1 %v3510_v11, %s4076_s26  ;;  %v4376_v45 = vunpack.c.h.bf16 %v3353_v50  ;;  %v4379_v46 = vunpack.c.l.bf16 %v4357_v35  ;;  %v4381_v47 = vunpack.c.h.bf16 %v3339_v25  ;;  %v3530_v5 = vpack.i.bf16 %v749_v39, %v750_v10  ;;  %3403 = vmatprep.subr.bf16.mxu1 %v4073_v1 }
  0x52   : > { %7107 = vst [vmem:[#allocation16_spill] sm:$0xff] %v4369_v40  ;;  %v405_v48 = vrot.slane %v4369_v40, 1  ;;  %v520_v49 = vsel %vm463_vm0, %v403_v44, %v404_v41  ;;  %v536_v51 = vrot.slane %v4369_v40, 2  ;;  %v649_v50 = vsel %vm592_vm2, %v534_v57, %v535_v42 }
  0x53   : > { %7108 = vst [vmem:[#allocation17_spill] sm:$0xff] %v4376_v45  ;;  %7109 = vst [vmem:[#allocation18_spill] sm:$0xff] %v4379_v46  ;;  %v665_v53 = vrot.slane %v4369_v40, 3  ;;  %v4398_v54 = vsel %vm721_vm1, %v663_v59, %v664_v43  ;;  %v434_v44 = vrot.slane %v4376_v45, 1  ;;  %v435_v55 = vrot.slane %v4379_v46, 1 }
  0x54   : > { %7110 = vst [vmem:[#allocation19_spill] sm:$0xff] %v4381_v47  ;;  %3516 = vrot.lane.b32.xlu0 %v3515_v36, %s4075_s18  ;;  %v519_v57 = vsel %vm463_vm0, %v404_v41, %v405_v48  ;;  %v648_v58 = vsel %vm592_vm2, %v535_v42, %v536_v51  ;;  %v565_v62 = vrot.slane %v4376_v45, 2  ;;  %v566_v59 = vrot.slane %v4379_v46, 2 }
  0x55   : > { %3521 = vrot.lane.b32.xlu1 %v3520_v37, %s4074_s17  ;;  %v3535_v11 = vpack.i.bf16 %v519_v57, %v520_v49  ;;  %v777_v17 = vsel %vm721_vm1, %v664_v43, %v665_v53  ;;  %v3540_v18 = vpack.i.bf16 %v648_v58, %v649_v50  ;;  %v4427_v23 = vsel %vm463_vm0, %v434_v44, %v435_v55 }
  0x56   : > { %v3545_v20 = vpack.i.bf16 %v777_v17, %v4398_v54  ;;  %v490_v25 = vsel %vm463_vm0, %v433_v21, %v434_v44  ;;  %v4437_v26 = vsel %vm592_vm2, %v565_v62, %v566_v59  ;;  %v4443_v28 = vsel %vm592_vm2, %v564_v24, %v565_v62 }
  0x57   : > { %v694_v30 = vrot.slane %v4376_v45, 3  ;;  %v695_v31 = vrot.slane %v4379_v46, 3  ;;  %v4450_v21 = vunpack.c.l.bf16 %v4403_v56  ;;  %v406_v32 = vrot.slane %v4381_v47, 1  ;;  %v3360_v46 = vld [vmem:[%s4206_s14 + $0xc8] sm:$0xff]  }
  0x58   : > { %3526 = vrot.lane.b32.xlu0 %v3525_v38, %s4076_s26  ;;  %v537_v33 = vrot.slane %v4381_v47, 2  ;;  %v666_v36 = vrot.slane %v4381_v47, 3  ;;  %v3550_v24 = vpack.i.bf16 %v4427_v23, %v490_v25  ;;  %v4465_v38 = vunpack.c.h.bf16 %v4357_v35  ;;  %v3961_v35 = vld [vmem:[%s6941_s1 + $0x30] sm:$0xff]   ;;  %v3962_v25 = vld [vmem:[%s6941_s1 + $0x38] sm:$0xff]  }
  0x59   : > { %7111 = vst [vmem:[#allocation20_spill] sm:$0xff] %v4450_v21  ;;  %3531 = vrot.lane.b32.xlu1 %v3530_v5, %s4075_s18  ;;  %v4462_v37 = vsel %vm721_vm1, %v694_v30, %v695_v31  ;;  %v4468_v39 = vunpack.c.l.bf16 %v4413_v63  ;;  %v4474_v10 = vsel %vm721_vm1, %v693_v29, %v694_v30  ;;  %v407_v41 = vrot.slane %v4450_v21, 1  ;;  %v4525_v5 = vld [vmem:[%s4206_s14 + $0xa8] sm:$0xff]   ;;  %2195 = vmatpush1.bf16.msra.mxu0 %v3961_v35 }
  0x5a   : > { %7112 = vst [vmem:[#allocation21_spill] sm:$0xff] %v4465_v38  ;;  %v4479_v42 = vsel %vm463_vm0, %v405_v48, %v406_v32  ;;  %v538_v43 = vrot.slane %v4450_v21, 2  ;;  %v4487_v49 = vsel %vm592_vm2, %v536_v51, %v537_v33  ;;  %v667_v29 = vrot.slane %v4450_v21, 3  ;;  %2196 = vmatprep.subr.bf16.mxu0 %v4073_v1  ;;  %3413 = vmatpush1.bf16.msra.mxu1 %v3961_v35 }
  0x5b   : > { %7113 = vst [vmem:[#allocation22_spill] sm:$0xff] %v4468_v39  ;;  %v4492_v50 = vsel %vm721_vm1, %v665_v53, %v666_v36  ;;  %v436_v48 = vrot.slane %v4465_v38, 1  ;;  %v4499_v52 = vsel %vm463_vm0, %v406_v32, %v407_v41  ;;  %v437_v54 = vrot.slane %v4468_v39, 1  ;;  %3404 = vmatprep.subr.bf16.mxu1 %v4073_v1 }
  0x5c   : > { %3536 = vrot.lane.b32.xlu0 %v3535_v11, %s4074_s17  ;;  %v4503_v51 = vsel %vm592_vm2, %v537_v33, %v538_v43  ;;  %v567_v53 = vrot.slane %v4465_v38, 2  ;;  %v3555_v44 = vpack.i.bf16 %v4437_v26, %v4443_v28  ;;  %v3560_v57 = vpack.i.bf16 %v4462_v37, %v4474_v10 }
  0x5d   : > { %3541 = vrot.lane.b32.xlu1 %v3540_v18, %s4076_s26  ;;  %v3565_v58 = vpack.i.bf16 %v4499_v52, %v4479_v42  ;;  %v4519_v62 = vsel %vm721_vm1, %v666_v36, %v667_v29  ;;  %v3570_v11 = vpack.i.bf16 %v4503_v51, %v4487_v49  ;;  %v4531_v17 = vsel %vm463_vm0, %v436_v48, %v437_v54 }
  0x5e   : > { %v4537_v18 = vsel %vm463_vm0, %v435_v55, %v436_v48  ;;  %v568_v23 = vrot.slane %v4468_v39, 2  ;;  %v3575_v26 = vpack.i.bf16 %v4519_v62, %v4492_v50  ;;  %v696_v28 = vrot.slane %v4465_v38, 3  ;;  %2197 = vmatpush1.bf16.msra.mxu0 %v3962_v25  ;;  %3414 = vmatpush1.bf16.msra.mxu1 %v3962_v25 }
  0x5f   : > { %v697_v30 = vrot.slane %v4468_v39, 3  ;;  %v4548_v32 = vunpack.c.h.bf16 %v4403_v56  ;;  %v4556_v55 = vsel %vm592_vm2, %v566_v59, %v567_v53  ;;  %v4559_v33 = vunpack.c.l.bf16 %v4522_v0  ;;  %2198 = vmatprep.subr.bf16.mxu0 %v4073_v1  ;;  %3405 = vmatprep.subr.bf16.mxu1 %v4073_v1 }
  0x60   : > { %3546 = vrot.lane.b32.xlu0 %v3545_v20, %s4075_s18  ;;  %v4562_v36 = vunpack.c.h.bf16 %v4413_v63  ;;  %v4565_v56 = vunpack.c.l.bf16 %v4525_v5  ;;  %v3580_v20 = vpack.i.bf16 %v4531_v17, %v4537_v18  ;;  %v4575_v59 = vsel %vm592_vm2, %v567_v53, %v568_v23  ;;  %v3963_v53 = vld [vmem:[%s6941_s1 + $0x40] sm:$0xff]  }
  0x61   : > { %7114 = vst [vmem:[#allocation23_spill] sm:$0xff] %v4548_v32  ;;  %7115 = vst [vmem:[#allocation24_spill] sm:$0xff] %v4559_v33  ;;  %3551 = vrot.lane.b32.xlu1 %v3550_v24, %s4074_s17  ;;  %v4581_v63 = vsel %vm721_vm1, %v696_v28, %v697_v30  ;;  %v408_v37 = vrot.slane %v4548_v32, 1  ;;  %v4588_v24 = vsel %vm721_vm1, %v695_v31, %v696_v28  ;;  %v409_v10 = vrot.slane %v4559_v33, 1 }
  0x62   : > { %7116 = vst [vmem:[#allocation25_spill] sm:$0xff] %v4562_v36  ;;  %7117 = vst [vmem:[#allocation26_spill] sm:$0xff] %v4565_v56  ;;  %v539_v35 = vrot.slane %v4548_v32, 2  ;;  %v6957_v48 = vrot.slane %v4559_v33, 2  ;;  %v668_v22 = vrot.slane %v4548_v32, 3  ;;  %v6956_v31 = vrot.slane %v4559_v33, 3  ;;  %2199 = vmatpush1.bf16.msra.mxu0 %v3963_v53  ;;  %3415 = vmatpush1.bf16.msra.mxu1 %v3963_v53 }
  0x63   : > { %v4598_v19 = vsel %vm463_vm0, %v407_v41, %v408_v37  ;;  %v438_v28 = vrot.slane %v4562_v36, 1  ;;  %v4607_v16 = vsel %vm463_vm0, %v408_v37, %v409_v10  ;;  %v439_v4 = vrot.slane %v4565_v56, 1  ;;  %2200 = vmatprep.subr.bf16.mxu0 %v4073_v1  ;;  %3406 = vmatprep.subr.bf16.mxu1 %v4073_v1 }
  0x64   : > { %3556 = vrot.lane.b32.xlu0 %v3555_v44, %s4076_s26  ;;  %v4613_v41 = vsel %vm592_vm2, %v539_v35, %v6957_v48  ;;  %v4617_v27 = vsel %vm592_vm2, %v538_v43, %v539_v35  ;;  %v3585_v44 = vpack.i.bf16 %v4575_v59, %v4556_v55  ;;  %v3590_v25 = vpack.i.bf16 %v4581_v63, %v4588_v24  ;;  %v3342_v35 = vld [vmem:[%s4206_s14 + $0x38] sm:$0xff]   ;;  %v3357_v24 = vld [vmem:[%s4206_s14 + $0xb0] sm:$0xff]  }
  0x65   : > { %3561 = vrot.lane.b32.xlu1 %v3560_v57, %s4075_s18  ;;  %v4630_v37 = vsel %vm721_vm1, %v668_v22, %v6956_v31  ;;  %v4636_v43 = vsel %vm721_vm1, %v667_v29, %v668_v22  ;;  %v4643_v55 = vsel %vm463_vm0, %v438_v28, %v439_v4  ;;  %v4647_v59 = vsel %vm463_vm0, %v437_v54, %v438_v28  ;;  %v3964_v22 = vld [vmem:[%s6941_s1 + $0x48] sm:$0xff]  }
  0x66   : > { %v569_v63 = vrot.slane %v4562_v36, 2  ;;  %v570_v3 = vrot.slane %v4565_v56, 2  ;;  %v698_v57 = vrot.slane %v4562_v36, 3  ;;  %v699_v31 = vrot.slane %v4565_v56, 3  ;;  %2201 = vmatpush1.bf16.msra.mxu0 %v3964_v22  ;;  %3416 = vmatpush1.bf16.msra.mxu1 %v3964_v22 }
  0x67   : > { %v4667_v28 = vunpack.c.h.bf16 %v4522_v0  ;;  %v4669_v29 = vunpack.c.l.bf16 %v3342_v35  ;;  %v4672_v48 = vunpack.c.h.bf16 %v4525_v5  ;;  %v4691_v0 = vunpack.c.l.bf16 %v3357_v24 }
  0x68   : > { %3566 = vrot.lane.b32.xlu0 %v3565_v58, %s4074_s17  ;;  %v4683_v52 = vsel %vm592_vm2, %v569_v63, %v570_v3  ;;  %v4689_v58 = vsel %vm592_vm2, %v568_v23, %v569_v63  ;;  %v4695_v1 = vsel %vm721_vm1, %v698_v57, %v699_v31  ;;  %v4701_v49 = vsel %vm721_vm1, %v697_v30, %v698_v57 }
  0x69   : > { %7118 = vst [vmem:[#allocation27_spill] sm:$0xff] %v4667_v28  ;;  %7119 = vst [vmem:[#allocation28_spill] sm:$0xff] %v4669_v29  ;;  %3571 = vrot.lane.b32.xlu1 %v3570_v11, %s4076_s26  ;;  %v410_v51 = vrot.slane %v4667_v28, 1  ;;  %v411_v5 = vrot.slane %v4669_v29, 1  ;;  %v541_v11 = vrot.slane %v4667_v28, 2  ;;  %v542_v23 = vrot.slane %v4669_v29, 2 }
  0x6a   : > { %7120 = vst [vmem:[#allocation29_spill] sm:$0xff] %v4672_v48  ;;  %7121 = vst [vmem:[#allocation30_spill] sm:$0xff] %v4691_v0  ;;  %v670_v53 = vrot.slane %v4667_v28, 3  ;;  %v671_v63 = vrot.slane %v4669_v29, 3  ;;  %v440_v42 = vrot.slane %v4672_v48, 1  ;;  %v441_v54 = vrot.slane %v4691_v0, 1 }
  0x6b   : > { %v4715_v30 = vsel %vm463_vm0, %v410_v51, %v411_v5  ;;  %v4719_v57 = vsel %vm463_vm0, %v409_v10, %v410_v51  ;;  %v7122_v10 = vrot.slane %v4559_v33, 2  ;;  %v3343_v51 = vld [vmem:[%s4206_s14 + $0x40] sm:$0xff]   ;;  %v7123_v18 = vrot.slane %v4559_v33, 3 }
  0x6c   : > { %3576 = vrot.lane.b32.xlu0 %v3575_v26, %s4075_s18  ;;  %v4733_v26 = vsel %vm592_vm2, %v541_v11, %v542_v23  ;;  %v4744_v17 = vsel %vm721_vm1, %v670_v53, %v671_v63  ;;  %v4754_v62 = vsel %vm463_vm0, %v440_v42, %v441_v54  ;;  %v4758_v50 = vsel %vm463_vm0, %v439_v4, %v440_v42 }
  0x6d   : > { %3581 = vrot.lane.b32.xlu1 %v3580_v20, %s4074_s17  ;;  %v4739_v22 = vsel %vm592_vm2, %v7122_v10, %v541_v11  ;;  %v4750_v20 = vsel %vm721_vm1, %v7123_v18, %v670_v53  ;;  %v3358_v11 = vld [vmem:[%s4206_s14 + $0xb8] sm:$0xff]   ;;  %v571_v28 = vrot.slane %v4672_v48, 2  ;;  %v572_v53 = vrot.slane %v4691_v0, 2 }
  0x6e   : > { %v700_v18 = vrot.slane %v4672_v48, 3  ;;  %v701_v56 = vrot.slane %v4691_v0, 3  ;;  %v4770_v36 = vunpack.c.h.bf16 %v3342_v35  ;;  %v4772_v4 = vunpack.c.l.bf16 %v3343_v51 }
  0x6f   : > { %v4779_v10 = vunpack.c.h.bf16 %v3357_v24  ;;  %v4781_v33 = vunpack.c.l.bf16 %v3358_v11  ;;  %v4789_v35 = vsel %vm592_vm2, %v570_v3, %v571_v28  ;;  %v7128_v3 = vpack.i.bf16 %v4607_v16, %v4598_v19 }
  0x70   : > { %3586 = vrot.lane.b32.xlu0 %v3585_v44, %s4076_s26  ;;  %7124 = vst [vmem:[#allocation31_spill] sm:$0xff] %v4770_v36  ;;  %7125 = vst [vmem:[#allocation32_spill] sm:$0xff] %v4772_v4  ;;  %v4785_v44 = vsel %vm592_vm2, %v571_v28, %v572_v53  ;;  %v412_v42 = vrot.slane %v4770_v36, 1  ;;  %v4798_v24 = vsel %vm721_vm1, %v699_v31, %v700_v18  ;;  %v413_v29 = vrot.slane %v4772_v4, 1 }
  0x71   : > { %3591 = vrot.lane.b32.xlu1 %v3590_v25, %s4075_s18  ;;  %7126 = vst [vmem:[#allocation33_spill] sm:$0xff] %v4779_v10  ;;  %7127 = vst [vmem:[#allocation34_spill] sm:$0xff] %v4781_v33  ;;  %v4793_v25 = vsel %vm721_vm1, %v700_v18, %v701_v56  ;;  %v543_v0 = vrot.slane %v4770_v36, 2  ;;  %v544_v48 = vrot.slane %v4772_v4, 2  ;;  %v672_v32 = vrot.slane %v4770_v36, 3  ;;  %v3359_v36 = vld [vmem:[%s4206_s14 + $0xc0] sm:$0xff]  }
  0x72   : > { %v4809_v28 = vsel %vm463_vm0, %v411_v5, %v412_v42  ;;  %v673_v31 = vrot.slane %v4772_v4, 3  ;;  %v442_v18 = vrot.slane %v4779_v10, 1  ;;  %v7129_v39 = vpack.i.bf16 %v4613_v41, %v4617_v27 }
  0x73   : > { %v4820_v16 = vsel %vm463_vm0, %v412_v42, %v413_v29  ;;  %v4824_v19 = vsel %vm592_vm2, %v543_v0, %v544_v48  ;;  %v4828_v5 = vsel %vm592_vm2, %v542_v23, %v543_v0  ;;  %v4841_v41 = vsel %vm721_vm1, %v671_v63, %v672_v32  ;;  %v3344_v42 = vld [vmem:[%s4206_s14 + $0x48] sm:$0xff]  }
  0x74   : > { %3596 = vrot.lane.b32.xlu0 %v7128_v3, %s4074_s17  ;;  %v443_v3 = vrot.slane %v4781_v33, 1  ;;  %v4852_v4 = vsel %vm463_vm0, %v441_v54, %v442_v18  ;;  %v573_v27 = vrot.slane %v4779_v10, 2  ;;  %v574_v0 = vrot.slane %v4781_v33, 2 }
  0x75   : > { %3601 = vrot.lane.b32.xlu1 %v7129_v39, %s4076_s26  ;;  %v4837_v39 = vsel %vm721_vm1, %v672_v32, %v673_v31  ;;  %v7130_v32 = vpack.i.bf16 %v4630_v37, %v4636_v43  ;;  %v702_v38 = vrot.slane %v4779_v10, 3  ;;  %v703_v21 = vrot.slane %v4781_v33, 3 }
  0x76   : > { %v4848_v23 = vsel %vm463_vm0, %v442_v18, %v443_v3  ;;  %v7131_v54 = vpack.i.bf16 %v4643_v55, %v4647_v59  ;;  %v4871_v47 = vunpack.c.h.bf16 %v3343_v51  ;;  %v4873_v37 = vunpack.c.l.bf16 %v3344_v42 }
  0x77   : > { %v4875_v43 = vunpack.c.h.bf16 %v3358_v11  ;;  %v4881_v63 = vsel %vm592_vm2, %v573_v27, %v574_v0  ;;  %v4885_v55 = vsel %vm592_vm2, %v572_v53, %v573_v27  ;;  %v4887_v59 = vunpack.c.l.bf16 %v3359_v36 }
  0x78   : > { %3606 = vrot.lane.b32.xlu0 %v7130_v32, %s4075_s18  ;;  %7132 = vst [vmem:[#allocation35_spill] sm:$0xff] %v4871_v47  ;;  %7133 = vst [vmem:[#allocation36_spill] sm:$0xff] %v4873_v37  ;;  %v4891_v51 = vsel %vm721_vm1, %v702_v38, %v703_v21  ;;  %v4895_v11 = vsel %vm721_vm1, %v701_v56, %v702_v38  ;;  %v415_v32 = vrot.slane %v4873_v37, 1  ;;  %v545_v27 = vrot.slane %v4871_v47, 2 }
  0x79   : > { %3611 = vrot.lane.b32.xlu1 %v7131_v54, %s4074_s17  ;;  %7134 = vst [vmem:[#allocation37_spill] sm:$0xff] %v4875_v43  ;;  %7135 = vst [vmem:[#allocation38_spill] sm:$0xff] %v4887_v59  ;;  %v414_v54 = vrot.slane %v4871_v47, 1  ;;  %v7136_v53 = vpack.i.bf16 %v4683_v52, %v4689_v58  ;;  %v546_v18 = vrot.slane %v4873_v37, 2  ;;  %v674_v33 = vrot.slane %v4871_v47, 3 }
  0x7a   : > { %v675_v38 = vrot.slane %v4873_v37, 3  ;;  %v7137_v56 = vpack.i.bf16 %v4695_v1, %v4701_v49  ;;  %v444_v58 = vrot.slane %v4875_v43, 1  ;;  %v4931_v49 = vsel %vm592_vm2, %v544_v48, %v545_v27 }
  0x7b   : > { %v4913_v10 = vsel %vm463_vm0, %v414_v54, %v415_v32  ;;  %v4917_v52 = vsel %vm463_vm0, %v413_v29, %v414_v54  ;;  %v4927_v1 = vsel %vm592_vm2, %v545_v27, %v546_v18  ;;  %v3345_v29 = vld [vmem:[%s4206_s14 + $0x50] sm:$0xff]   ;;  %v7138_v48 = vpack.i.bf16 %v4715_v30, %v4719_v57 }
  0x7c   : > { %3616 = vrot.lane.b32.xlu0 %v7136_v53, %s4076_s26  ;;  %v445_v53 = vrot.slane %v4887_v59, 1  ;;  %v4936_v54 = vsel %vm721_vm1, %v674_v33, %v675_v38  ;;  %v4948_v37 = vsel %vm463_vm0, %v443_v3, %v444_v58  ;;  %v576_v45 = vrot.slane %v4887_v59, 2 }
  0x7d   : > { %3621 = vrot.lane.b32.xlu1 %v7137_v56, %s4075_s18  ;;  %v4940_v56 = vsel %vm721_vm1, %v673_v31, %v674_v33  ;;  %v575_v31 = vrot.slane %v4875_v43, 2  ;;  %v7139_v3 = vpack.i.bf16 %v4733_v26, %v4739_v22  ;;  %v705_v30 = vrot.slane %v4887_v59, 3 }
  0x7e   : > { %v4944_v47 = vsel %vm463_vm0, %v444_v58, %v445_v53  ;;  %v704_v58 = vrot.slane %v4875_v43, 3  ;;  %v4967_v57 = vunpack.c.h.bf16 %v3344_v42  ;;  %v4975_v40 = vunpack.c.h.bf16 %v3359_v36 }
  0x7f   : > { %v4977_v34 = vunpack.c.l.bf16 %v3360_v46  ;;  %v4981_v26 = vsel %vm592_vm2, %v575_v31, %v576_v45  ;;  %v4985_v22 = vsel %vm592_vm2, %v574_v0, %v575_v31  ;;  %v7144_v36 = vpack.i.bf16 %v4744_v17, %v4750_v20 }
  0x80   : > { %3626 = vrot.lane.b32.xlu0 %v7138_v48, %s4074_s17  ;;  %7140 = vst [vmem:[#allocation39_spill] sm:$0xff] %v4967_v57  ;;  %v4969_v48 = vunpack.c.l.bf16 %v3345_v29  ;;  %7142 = vst [vmem:[#allocation41_spill] sm:$0xff] %v4975_v40  ;;  %v4989_v42 = vsel %vm721_vm1, %v704_v58, %v705_v30  ;;  %v4998_v27 = vsel %vm721_vm1, %v703_v21, %v704_v58  ;;  %v547_v0 = vrot.slane %v4967_v57, 2 }
  0x81   : > { %3631 = vrot.lane.b32.xlu1 %v7139_v3, %s4076_s26  ;;  %7143 = vst [vmem:[#allocation42_spill] sm:$0xff] %v4977_v34  ;;  %v416_v3 = vrot.slane %v4967_v57, 1  ;;  %v7145_v59 = vpack.i.bf16 %v4754_v62, %v4758_v50  ;;  %v676_v20 = vrot.slane %v4967_v57, 3  ;;  %v446_v58 = vrot.slane %v4975_v40, 1  ;;  %v3346_v57 = vld [vmem:[%s4206_s14 + $0x58] sm:$0xff]  }
  0x82   : > { %7141 = vst [vmem:[#allocation40_spill] sm:$0xff] %v4969_v48  ;;  %v417_v33 = vrot.slane %v4969_v48, 1  ;;  %v548_v31 = vrot.slane %v4969_v48, 2  ;;  %v677_v21 = vrot.slane %v4969_v48, 3  ;;  %v5024_v50 = vsel %vm592_vm2, %v546_v18, %v547_v0 }
  0x83   : > { %v5009_v17 = vsel %vm463_vm0, %v415_v32, %v416_v3  ;;  %v447_v62 = vrot.slane %v4977_v34, 1  ;;  %v5037_v48 = vsel %vm721_vm1, %v675_v38, %v676_v20  ;;  %v7146_v18 = vpack.i.bf16 %v4785_v44, %v4789_v35 }
  0x84   : > { %3636 = vrot.lane.b32.xlu0 %v7144_v36, %s4075_s18  ;;  %v5016_v36 = vsel %vm463_vm0, %v416_v3, %v417_v33  ;;  %v5020_v43 = vsel %vm592_vm2, %v547_v0, %v548_v31  ;;  %v5033_v3 = vsel %vm721_vm1, %v676_v20, %v677_v21  ;;  %v5052_v32 = vsel %vm463_vm0, %v445_v53, %v446_v58  ;;  %v5056_v20 = vld [vmem:[%s4206_s14 + $0xd0] sm:$0xff]  }
  0x85   : > { %3641 = vrot.lane.b32.xlu1 %v7145_v59, %s4074_s17  ;;  %v5048_v59 = vsel %vm463_vm0, %v446_v58, %v447_v62  ;;  %v577_v38 = vrot.slane %v4975_v40, 2  ;;  %v7147_v44 = vpack.i.bf16 %v4793_v25, %v4798_v24  ;;  %v706_v0 = vrot.slane %v4975_v40, 3 }
  0x86   : > { %v707_v14 = vrot.slane %v4977_v34, 3  ;;  %v5069_v58 = vunpack.c.h.bf16 %v3345_v29  ;;  %v5071_v13 = vunpack.c.l.bf16 %v3346_v57  ;;  %v5073_v61 = vunpack.c.h.bf16 %v3360_v46 }
  0x87   : > { %v5086_v35 = vunpack.c.l.bf16 %v5056_v20  ;;  %v7152_v46 = vpack.i.bf16 %v4820_v16, %v4809_v28  ;;  %v5099_v25 = vsel %vm721_vm1, %v705_v30, %v706_v0  ;;  %v7154_v53 = vpack.i.bf16 %v4824_v19, %v4828_v5 }
  0x88   : > { %3646 = vrot.lane.b32.xlu0 %v7146_v18, %s4076_s26  ;;  %v578_v18 = vrot.slane %v4977_v34, 2  ;;  %7148 = vst [vmem:[#allocation43_spill] sm:$0xff] %v5069_v58  ;;  %7149 = vst [vmem:[#allocation44_spill] sm:$0xff] %v5071_v13  ;;  %v5095_v29 = vsel %vm721_vm1, %v706_v0, %v707_v14  ;;  %v549_v28 = vrot.slane %v5069_v58, 2  ;;  %v550_v16 = vrot.slane %v5071_v13, 2 }
  0x89   : > { %3651 = vrot.lane.b32.xlu1 %v7147_v44, %s4075_s18  ;;  %7150 = vst [vmem:[#allocation45_spill] sm:$0xff] %v5073_v61  ;;  %v5083_v44 = vsel %vm592_vm2, %v576_v45, %v577_v38  ;;  %7151 = vst [vmem:[#allocation46_spill] sm:$0xff] %v5086_v35  ;;  %v418_v45 = vrot.slane %v5069_v58, 1  ;;  %v679_v34 = vrot.slane %v5071_v13, 3  ;;  %v448_v40 = vrot.slane %v5073_v61, 1 }
  0x8a   : > { %v5079_v24 = vsel %vm592_vm2, %v577_v38, %v578_v18  ;;  %7153 = vst [vmem:[#allocation47_spill] sm:$0xff] %v5099_v25  ;;  %v419_v38 = vrot.slane %v5071_v13, 1  ;;  %v7024_v19 = vrot.slane %v5086_v35, 1  ;;  %v5127_v13 = vsel %vm592_vm2, %v549_v28, %v550_v16 }
  0x8b   : > { %v5117_v0 = vsel %vm463_vm0, %v417_v33, %v418_v45  ;;  %v3347_v33 = vld [vmem:[%s4206_s14 + $0x60] sm:$0xff]  }
  0x8c   : > { %3656 = vrot.lane.b32.xlu0 %v7152_v46, %s4074_s17  ;;  %v678_v46 = vrot.slane %v5069_v58, 3  ;;  %v5113_v30 = vsel %vm463_vm0, %v418_v45, %v419_v38  ;;  %v5131_v58 = vsel %vm592_vm2, %v548_v31, %v549_v28  ;;  %v7155_v45 = vpack.i.bf16 %v4837_v39, %v4841_v41 }
  0x8d   : > { %3661 = vrot.lane.b32.xlu1 %v7154_v53, %s4076_s26  ;;  %v5150_v31 = vsel %vm463_vm0, %v448_v40, %v7024_v19  ;;  %v5154_v28 = vsel %vm463_vm0, %v447_v62, %v448_v40  ;;  %v7158_v39 = vpack.i.bf16 %v4848_v23, %v4852_v4  ;;  %v708_v19 = vrot.slane %v5073_v61, 3 }
  0x8e   : > { %v5140_v5 = vsel %vm721_vm1, %v678_v46, %v679_v34  ;;  %v5144_v53 = vsel %vm721_vm1, %v677_v21, %v678_v46  ;;  %7156 = vst [vmem:[#allocation48_spill] sm:$0xff] %v5150_v31  ;;  %7157 = vst [vmem:[#allocation49_spill] sm:$0xff] %v5154_v28  ;;  %v579_v46 = vrot.slane %v5073_v61, 2  ;;  %v709_v40 = vrot.slane %v5086_v35, 3 }
  0x8f   : > { %v5168_v62 = vunpack.c.h.bf16 %v3346_v57  ;;  %v5170_v25 = vunpack.c.l.bf16 %v3347_v33  ;;  %v787_v21 = vrot.slane %v4216_v7, 4  ;;  %v7161_v41 = vpack.i.bf16 %v4881_v63, %v4885_v55 }
  0x90   : > { %3666 = vrot.lane.b32.xlu0 %v7155_v45, %s4075_s18  ;;  %v580_v45 = vrot.slane %v5086_v35, 2  ;;  %v5188_v4 = vsel %vm592_vm2, %v578_v18, %v579_v46  ;;  %v5192_v23 = vsel %vm721_vm1, %v708_v19, %v709_v40  ;;  %v7162_v63 = vpack.i.bf16 %v4891_v51, %v4895_v11  ;;  %v3362_v11 = vld [vmem:[%s4206_s14 + $0xd8] sm:$0xff]  }
  0x91   : > { %3671 = vrot.lane.b32.xlu1 %v7158_v39, %s4074_s17  ;;  %7159 = vst [vmem:[#allocation50_spill] sm:$0xff] %v5168_v62  ;;  %7160 = vst [vmem:[#allocation51_spill] sm:$0xff] %v5170_v25  ;;  %v420_v39 = vrot.slane %v5168_v62, 1  ;;  %v5201_v55 = vsel %vm721_vm1, %v707_v14, %v708_v19  ;;  %v551_v18 = vrot.slane %v5168_v62, 2  ;;  %v788_v7 = vrot.slane %v4218_v8, 4 }
  0x92   : > { %v5184_v57 = vsel %vm592_vm2, %v579_v46, %v580_v45  ;;  %v552_v46 = vrot.slane %v5170_v25, 2  ;;  %v7163_v28 = vrot.slane %v4214_v6, 4  ;;  %v680_v14 = vrot.slane %v5168_v62, 3  ;;  %v5231_v6 = vld [vmem:[%s4206_s14 + $0x68] sm:$0xff]  }
  0x93   : > { %v5208_v61 = vsel %vm463_vm0, %v419_v38, %v420_v39  ;;  %v5227_v38 = vsel %vm592_vm2, %v550_v16, %v551_v18  ;;  %v681_v8 = vrot.slane %v5170_v25, 3  ;;  %v912_v16 = vsel %vm850_vm3, %v787_v21, %v788_v7 }
  0x94   : > { %3676 = vrot.lane.b32.xlu0 %v7161_v41, %s4076_s26  ;;  %v421_v41 = vrot.slane %v5170_v25, 1  ;;  %v913_v51 = vsel %vm850_vm3, %v7163_v28, %v787_v21  ;;  %v7164_v28 = vpack.i.bf16 %v4913_v10, %v4917_v52  ;;  %v5262_v21 = vsel %vm721_vm1, %v679_v34, %v680_v14 }
  0x95   : > { %3681 = vrot.lane.b32.xlu1 %v7162_v63, %s4075_s18  ;;  %v5223_v63 = vsel %vm592_vm2, %v551_v18, %v552_v46  ;;  %v7165_v18 = vpack.i.bf16 %v4927_v1, %v4931_v49  ;;  %v1879_v52 = vpack.c.bf16 %v912_v16, %v913_v51  ;;  %v5258_v31 = vsel %vm721_vm1, %v680_v14, %v681_v8 }
  0x96   : > { %v5219_v19 = vsel %vm463_vm0, %v420_v39, %v421_v41  ;;  %v5254_v39 = vunpack.c.l.bf16 %v3362_v11  ;;  %v5264_v62 = vunpack.c.h.bf16 %v3347_v33  ;;  %v5267_v1 = vunpack.c.l.bf16 %v5231_v6 }
  0x97   : > { %3160 = vmatprep.mubr.msk.bf16.mxu0 %vm1683_vm4, %v1879_v52  ;;  %v7170_v34 = vpack.i.bf16 %v4936_v54, %v4940_v56  ;;  %v7171_v10 = vpack.i.bf16 %v4944_v47, %v4948_v37  ;;  %v7172_v54 = vrot.slane %v5086_v35, 1  ;;  %v789_v47 = vrot.slane %v4220_v9, 4 }
  0x98   : > { %3686 = vrot.lane.b32.xlu0 %v7164_v28, %s4074_s17  ;;  %v5252_v28 = vunpack.c.h.bf16 %v5056_v20  ;;  %7167 = vst [vmem:[#allocation53_spill] sm:$0xff] %v5254_v39  ;;  %7168 = vst [vmem:[#allocation54_spill] sm:$0xff] %v5264_v62  ;;  %v451_v20 = vrot.slane %v5254_v39, 1  ;;  %v582_v16 = vrot.slane %v5254_v39, 2  ;;  %v7038_v14 = vrot.slane %v5254_v39, 3 }
  0x99   : > { %3691 = vrot.lane.b32.xlu1 %v7165_v18, %s4076_s26  ;;  %7169 = vst [vmem:[#allocation55_spill] sm:$0xff] %v5267_v1  ;;  %v422_v18 = vrot.slane %v5264_v62, 1  ;;  %v5347_v35 = vsel %vm850_vm3, %v788_v7, %v789_v47 }
  0x9a   : > { %7166 = vst [vmem:[#allocation52_spill] sm:$0xff] %v5252_v28  ;;  %v450_v49 = vrot.slane %v5252_v28, 1  ;;  %v581_v51 = vrot.slane %v5252_v28, 2  ;;  %v710_v33 = vrot.slane %v5252_v28, 3  ;;  %v7044_v28 = vrot.slane %v5267_v1, 2 }
  0x9c   : > { %3696 = vrot.lane.b32.xlu0 %v7170_v34, %s4075_s18  ;;  %v5288_v25 = vsel %vm463_vm0, %v450_v49, %v451_v20  ;;  %v5294_v56 = vsel %vm463_vm0, %v7172_v54, %v450_v49  ;;  %v5298_v34 = vsel %vm592_vm2, %v581_v51, %v582_v16  ;;  %v5302_v52 = vsel %vm592_vm2, %v580_v45, %v581_v51 }
  0x9d   : > { %3701 = vrot.lane.b32.xlu1 %v7171_v10, %s4074_s17  ;;  %v5312_v10 = vsel %vm721_vm1, %v710_v33, %v7038_v14  ;;  %v5316_v49 = vsel %vm721_vm1, %v709_v40, %v710_v33  ;;  %v7173_v54 = vrot.slane %v5267_v1, 1  ;;  %v3363_v14 = vld [vmem:[%s4206_s14 + $0xe0] sm:$0xff]   ;;  %v7174_v40 = vpack.i.bf16 %v4981_v26, %v4985_v22 }
  0x9e   : > { %v5336_v33 = vsel %vm463_vm0, %v421_v41, %v422_v18  ;;  %v790_v51 = vrot.slane %v4226_v12, 4  ;;  %v553_v45 = vrot.slane %v5264_v62, 2  ;;  %v682_v26 = vrot.slane %v5264_v62, 3 }
  0x9f   : > { %v5326_v37 = vsel %vm463_vm0, %v422_v18, %v7173_v54  ;;  %v7175_v54 = vpack.i.bf16 %v4989_v42, %v4998_v27  ;;  %v7043_v22 = vrot.slane %v5267_v1, 3  ;;  %v5351_v41 = vunpack.c.h.bf16 %v3362_v11 }
  0xa0   : > { %3706 = vrot.lane.b32.xlu0 %v7174_v40, %s4076_s26  ;;  %v5355_v18 = vsel %vm850_vm3, %v789_v47, %v790_v51  ;;  %v5361_v27 = vsel %vm592_vm2, %v553_v45, %v7044_v28  ;;  %v5365_v7 = vsel %vm592_vm2, %v552_v46, %v553_v45  ;;  %v5367_v42 = vunpack.c.l.bf16 %v3363_v14 }
  0xa1   : > { %3711 = vrot.lane.b32.xlu1 %v7175_v54, %s4075_s18  ;;  %7176 = vst [vmem:[#allocation56_spill] sm:$0xff] %v5351_v41  ;;  %7177 = vst [vmem:[#allocation57_spill] sm:$0xff] %v5365_v7  ;;  %v5379_v54 = vsel %vm721_vm1, %v682_v26, %v7043_v22  ;;  %v7179_v46 = vpack.i.bf16 %v5016_v36, %v5009_v17  ;;  %v5387_v45 = vsel %vm721_vm1, %v681_v8, %v682_v26  ;;  %v7182_v17 = vld [vmem:[#allocation14_spill] sm:$0xff] }
  0xa2   : > { %7178 = vst [vmem:[#allocation58_spill] sm:$0xff] %v5367_v42  ;;  %7180 = vst [vmem:[#allocation59_spill] sm:$0xff] %v5387_v45  ;;  %v452_v11 = vrot.slane %v5351_v41, 1  ;;  %v7048_v47 = vrot.slane %v5367_v42, 1  ;;  %v7181_v22 = vpack.i.bf16 %v5020_v43, %v5024_v50  ;;  %v821_v28 = vrot.slane %v4305_v60, 4  ;;  %v7183_v43 = vld [vmem:[#allocation11_spill] sm:$0xff] }
  0xa3   : > { %v791_v50 = vrot.slane %v7183_v43, 4  ;;  %v7185_v8 = vrot.slane %v7182_v17, 4  ;;  %v7189_v36 = vpack.i.bf16 %v5033_v3, %v5037_v48  ;;  %v712_v3 = vrot.slane %v5351_v41, 3 }
  0xa4   : > { %3716 = vrot.lane.b32.xlu0 %v7179_v46, %s4074_s17  ;;  %v583_v46 = vrot.slane %v5351_v41, 2  ;;  %v5404_v26 = vsel %vm463_vm0, %v452_v11, %v7048_v47  ;;  %v5408_v40 = vsel %vm463_vm0, %v451_v20, %v452_v11  ;;  %v7186_v47 = vrot.slane %v4233_v15, 4 }
  0xa5   : > { %3721 = vrot.lane.b32.xlu1 %v7181_v22, %s4076_s26  ;;  %v7184_v22 = vld [vmem:[#allocation12_spill] sm:$0xff]  ;;  %v878_v60 = vsel %vm850_vm3, %v821_v28, %v7185_v8  ;;  %v7187_v20 = vrot.slane %v5367_v42, 2  ;;  %v7197_v41 = vpack.i.bf16 %v5079_v24, %v5083_v44 }
  0xa6   : > { %v792_v62 = vrot.slane %v7184_v22, 4  ;;  %v879_v7 = vsel %vm850_vm3, %v7186_v47, %v821_v28  ;;  %v5429_v22 = vld [vmem:[%s4206_s14 + $0x70] sm:$0xff]   ;;  %v5437_v8 = vsel %vm592_vm2, %v582_v16, %v583_v46  ;;  %v5445_v47 = vsel %vm850_vm3, %v790_v51, %v791_v50 }
  0xa7   : > { %v5426_v11 = vsel %vm592_vm2, %v583_v46, %v7187_v20  ;;  %v1913_v45 = vpack.c.bf16 %v878_v60, %v879_v7  ;;  %7190 = vst [vmem:[#allocation60_spill] sm:$0xff] %v5437_v8  ;;  %v7191_v20 = vpack.i.bf16 %v5048_v59, %v5052_v32  ;;  %v713_v16 = vrot.slane %v5367_v42, 3  ;;  %v5458_v7 = vld [vmem:[%s4206_s14 + $0xe8] sm:$0xff]   ;;  %v7193_v59 = vld [vmem:[#allocation15_spill] sm:$0xff]  ;;  %v7194_v46 = vld [vmem:[#allocation16_spill] sm:$0xff] }
  0xa8   : > { %7188 = vst [vmem:[#allocation11_spill] sm:$0xff] %v5426_v11  ;;  %3726 = vrot.lane.b32.xlu0 %v7189_v36, %s4075_s18  ;;  %v5441_v28 = vsel %vm850_vm3, %v791_v50, %v792_v62  ;;  %v5462_v51 = vunpack.c.h.bf16 %v5231_v6  ;;  %v5465_v32 = vunpack.c.l.bf16 %v5429_v22  ;;  %v793_v36 = vrot.slane %v7193_v59, 4 }
  0xa9   : > { %3731 = vrot.lane.b32.xlu1 %v7191_v20, %s4074_s17  ;;  %3177 = vmatprep.mubr.msk.bf16.mxu1 %vm1683_vm4, %v1913_v45  ;;  %v5473_v48 = vsel %vm721_vm1, %v712_v3, %v713_v16  ;;  %v7195_v60 = vrot.slane %v5254_v39, 3  ;;  %v5481_v45 = vunpack.c.h.bf16 %v3363_v14  ;;  %v5491_v8 = vunpack.c.l.bf16 %v5458_v7 }
  0xaa   : > { %7192 = vst [vmem:[#allocation61_spill] sm:$0xff] %v5462_v51  ;;  %v424_v50 = vrot.slane %v5462_v51, 1  ;;  %v7057_v20 = vrot.slane %v5465_v32, 1  ;;  %v555_v59 = vrot.slane %v5462_v51, 2  ;;  %v7060_v24 = vrot.slane %v5465_v32, 2 }
  0xab   : > { %v5479_v6 = vsel %vm721_vm1, %v7195_v60, %v712_v3  ;;  %7196 = vst [vmem:[#allocation16_spill] sm:$0xff] %v5481_v45  ;;  %v7198_v60 = vld [vmem:[#allocation47_spill] sm:$0xff]  ;;  %v684_v44 = vrot.slane %v5462_v51, 3  ;;  %v7200_v11 = vrot.slane %v5267_v1, 1  ;;  %v7203_v14 = vrot.slane %v7194_v46, 4 }
  0xac   : > { %3736 = vrot.lane.b32.xlu0 %v7197_v41, %s4076_s26  ;;  %v7199_v3 = vpack.i.bf16 %v5095_v29, %v7198_v60  ;;  %v5506_v39 = vsel %vm463_vm0, %v424_v50, %v7057_v20  ;;  %v7201_v60 = vrot.slane %v5267_v1, 2  ;;  %v5530_v20 = vsel %vm592_vm2, %v555_v59, %v7060_v24 }
  0xad   : > { %v5512_v29 = vsel %vm463_vm0, %v7200_v11, %v424_v50  ;;  %v5524_v41 = vsel %vm850_vm3, %v793_v36, %v7203_v14  ;;  %v7204_v11 = vrot.slane %v5465_v32, 3  ;;  %v5546_v14 = vsel %vm850_vm3, %v792_v62, %v793_v36 }
  0xae   : > { %3741 = vrot.lane.b32.xlu1 %v7199_v3, %s4075_s18  ;;  %v5518_v3 = vsel %vm592_vm2, %v7201_v60, %v555_v59  ;;  %v7206_v60 = vrot.slane %v5267_v1, 3  ;;  %v7208_v59 = vpack.i.bf16 %v5113_v30, %v5117_v0  ;;  %v7209_v62 = vpack.i.bf16 %v5127_v13, %v5131_v58  ;;  %v7213_v1 = vld [vmem:[#allocation18_spill] sm:$0xff] }
  0xaf   : > { %7202 = vst [vmem:[#allocation47_spill] sm:$0xff] %v5518_v3  ;;  %v5536_v50 = vsel %vm721_vm1, %v684_v44, %v7204_v11  ;;  %v7067_v30 = vrot.slane %v5491_v8, 1  ;;  %v585_v0 = vrot.slane %v5481_v45, 2  ;;  %v7211_v24 = vrot.slane %v5367_v42, 1 }
  0xb0   : > { %7205 = vst [vmem:[#allocation62_spill] sm:$0xff] %v5536_v50  ;;  %v5542_v51 = vsel %vm721_vm1, %v7206_v60, %v684_v44  ;;  %3746 = vrot.lane.b32.xlu0 %v7208_v59, %s4074_s17  ;;  %v454_v60 = vrot.slane %v5481_v45, 1  ;;  %v7210_v59 = vld [vmem:[#allocation17_spill] sm:$0xff]  ;;  %v714_v13 = vrot.slane %v5481_v45, 3  ;;  %v7215_v50 = vrot.slane %v5491_v8, 2 }
  0xb1   : > { %7207 = vst [vmem:[#allocation63_spill] sm:$0xff] %v5542_v51  ;;  %v823_v11 = vrot.slane %v7210_v59, 4  ;;  %v7217_v51 = vrot.slane %v5367_v42, 2  ;;  %v7219_v45 = vrot.slane %v7182_v17, 4 }
  0xb2   : > { %3751 = vrot.lane.b32.xlu1 %v7209_v62, %s4076_s26  ;;  %v5571_v44 = vsel %vm463_vm0, %v7211_v24, %v454_v60  ;;  %v5577_v62 = vld [vmem:[%s4206_s14 + $0x78] sm:$0xff]   ;;  %v5583_v36 = vsel %vm463_vm0, %v454_v60, %v7067_v30  ;;  %v5589_v24 = vsel %vm592_vm2, %v585_v0, %v7215_v50  ;;  %v7220_v60 = vpack.i.bf16 %v5140_v5, %v5144_v53  ;;  %v7224_v5 = vld [vmem:[#allocation48_spill] sm:$0xff]  ;;  %v7225_v53 = vld [vmem:[#allocation49_spill] sm:$0xff] }
  0xb3   : > { %7212 = vst [vmem:[#allocation64_spill] sm:$0xff] %v5571_v44  ;;  %7214 = vst [vmem:[#allocation18_spill] sm:$0xff] %v5583_v36  ;;  %v5595_v58 = vsel %vm592_vm2, %v7217_v51, %v585_v0  ;;  %v5601_v59 = vsel %vm850_vm3, %v7219_v45, %v823_v11  ;;  %v7221_v51 = vrot.slane %v7213_v1, 4  ;;  %v7222_v45 = vrot.slane %v5491_v8, 3  ;;  %v7230_v30 = vld [vmem:[#allocation20_spill] sm:$0xff] }
  0xb4   : > { %7216 = vst [vmem:[#allocation65_spill] sm:$0xff] %v5589_v24  ;;  %7218 = vst [vmem:[#allocation66_spill] sm:$0xff] %v5595_v58  ;;  %3756 = vrot.lane.b32.xlu0 %v7220_v60, %s4075_s18  ;;  %v7226_v60 = vpack.i.bf16 %v7224_v5, %v7225_v53  ;;  %v5631_v50 = vsel %vm721_vm1, %v713_v16, %v714_v13  ;;  %v7229_v53 = vld [vmem:[#allocation19_spill] sm:$0xff]  ;;  %v7231_v44 = vpack.i.bf16 %v5184_v57, %v5188_v4 }
  0xb5   : > { %v5615_v0 = vsel %vm850_vm3, %v823_v11, %v7221_v51  ;;  %v5621_v42 = vsel %vm721_vm1, %v714_v13, %v7222_v45  ;;  %7227 = vst [vmem:[#allocation48_spill] sm:$0xff] %v5631_v50  ;;  %v5634_v11 = vunpack.c.h.bf16 %v5429_v22  ;;  %v5637_v51 = vunpack.c.l.bf16 %v5577_v62 }
  0xb6   : > { %7223 = vst [vmem:[#allocation67_spill] sm:$0xff] %v5621_v42  ;;  %3761 = vrot.lane.b32.xlu1 %v7226_v60, %s4074_s17  ;;  %v3477_v45 = vpop.permute.xlu0 %3476  ;;  %v795_v60 = vrot.slane %v7229_v53, 4  ;;  %v5654_v58 = vunpack.c.h.bf16 %v5458_v7  ;;  %v7233_v36 = vpack.i.bf16 %v5192_v23, %v5201_v55  ;;  %v7236_v57 = vrot.slane %v5465_v32, 1 }
  0xb7   : > { %7228 = vst [vmem:[#allocation49_spill] sm:$0xff] %v5634_v11  ;;  %v3479_v24 = vunpack.i.h.bf16 %v3477_v45  ;;  %v3478_v16 = vunpack.i.l.bf16 %v3477_v45  ;;  %v3487_v13 = vpop.permute.xlu1 %3486  ;;  %v426_v22 = vrot.slane %v5634_v11, 1  ;;  %v557_v5 = vrot.slane %v5634_v11, 2  ;;  %v7232_v45 = vld [vmem:[#allocation9_spill] sm:$0xff] }
  0xb8   : > { %v3489_v17 = vunpack.i.h.bf16 %v3487_v13  ;;  %3766 = vrot.lane.b32.xlu0 %v7231_v44, %s4076_s26  ;;  %v7078_v50 = vrot.slane %v5637_v51, 2  ;;  %v3488_v53 = vunpack.i.l.bf16 %v3487_v13  ;;  %v7234_v3 = vrot.slane %v5637_v51, 1  ;;  %v7238_v44 = vld [vmem:[#allocation8_spill] sm:$0xff] }
  0xb9   : > { %v1685_v42 = vsel %vm1683_vm4, %v7232_v45, %v3479_v24  ;;  %v5672_v7 = vsel %vm463_vm0, %v7236_v57, %v426_v22  ;;  %v1684_v24 = vsel %vm1683_vm4, %v7238_v44, %v3478_v16  ;;  %v7242_v44 = vrot.slane %v7230_v30, 4 }
  0xba   : > { %3771 = vrot.lane.b32.xlu1 %v7233_v36, %s4075_s18  ;;  %v5666_v4 = vsel %vm463_vm0, %v426_v22, %v7234_v3  ;;  %7237 = vst [vmem:[#allocation9_spill] sm:$0xff] %v5672_v7  ;;  %v3482_v13 = vpop.permute.xlu0 %3481  ;;  %v5682_v55 = vsel %vm592_vm2, %v557_v5, %v7078_v50  ;;  %v7240_v3 = vrot.slane %v5465_v32, 2  ;;  %v5691_v22 = vld [vmem:[%s4206_s14 + $0xf0] sm:$0xff]   ;;  %v686_v23 = vrot.slane %v5634_v11, 3 }
  0xbb   : > { %7235 = vst [vmem:[#allocation20_spill] sm:$0xff] %v5666_v4  ;;  %7239 = vst [vmem:[#allocation68_spill] sm:$0xff] %v5682_v55  ;;  %v3484_v45 = vunpack.i.h.bf16 %v3482_v13  ;;  %v3483_v16 = vunpack.i.l.bf16 %v3482_v13  ;;  %v3492_v57 = vpop.permute.xlu1 %3491  ;;  %v5699_v50 = vsel %vm850_vm3, %v795_v60, %v7242_v44 }
  0xbc   : > { %v5688_v36 = vsel %vm592_vm2, %v7240_v3, %v557_v5  ;;  %v3494_v7 = vunpack.i.h.bf16 %v3492_v57  ;;  %v3493_v4 = vunpack.i.l.bf16 %v3492_v57  ;;  %v7243_v5 = vpack.i.bf16 %v5219_v19, %v5208_v61 }
  0xbd   : > { %7241 = vst [vmem:[#allocation69_spill] sm:$0xff] %v5688_v36  ;;  %v7244_v3 = vrot.slane %v7194_v46, 4  ;;  %v1749_v36 = vsel %vm1748_vm5, %v1684_v24, %v3483_v16  ;;  %v1750_v44 = vsel %vm1748_vm5, %v1685_v42, %v3484_v45  ;;  %v7245_v57 = vpack.i.bf16 %v5223_v63, %v5227_v38 }
  0xbe   : > { %3776 = vrot.lane.b32.xlu0 %v7243_v5, %s4074_s17  ;;  %v687_v61 = vrot.slane %v5637_v51, 3  ;;  %v5720_v19 = vunpack.c.l.bf16 %v5691_v22  ;;  %v7246_v5 = vld [vmem:[#allocation10_spill] sm:$0xff]  ;;  %v3497_v11 = vpop.permute.xlu0 %3496  ;;  %v1814_v24 = vsel %vm1813_vm6, %v1749_v36, %v3488_v53  ;;  %v1815_v42 = vsel %vm1813_vm6, %v1750_v44, %v3489_v17 }
  0xbf   : > { %v5709_v13 = vsel %vm850_vm3, %v7244_v3, %v795_v60  ;;  %3781 = vrot.lane.b32.xlu1 %v7245_v57, %s4076_s26  ;;  %v1687_v60 = vsel %vm1683_vm4, %v4220_v9, %v3494_v7  ;;  %v1686_v3 = vsel %vm1683_vm4, %v7246_v5, %v3493_v4  ;;  %v3499_v45 = vunpack.i.h.bf16 %v3497_v11  ;;  %v3502_v63 = vpop.permute.xlu1 %3501 }
  0xc0   : > { %v3498_v16 = vunpack.i.l.bf16 %v3497_v11  ;;  %v1878_v38 = vpack.c.bf16 %v1815_v42, %v1814_v24  ;;  %v5732_v57 = vsel %vm721_vm1, %v686_v23, %v687_v61  ;;  %v3504_v55 = vunpack.i.h.bf16 %v3502_v63 }
  0xc1   : > { %v3503_v9 = vunpack.i.l.bf16 %v3502_v63  ;;  %v7247_v4 = vpack.i.bf16 %v5258_v31, %v5262_v21  ;;  %v7248_v53 = vrot.slane %v5465_v32, 3  ;;  %v456_v11 = vrot.slane %v5654_v58, 1 }
  0xc2   : > { %v1752_v7 = vsel %vm1748_vm5, %v1687_v60, %v3499_v45  ;;  %v1751_v36 = vsel %vm1748_vm5, %v1686_v3, %v3498_v16  ;;  %v7249_v44 = vpack.i.bf16 %v5288_v25, %v5294_v56  ;;  %2215 = vmatmul.mubr.bf16.vlgmr.msra.gmra.mrb[0].mxu0 %v1878_v38  ;;  %v1887_v31 = vpack.c.bf16 %v5699_v50, %v5709_v13  ;;  %v3507_v5 = vpop.permute.xlu0 %3506  ;;  %v7291_v50 = vld [vmem:[#allocation65_spill] sm:$0xff]  ;;  %v7292_v13 = vld [vmem:[#allocation66_spill] sm:$0xff] }
  0xc3   : > { %3786 = vrot.lane.b32.xlu0 %v7247_v4, %s4075_s18  ;;  %v5742_v17 = vsel %vm721_vm1, %v7248_v53, %v686_v23  ;;  %v457_v21 = vrot.slane %v5720_v19, 1  ;;  %v7250_v23 = vpack.c.bf16 %v5355_v18, %v5347_v35  ;;  %v1816_v60 = vsel %vm1813_vm6, %v1751_v36, %v3503_v9  ;;  %v3512_v16 = vpop.permute.xlu1 %3511 }
  0xc4   : > { %3791 = vrot.lane.b32.xlu1 %v7249_v44, %s4074_s17  ;;  %v1817_v3 = vsel %vm1813_vm6, %v1752_v7, %v3504_v55  ;;  %v7251_v24 = vrot.slane %v5491_v8, 1  ;;  %v587_v56 = vrot.slane %v5654_v58, 2  ;;  %v3509_v42 = vunpack.i.h.bf16 %v3507_v5  ;;  %v7254_v44 = vld [vmem:[#allocation21_spill] sm:$0xff] }
  0xc5   : > { %3161 = vmatprep.mubr.msk.bf16.mxu0 %vm1683_vm4, %v7250_v23  ;;  %v3508_v45 = vunpack.i.l.bf16 %v3507_v5  ;;  %v5773_v18 = vsel %vm463_vm0, %v456_v11, %v457_v21  ;;  %v3514_v55 = vunpack.i.h.bf16 %v3512_v16  ;;  %v3513_v63 = vunpack.i.l.bf16 %v3512_v16 }
  0xc6   : > { %v5764_v25 = vsel %vm463_vm0, %v7251_v24, %v456_v11  ;;  %v7252_v38 = vpack.i.bf16 %v5298_v34, %v5302_v52  ;;  %v1880_v9 = vpack.c.bf16 %v1817_v3, %v1816_v60  ;;  %v588_v4 = vrot.slane %v5720_v19, 2  ;;  %v3517_v5 = vpop.permute.xlu0 %3516 }
  0xc7   : > { %v1689_v53 = vsel %vm1683_vm4, %v7183_v43, %v3509_v42  ;;  %v1688_v7 = vsel %vm1683_vm4, %v4226_v12, %v3508_v45  ;;  %v7253_v11 = vpack.i.bf16 %v5312_v10, %v5316_v49  ;;  %v825_v52 = vrot.slane %v7254_v44, 4  ;;  %v7256_v49 = vld [vmem:[#allocation22_spill] sm:$0xff]  ;;  %v3522_v42 = vpop.permute.xlu1 %3521 }
  0xc8   : > { %3796 = vrot.lane.b32.xlu0 %v7252_v38, %s4076_s26  ;;  %v1753_v34 = vsel %vm1748_vm5, %v1688_v7, %v3513_v63  ;;  %v5796_v43 = vsel %vm592_vm2, %v587_v56, %v588_v4  ;;  %v7255_v12 = vrot.slane %v5491_v8, 2  ;;  %v826_v23 = vrot.slane %v7256_v49, 4  ;;  %v7259_v7 = vld [vmem:[#allocation57_spill] sm:$0xff] }
  0xc9   : > { %3801 = vrot.lane.b32.xlu1 %v7253_v11, %s4075_s18  ;;  %v1754_v60 = vsel %vm1748_vm5, %v1689_v53, %v3514_v55  ;;  %v3519_v3 = vunpack.i.h.bf16 %v3517_v5  ;;  %v3518_v24 = vunpack.i.l.bf16 %v3517_v5  ;;  %v7257_v45 = vrot.slane %v7213_v1, 4 }
  0xca   : > { %v5802_v10 = vsel %vm592_vm2, %v7255_v12, %v587_v56  ;;  %v3524_v63 = vunpack.i.h.bf16 %v3522_v42  ;;  %v3523_v38 = vunpack.i.l.bf16 %v3522_v42  ;;  %v7258_v56 = vpack.i.bf16 %v5326_v37, %v5336_v33  ;;  %2223 = vmatmul.mubr.bf16.gmra.mrb[4].mxu0 %v1880_v9  ;;  %v5833_v42 = vld [vmem:[%s4206_s14 + $0x80] sm:$0xff]  }
  0xcb   : > { %v5810_v16 = vsel %vm850_vm3, %v7257_v45, %v825_v52  ;;  %v5820_v55 = vsel %vm850_vm3, %v825_v52, %v826_v23  ;;  %v716_v53 = vrot.slane %v5654_v58, 3  ;;  %v7260_v11 = vpack.i.bf16 %v5361_v27, %v7259_v7  ;;  %v7261_v52 = vld [vmem:[#allocation13_spill] sm:$0xff]  ;;  %v3527_v27 = vpop.permute.xlu0 %3526  ;;  %v3532_v7 = vpop.permute.xlu1 %3531 }
  0xcc   : > { %3806 = vrot.lane.b32.xlu0 %v7258_v56, %s4074_s17  ;;  %v1818_v5 = vsel %vm1813_vm6, %v1753_v34, %v3518_v24  ;;  %v1819_v12 = vsel %vm1813_vm6, %v1754_v60, %v3519_v3  ;;  %v717_v33 = vrot.slane %v5720_v19, 3  ;;  %v1719_v45 = vsel %vm1683_vm4, %v7261_v52, %v3524_v63 }
  0xcd   : > { %3811 = vrot.lane.b32.xlu1 %v7260_v11, %s4076_s26  ;;  %v1718_v56 = vsel %vm1683_vm4, %v4233_v15, %v3523_v38  ;;  %v7262_v9 = vpack.c.bf16 %v5441_v28, %v5445_v47  ;;  %v1882_v34 = vpack.c.bf16 %v1819_v12, %v1818_v5  ;;  %v1917_v60 = vpack.c.bf16 %v5820_v55, %v5810_v16  ;;  %v7264_v47 = vld [vmem:[#allocation59_spill] sm:$0xff] }
  0xce   : > { %v3529_v3 = vunpack.i.h.bf16 %v3527_v27  ;;  %v3528_v24 = vunpack.i.l.bf16 %v3527_v27  ;;  %v7263_v11 = vrot.slane %v5491_v8, 3  ;;  %v5852_v38 = vunpack.c.h.bf16 %v5577_v62 }
  0xcf   : > { %3162 = vmatprep.mubr.msk.bf16.mxu0 %vm1683_vm4, %v7262_v9  ;;  %v3534_v52 = vunpack.i.h.bf16 %v3532_v7  ;;  %v3533_v28 = vunpack.i.l.bf16 %v3532_v7  ;;  %v7265_v5 = vpack.i.bf16 %v5379_v54, %v7264_v47  ;;  %v5862_v12 = vsel %vm721_vm1, %v716_v53, %v717_v33  ;;  %v3537_v47 = vpop.permute.xlu0 %3536 }
  0xd0   : > { %v5849_v63 = vsel %vm721_vm1, %v7263_v11, %v716_v53  ;;  %v5865_v27 = vunpack.c.l.bf16 %v5833_v42  ;;  %v1784_v9 = vsel %vm1748_vm5, %v1719_v45, %v3529_v3  ;;  %v1783_v62 = vsel %vm1748_vm5, %v1718_v56, %v3528_v24  ;;  %v3542_v24 = vpop.permute.xlu1 %3541 }
  0xd1   : > { %3816 = vrot.lane.b32.xlu0 %v7265_v5, %s4075_s18  ;;  %v7266_v7 = vpack.i.bf16 %v5404_v26, %v5408_v40  ;;  %v428_v54 = vrot.slane %v5852_v38, 1  ;;  %v559_v11 = vrot.slane %v5852_v38, 2  ;;  %v1848_v53 = vsel %vm1813_vm6, %v1783_v62, %v3533_v28  ;;  %v7268_v28 = vld [vmem:[#allocation11_spill] sm:$0xff]  ;;  %v7269_v62 = vld [vmem:[#allocation60_spill] sm:$0xff] }
  0xd2   : > { %v1849_v5 = vsel %vm1813_vm6, %v1784_v9, %v3534_v52  ;;  %v7087_v37 = vrot.slane %v5865_v27, 1  ;;  %v7085_v45 = vrot.slane %v5865_v27, 2  ;;  %v3539_v3 = vunpack.i.h.bf16 %v3537_v47  ;;  %2231 = vmatmul.mubr.bf16.gmra.mrb[8].mxu0 %v1882_v34 }
  0xd3   : > { %3821 = vrot.lane.b32.xlu1 %v7266_v7, %s4074_s17  ;;  %v3538_v56 = vunpack.i.l.bf16 %v3537_v47  ;;  %v1912_v36 = vpack.c.bf16 %v1849_v5, %v1848_v53  ;;  %v7267_v40 = vrot.slane %v5637_v51, 1  ;;  %v3544_v7 = vunpack.i.h.bf16 %v3542_v24  ;;  %v7271_v53 = vld [vmem:[#allocation15_spill] sm:$0xff] }
  0xd4   : > { %v3543_v35 = vunpack.i.l.bf16 %v3542_v24  ;;  %v7270_v52 = vpack.i.bf16 %v7268_v28, %v7269_v62  ;;  %v5895_v47 = vsel %vm463_vm0, %v428_v54, %v7087_v37  ;;  %v1691_v5 = vsel %vm1683_vm4, %v7271_v53, %v3539_v3  ;;  %v3547_v3 = vpop.permute.xlu0 %3546  ;;  %v7277_v53 = vld [vmem:[#allocation24_spill] sm:$0xff] }
  0xd5   : > { %v5883_v26 = vsel %vm463_vm0, %v7267_v40, %v428_v54  ;;  %v7272_v40 = vld [vmem:[#allocation12_spill] sm:$0xff]  ;;  %v7273_v28 = vpack.i.bf16 %v5473_v48, %v5479_v6  ;;  %v5909_v62 = vsel %vm592_vm2, %v559_v11, %v7085_v45  ;;  %v7274_v54 = vld [vmem:[#allocation23_spill] sm:$0xff]  ;;  %2351 = vmatmul.mubr.bf16.vlgmr.msra.gmra.mrb[0].mxu1 %v1912_v36  ;;  %v7276_v6 = vrot.slane %v5637_v51, 2  ;;  %v7284_v48 = vld [vmem:[#allocation14_spill] sm:$0xff] }
  0xd6   : > { %3826 = vrot.lane.b32.xlu0 %v7270_v52, %s4076_s26  ;;  %v1690_v24 = vsel %vm1683_vm4, %v7272_v40, %v3538_v56  ;;  %v797_v52 = vrot.slane %v7274_v54, 4  ;;  %v7275_v56 = vpack.c.bf16 %v5524_v41, %v5546_v14  ;;  %v7086_v40 = vrot.slane %v7277_v53, 4 }
  0xd7   : > { %3831 = vrot.lane.b32.xlu1 %v7273_v28, %s4075_s18  ;;  %v1755_v9 = vsel %vm1748_vm5, %v1690_v24, %v3543_v35  ;;  %v5923_v34 = vsel %vm592_vm2, %v7276_v6, %v559_v11  ;;  %v1756_v35 = vsel %vm1748_vm5, %v1691_v5, %v3544_v7  ;;  %v3549_v36 = vunpack.i.h.bf16 %v3547_v3  ;;  %v3552_v28 = vpop.permute.xlu1 %3551  ;;  %v7281_v5 = vld [vmem:[#allocation47_spill] sm:$0xff] }
  0xd8   : > { %3163 = vmatprep.mubr.msk.bf16.mxu0 %vm1683_vm4, %v7275_v56  ;;  %v3548_v24 = vunpack.i.l.bf16 %v3547_v3  ;;  %v7278_v41 = vpack.c.bf16 %v5615_v0, %v5601_v59  ;;  %v7279_v14 = vrot.slane %v7230_v30, 4  ;;  %v3554_v11 = vunpack.i.h.bf16 %v3552_v28 }
  0xd9   : > { %v3553_v6 = vunpack.i.l.bf16 %v3552_v28  ;;  %v7280_v7 = vpack.i.bf16 %v5506_v39, %v5512_v29  ;;  %v5945_v59 = vsel %vm850_vm3, %v797_v52, %v7086_v40  ;;  %v688_v0 = vrot.slane %v5852_v38, 3  ;;  %v3557_v40 = vpop.permute.xlu0 %3556  ;;  %v7289_v39 = vld [vmem:[#allocation64_spill] sm:$0xff] }
  0xda   : > { %3178 = vmatprep.mubr.msk.bf16.mxu1 %vm1683_vm4, %v7278_v41  ;;  %v5935_v56 = vsel %vm850_vm3, %v7279_v14, %v797_v52  ;;  %v7282_v3 = vpack.i.bf16 %v5530_v20, %v7281_v5  ;;  %v1820_v28 = vsel %vm1813_vm6, %v1755_v9, %v3548_v24  ;;  %v1821_v41 = vsel %vm1813_vm6, %v1756_v35, %v3549_v36  ;;  %v5958_v14 = vld [vmem:[%s4206_s14 + $0xf8] sm:$0xff]   ;;  %v7283_v52 = vld [vmem:[#allocation17_spill] sm:$0xff] }
  0xdb   : > { %3836 = vrot.lane.b32.xlu0 %v7280_v7, %s4074_s17  ;;  %v7088_v29 = vrot.slane %v5865_v27, 3  ;;  %v1721_v7 = vsel %vm1683_vm4, %v7283_v52, %v3554_v11  ;;  %v1720_v45 = vsel %vm1683_vm4, %v7284_v48, %v3553_v6  ;;  %v1884_v20 = vpack.c.bf16 %v1821_v41, %v1820_v28  ;;  %v3562_v36 = vpop.permute.xlu1 %3561  ;;  %v7285_v48 = vld [vmem:[#allocation62_spill] sm:$0xff]  ;;  %v7286_v6 = vld [vmem:[#allocation63_spill] sm:$0xff] }
  0xdc   : > { %3841 = vrot.lane.b32.xlu1 %v7282_v3, %s4076_s26  ;;  %v1889_v9 = vpack.c.bf16 %v5945_v59, %v5935_v56  ;;  %v3559_v24 = vunpack.i.h.bf16 %v3557_v40  ;;  %v3558_v35 = vunpack.i.l.bf16 %v3557_v40  ;;  %v5970_v5 = vsel %vm721_vm1, %v687_v61, %v688_v0 }
  0xdd   : > { %v5973_v3 = vunpack.c.h.bf16 %v5691_v22  ;;  %v3564_v11 = vunpack.i.h.bf16 %v3562_v36  ;;  %v3563_v52 = vunpack.i.l.bf16 %v3562_v36  ;;  %v7287_v28 = vpack.i.bf16 %v7285_v48, %v7286_v6  ;;  %v7288_v36 = vld [vmem:[#allocation18_spill] sm:$0xff]  ;;  %2239 = vmatmul.mubr.bf16.gmra.mrb[12].mxu0 %v1884_v20 }
  0xde   : > { %v5983_v40 = vsel %vm721_vm1, %v688_v0, %v7088_v29  ;;  %v5986_v41 = vunpack.c.l.bf16 %v5958_v14  ;;  %v1786_v61 = vsel %vm1748_vm5, %v1721_v7, %v3559_v24  ;;  %v1785_v22 = vsel %vm1748_vm5, %v1720_v45, %v3558_v35  ;;  %3164 = vmatprep.mubr.msk.bf16.mxu0 %vm1683_vm4, %v1887_v31 }
  0xdf   : > { %3846 = vrot.lane.b32.xlu0 %v7287_v28, %s4075_s18  ;;  %v7290_v37 = vpack.i.bf16 %v7288_v36, %v7289_v39  ;;  %v458_v48 = vrot.slane %v5973_v3, 1  ;;  %v589_v6 = vrot.slane %v5973_v3, 2  ;;  %v3567_v28 = vpop.permute.xlu0 %3566  ;;  %v1850_v0 = vsel %vm1813_vm6, %v1785_v22, %v3563_v52  ;;  %v3572_v20 = vpop.permute.xlu1 %3571  ;;  %v7294_v22 = vld [vmem:[#allocation19_spill] sm:$0xff] }
  0xe0   : > { %v1851_v29 = vsel %vm1813_vm6, %v1786_v61, %v3564_v11  ;;  %v7090_v45 = vrot.slane %v5986_v41, 1  ;;  %v7089_v39 = vrot.slane %v5986_v41, 2  ;;  %v3568_v7 = vunpack.i.l.bf16 %v3567_v28 }
  0xe1   : > { %3851 = vrot.lane.b32.xlu1 %v7290_v37, %s4074_s17  ;;  %v3569_v37 = vunpack.i.h.bf16 %v3567_v28  ;;  %v1914_v24 = vpack.c.bf16 %v1851_v29, %v1850_v0  ;;  %v6008_v35 = vsel %vm463_vm0, %v457_v21, %v458_v48  ;;  %v3574_v11 = vunpack.i.h.bf16 %v3572_v20  ;;  %v7295_v28 = vld [vmem:[#allocation67_spill] sm:$0xff]  ;;  %v7296_v0 = vld [vmem:[#allocation48_spill] sm:$0xff] }
  0xe2   : > { %v3573_v52 = vunpack.i.l.bf16 %v3572_v20  ;;  %v7293_v31 = vpack.i.bf16 %v7291_v50, %v7292_v13  ;;  %v3905_v61 = vpack.i.bf16 %v5983_v40, %v5970_v5  ;;  %v6020_v29 = vsel %vm463_vm0, %v458_v48, %v7090_v45  ;;  %v7298_v48 = vld [vmem:[#allocation25_spill] sm:$0xff] }
  0xe3   : > { %v1693_v21 = vsel %vm1683_vm4, %v7294_v22, %v3569_v37  ;;  %v1692_v36 = vsel %vm1683_vm4, %v7194_v46, %v3568_v7  ;;  %v7297_v20 = vpack.i.bf16 %v7295_v28, %v7296_v0  ;;  %2359 = vmatmul.mubr.bf16.gmra.mrb[4].mxu1 %v1914_v24  ;;  %v6034_v50 = vsel %vm592_vm2, %v589_v6, %v7089_v39  ;;  %v3577_v37 = vpop.permute.xlu0 %3576  ;;  %v7299_v24 = vld [vmem:[#allocation26_spill] sm:$0xff]  ;;  %v3582_v0 = vpop.permute.xlu1 %3581  ;;  %v7301_v39 = vld [vmem:[#allocation9_spill] sm:$0xff] }
  0xe4   : > { %3856 = vrot.lane.b32.xlu0 %v7293_v31, %s4076_s26  ;;  %v827_v13 = vrot.slane %v7298_v48, 4  ;;  %v1757_v31 = vsel %vm1748_vm5, %v1692_v36, %v3573_v52  ;;  %3179 = vmatprep.mubr.msk.bf16.mxu1 %vm1683_vm4, %v1917_v60  ;;  %v6048_v7 = vsel %vm592_vm2, %v588_v4, %v589_v6  ;;  %v7091_v22 = vrot.slane %v7299_v24, 4 }
  0xe5   : > { %3861 = vrot.lane.b32.xlu1 %v7297_v20, %s4075_s18  ;;  %v1758_v28 = vsel %vm1748_vm5, %v1693_v21, %v3574_v11  ;;  %v3579_v52 = vunpack.i.h.bf16 %v3577_v37  ;;  %v3578_v36 = vunpack.i.l.bf16 %v3577_v37  ;;  %v3584_v55 = vunpack.i.h.bf16 %v3582_v0  ;;  %v7300_v20 = vld [vmem:[#allocation20_spill] sm:$0xff]  ;;  %v7304_v21 = vld [vmem:[#allocation69_spill] sm:$0xff] }
  0xe6   : > { %v873_v16 = vsel %vm850_vm3, %v826_v23, %v827_v13  ;;  %v3583_v60 = vunpack.i.l.bf16 %v3582_v0  ;;  %v7302_v45 = vpack.i.bf16 %v7300_v20, %v7301_v39  ;;  %v872_v4 = vsel %vm850_vm3, %v827_v13, %v7091_v22  ;;  %v7303_v11 = vld [vmem:[#allocation68_spill] sm:$0xff] }
  0xe7   : > { %v718_v6 = vrot.slane %v5973_v3, 3  ;;  %v7305_v37 = vpack.i.bf16 %v7303_v11, %v7304_v21  ;;  %v1822_v23 = vsel %vm1813_vm6, %v1757_v31, %v3578_v36  ;;  %v1823_v0 = vsel %vm1813_vm6, %v1758_v28, %v3579_v52  ;;  %v3587_v13 = vpop.permute.xlu0 %3586  ;;  %v3592_v28 = vpop.permute.xlu1 %3591  ;;  %v7307_v21 = vld [vmem:[#allocation27_spill] sm:$0xff] }
  0xe8   : > { %3866 = vrot.lane.b32.xlu0 %v7302_v45, %s4074_s17  ;;  %v3915_v39 = vpack.i.bf16 %v6034_v50, %v6048_v7  ;;  %v719_v45 = vrot.slane %v5986_v41, 3  ;;  %v1723_v20 = vsel %vm1683_vm4, %v7254_v44, %v3584_v55  ;;  %v1886_v22 = vpack.c.bf16 %v1823_v0, %v1822_v23  ;;  %v7329_v7 = vld [vmem:[#allocation31_spill] sm:$0xff] }
  0xe9   : > { %3871 = vrot.lane.b32.xlu1 %v7305_v37, %s4076_s26  ;;  %v1919_v46 = vpack.c.bf16 %v872_v4, %v873_v16  ;;  %v6080_v11 = vsel %vm721_vm1, %v717_v33, %v718_v6  ;;  %v3589_v31 = vunpack.i.h.bf16 %v3587_v13  ;;  %v3588_v36 = vunpack.i.l.bf16 %v3587_v13 }
  0xea   : > { %v6086_v52 = vsel %vm721_vm1, %v718_v6, %v719_v45  ;;  %v6089_v44 = vunpack.c.h.bf16 %v5833_v42  ;;  %v1722_v16 = vsel %vm1683_vm4, %v7213_v1, %v3583_v60  ;;  %v3594_v55 = vunpack.i.h.bf16 %v3592_v28  ;;  %2247 = vmatmul.mubr.bf16.gmra.mrb[16].mxu0 %v1886_v22 }
  0xeb   : > { %v3593_v4 = vunpack.i.l.bf16 %v3592_v28  ;;  %v7306_v33 = vpack.i.bf16 %v5732_v57, %v5742_v17  ;;  %v799_v37 = vrot.slane %v7307_v21, 4  ;;  %v1788_v23 = vsel %vm1748_vm5, %v1723_v20, %v3589_v31  ;;  %3165 = vmatprep.mubr.msk.bf16.mxu0 %vm1683_vm4, %v1889_v9  ;;  %v3597_v17 = vpop.permute.xlu0 %3596  ;;  %v7309_v20 = vld [vmem:[#allocation28_spill] sm:$0xff]  ;;  %v3602_v31 = vpop.permute.xlu1 %3601 }
  0xec   : > { %v1787_v6 = vsel %vm1748_vm5, %v1722_v16, %v3588_v36  ;;  %v7308_v42 = vpack.i.bf16 %v5773_v18, %v5764_v25  ;;  %v430_v1 = vrot.slane %v6089_v44, 1  ;;  %v561_v57 = vrot.slane %v6089_v44, 2 }
  0xed   : > { %3876 = vrot.lane.b32.xlu0 %v7306_v33, %s4075_s18  ;;  %v1852_v22 = vsel %vm1813_vm6, %v1787_v6, %v3593_v4  ;;  %v1853_v60 = vsel %vm1813_vm6, %v1788_v23, %v3594_v55  ;;  %v3920_v0 = vpack.i.bf16 %v6086_v52, %v6080_v11  ;;  %v800_v25 = vrot.slane %v7309_v20, 4 }
  0xee   : > { %3881 = vrot.lane.b32.xlu1 %v7308_v42, %s4074_s17  ;;  %v3599_v18 = vunpack.i.h.bf16 %v3597_v17  ;;  %v3598_v13 = vunpack.i.l.bf16 %v3597_v17  ;;  %v1916_v56 = vpack.c.bf16 %v1853_v60, %v1852_v22  ;;  %v7310_v59 = vrot.slane %v4233_v15, 1 }
  0xef   : > { %v3604_v36 = vunpack.i.h.bf16 %v3602_v31  ;;  %v3603_v28 = vunpack.i.l.bf16 %v3602_v31  ;;  %v7311_v16 = vpack.i.bf16 %v5796_v43, %v5802_v10  ;;  %v7312_v55 = vrot.slane %v5865_v27, 1  ;;  %v3607_v60 = vpop.permute.xlu0 %3606 }
  0xf0   : > { %v6119_v9 = vsel %vm463_vm0, %v430_v1, %v7310_v59  ;;  %v7313_v33 = vrot.slane %v4233_v15, 2  ;;  %v1695_v6 = vsel %vm1683_vm4, %v7274_v54, %v3599_v18  ;;  %v1694_v42 = vsel %vm1683_vm4, %v7230_v30, %v3598_v13  ;;  %2367 = vmatmul.mubr.bf16.gmra.mrb[8].mxu1 %v1916_v56  ;;  %v3612_v56 = vpop.permute.xlu1 %3611 }
  0xf1   : > { %3886 = vrot.lane.b32.xlu0 %v7311_v16, %s4076_s26  ;;  %v6129_v4 = vsel %vm463_vm0, %v7312_v55, %v430_v1  ;;  %v7314_v43 = vpack.i.bf16 %v5862_v12, %v5849_v63  ;;  %v7315_v10 = vrot.slane %v7277_v53, 4  ;;  %v690_v17 = vrot.slane %v6089_v44, 3  ;;  %3180 = vmatprep.mubr.msk.bf16.mxu1 %vm1683_vm4, %v1919_v46 }
  0xf2   : > { %v6135_v23 = vsel %vm592_vm2, %v561_v57, %v7313_v33  ;;  %v1759_v22 = vsel %vm1748_vm5, %v1694_v42, %v3603_v28  ;;  %v3925_v30 = vpack.i.bf16 %v6119_v9, %v6129_v4  ;;  %v7316_v54 = vrot.slane %v5865_v27, 2  ;;  %v7333_v4 = vld [vmem:[#allocation33_spill] sm:$0xff] }
  0xf3   : > { %3891 = vrot.lane.b32.xlu1 %v7314_v43, %s4075_s18  ;;  %v901_v1 = vsel %vm850_vm3, %v7315_v10, %v799_v37  ;;  %v900_v12 = vsel %vm850_vm3, %v799_v37, %v800_v25  ;;  %v1760_v18 = vsel %vm1748_vm5, %v1695_v6, %v3604_v36  ;;  %v3609_v13 = vunpack.i.h.bf16 %v3607_v60 }
  0xf4   : > { %v6158_v63 = vsel %vm592_vm2, %v7316_v54, %v561_v57  ;;  %v3608_v31 = vunpack.i.l.bf16 %v3607_v60  ;;  %v3614_v59 = vunpack.i.h.bf16 %v3612_v56  ;;  %v3613_v28 = vunpack.i.l.bf16 %v3612_v56 }
  0xf5   : > { %v3930_v46 = vpack.i.bf16 %v6135_v23, %v6158_v63  ;;  %v7317_v57 = vpack.i.bf16 %v5895_v47, %v5883_v26  ;;  %v7318_v16 = vrot.slane %v4233_v15, 3  ;;  %v7319_v36 = vrot.slane %v5865_v27, 3 }
  0xf6   : > { %v7320_v33 = vpack.i.bf16 %v5909_v62, %v5923_v34  ;;  %v1824_v26 = vsel %vm1813_vm6, %v1759_v22, %v3608_v31  ;;  %v1825_v47 = vsel %vm1813_vm6, %v1760_v18, %v3609_v13  ;;  %v1891_v6 = vpack.c.bf16 %v900_v12, %v901_v1  ;;  %v3622_v22 = vpop.permute.xlu1 %3621  ;;  %v7321_v1 = vld [vmem:[#allocation29_spill] sm:$0xff] }
  0xf7   : > { %3896 = vrot.lane.b32.xlu0 %v7317_v57, %s4074_s17  ;;  %v6175_v37 = vsel %vm721_vm1, %v690_v17, %v7318_v16  ;;  %v6181_v55 = vsel %vm721_vm1, %v7319_v36, %v690_v17  ;;  %v6190_v42 = vunpack.c.h.bf16 %v5958_v14  ;;  %v1725_v43 = vsel %vm1683_vm4, %v7298_v48, %v3614_v59  ;;  %v3617_v17 = vpop.permute.xlu0 %3616  ;;  %v7322_v48 = vld [vmem:[#allocation30_spill] sm:$0xff]  ;;  %v7325_v36 = vld [vmem:[#allocation8_spill] sm:$0xff] }
  0xf8   : > { %3901 = vrot.lane.b32.xlu1 %v7320_v33, %s4076_s26  ;;  %v1724_v10 = vsel %vm1683_vm4, %v7256_v49, %v3613_v28  ;;  %v1888_v60 = vpack.c.bf16 %v1825_v47, %v1824_v26  ;;  %v3935_v62 = vpack.i.bf16 %v6175_v37, %v6181_v55  ;;  %v3619_v34 = vunpack.i.h.bf16 %v3617_v17 }
  0xf9   : > { %v3618_v54 = vunpack.i.l.bf16 %v3617_v17  ;;  %v460_v18 = vrot.slane %v6190_v42, 1  ;;  %v829_v12 = vrot.slane %v7321_v1, 4  ;;  %v3624_v14 = vunpack.i.h.bf16 %v3622_v22 }
  0xfa   : > { %v3623_v13 = vunpack.i.l.bf16 %v3622_v22  ;;  %2255 = vmatmul.mubr.bf16.gmra.mrb[20].mxu0 %v1888_v60  ;;  %v591_v49 = vrot.slane %v6190_v42, 2  ;;  %v830_v31 = vrot.slane %v7322_v48, 4  ;;  %v1790_v56 = vsel %vm1748_vm5, %v1725_v43, %v3619_v34 }
  0xfb   : > { %3906 = vrot.lane.b32.xlu0 %v3905_v61, %s4075_s18  ;;  %v1789_v59 = vsel %vm1748_vm5, %v1724_v10, %v3618_v54  ;;  %v7323_v28 = vpack.i.bf16 %v6020_v29, %v6008_v35  ;;  %3166 = vmatprep.mubr.msk.bf16.mxu0 %vm1683_vm4, %v1891_v6  ;;  %v7324_v57 = vrot.slane %v5986_v41, 1  ;;  %v3627_v40 = vpop.permute.xlu0 %3626  ;;  %v1855_v16 = vsel %vm1813_vm6, %v1790_v56, %v3624_v14  ;;  %v3632_v6 = vpop.permute.xlu1 %3631 }
  0xfc   : > { %v1854_v61 = vsel %vm1813_vm6, %v1789_v59, %v3623_v13  ;;  %v7326_v33 = vrot.slane %v7325_v36, 1  ;;  %v720_v35 = vrot.slane %v6190_v42, 3  ;;  %v3629_v29 = vunpack.i.h.bf16 %v3627_v40 }
  0xfd   : > { %3911 = vrot.lane.b32.xlu1 %v7323_v28, %s4074_s17  ;;  %v464_v5 = vsel %vm463_vm0, %v7324_v57, %v460_v18  ;;  %v3628_v47 = vunpack.i.l.bf16 %v3627_v40  ;;  %v1918_v43 = vpack.c.bf16 %v1855_v16, %v1854_v61  ;;  %v7327_v10 = vrot.slane %v7299_v24, 4  ;;  %v7332_v40 = vld [vmem:[#allocation32_spill] sm:$0xff] }
  0xfe   : > { %v527_v26 = vsel %vm463_vm0, %v460_v18, %v7326_v33  ;;  %v3634_v60 = vunpack.i.h.bf16 %v3632_v6  ;;  %v3633_v34 = vunpack.i.l.bf16 %v3632_v6  ;;  %v7328_v54 = vrot.slane %v5986_v41, 2 }
  0xff   : > { %v871_v17 = vsel %vm850_vm3, %v7327_v10, %v829_v12  ;;  %3916 = vrot.lane.b32.xlu0 %v3915_v39, %s4076_s26  ;;  %v870_v18 = vsel %vm850_vm3, %v829_v12, %v830_v31  ;;  %v1697_v14 = vsel %vm1683_vm4, %v7307_v21, %v3629_v29  ;;  %v1696_v13 = vsel %vm1683_vm4, %v7277_v53, %v3628_v47  ;;  %v3637_v59 = vpop.permute.xlu0 %3636 }
 0x100   : > { %v593_v22 = vsel %vm592_vm2, %v7328_v54, %v591_v49  ;;  %2375 = vmatmul.mubr.bf16.gmra.mrb[12].mxu1 %v1918_v43  ;;  %v3940_v50 = vpack.i.bf16 %v527_v26, %v464_v5  ;;  %v801_v39 = vrot.slane %v7329_v7, 4  ;;  %v1761_v56 = vsel %vm1748_vm5, %v1696_v13, %v3633_v34  ;;  %v7334_v34 = vld [vmem:[#allocation34_spill] sm:$0xff] }
 0x101   : > { %3921 = vrot.lane.b32.xlu1 %v3920_v0, %s4075_s18  ;;  %v7330_v12 = vrot.slane %v7325_v36, 2  ;;  %v1921_v28 = vpack.c.bf16 %v870_v18, %v871_v17  ;;  %v722_v53 = vsel %vm721_vm1, %v719_v45, %v720_v35  ;;  %v3639_v11 = vunpack.i.h.bf16 %v3637_v59  ;;  %v3642_v0 = vpop.permute.xlu1 %3641 }
 0x102   : > { %v3638_v52 = vunpack.i.l.bf16 %v3637_v59  ;;  %v7331_v57 = vrot.slane %v7325_v36, 3  ;;  %v802_v61 = vrot.slane %v7332_v40, 4  ;;  %v1762_v16 = vsel %vm1748_vm5, %v1697_v14, %v3634_v60 }
 0x103   : > { %v656_v21 = vsel %vm592_vm2, %v591_v49, %v7330_v12  ;;  %v3644_v33 = vunpack.i.h.bf16 %v3642_v0  ;;  %v3643_v49 = vunpack.i.l.bf16 %v3642_v0  ;;  %3926 = vrot.lane.b32.xlu0 %v3925_v30, %s4074_s17  ;;  %3181 = vmatprep.mubr.msk.bf16.mxu1 %vm1683_vm4, %v1921_v28  ;;  %v899_v45 = vsel %vm850_vm3, %v800_v25, %v801_v39  ;;  %v3647_v29 = vpop.permute.xlu0 %3646 }
 0x104   : > { %v785_v5 = vsel %vm721_vm1, %v720_v35, %v7331_v57  ;;  %v1826_v26 = vsel %vm1813_vm6, %v1761_v56, %v3638_v52  ;;  %v1827_v35 = vsel %vm1813_vm6, %v1762_v16, %v3639_v11  ;;  %v898_v9 = vsel %vm850_vm3, %v801_v39, %v802_v61 }
 0x105   : > { %3931 = vrot.lane.b32.xlu1 %v3930_v46, %s4076_s26  ;;  %v831_v30 = vrot.slane %v7333_v4, 4  ;;  %v1890_v47 = vpack.c.bf16 %v1827_v35, %v1826_v26  ;;  %v3945_v6 = vpack.i.bf16 %v656_v21, %v593_v22  ;;  %v3950_v43 = vpack.i.bf16 %v785_v5, %v722_v53  ;;  %v3652_v60 = vpop.permute.xlu1 %3651  ;;  %v7337_v26 = vld [vmem:[#allocation37_spill] sm:$0xff]  ;;  %v7338_v35 = vld [vmem:[#allocation38_spill] sm:$0xff] }
 0x106   : > { %v1893_v10 = vpack.c.bf16 %v898_v9, %v899_v45  ;;  %v3649_v25 = vunpack.i.h.bf16 %v3647_v29  ;;  %v3648_v17 = vunpack.i.l.bf16 %v3647_v29  ;;  %v832_v23 = vrot.slane %v7334_v34, 4 }
 0x107   : > { %v869_v63 = vsel %vm850_vm3, %v830_v31, %v831_v30  ;;  %v1727_v46 = vsel %vm1683_vm4, %v7321_v1, %v3644_v33  ;;  %v1726_v54 = vsel %vm1683_vm4, %v7299_v24, %v3643_v49  ;;  %v3654_v18 = vunpack.i.h.bf16 %v3652_v60  ;;  %3936 = vrot.lane.b32.xlu0 %v3935_v62, %s4075_s18  ;;  %2263 = vmatmul.mubr.bf16.gmra.mrb[24].mxu0 %v1890_v47  ;;  %v7335_v24 = vld [vmem:[#allocation35_spill] sm:$0xff]  ;;  %v3657_v39 = vpop.permute.xlu0 %3656  ;;  %v7336_v62 = vld [vmem:[#allocation36_spill] sm:$0xff] }
 0x108   : > { %v3653_v14 = vunpack.i.l.bf16 %v3652_v60  ;;  %v1792_v22 = vsel %vm1748_vm5, %v1727_v46, %v3649_v25  ;;  %v1791_v13 = vsel %vm1748_vm5, %v1726_v54, %v3648_v17  ;;  %3167 = vmatprep.mubr.msk.bf16.mxu0 %vm1683_vm4, %v1893_v10  ;;  %v868_v1 = vsel %vm850_vm3, %v831_v30, %v832_v23 }
 0x109   : > { %3941 = vrot.lane.b32.xlu1 %v3940_v50, %s4074_s17  ;;  %v803_v31 = vrot.slane %v7335_v24, 4  ;;  %v1857_v37 = vsel %vm1813_vm6, %v1792_v22, %v3654_v18  ;;  %v1923_v55 = vpack.c.bf16 %v868_v1, %v869_v63  ;;  %v804_v59 = vrot.slane %v7336_v62, 4  ;;  %v3662_v28 = vpop.permute.xlu1 %3661  ;;  %s260_s17 = scalar_lea.vmem [#allocation5], %s3147_s13 }
 0x10a   : > { %v1856_v56 = vsel %vm1813_vm6, %v1791_v13, %v3653_v14  ;;  %v3659_v12 = vunpack.i.h.bf16 %v3657_v39  ;;  %v3658_v21 = vunpack.i.l.bf16 %v3657_v39  ;;  %v3664_v50 = vunpack.i.h.bf16 %v3662_v28  ;;  %v7339_v39 = vld [vmem:[#allocation39_spill] sm:$0xff] }
 0x10b   : > { %v1920_v53 = vpack.c.bf16 %v1857_v37, %v1856_v56  ;;  %v3663_v11 = vunpack.i.l.bf16 %v3662_v28  ;;  %3946 = vrot.lane.b32.xlu0 %v3945_v6, %s4076_s26  ;;  %v3667_v57 = vpop.permute.xlu0 %3666  ;;  %v896_v5 = vsel %vm850_vm3, %v803_v31, %v804_v59  ;;  %v897_v16 = vsel %vm850_vm3, %v802_v61, %v803_v31  ;;  %s3207_s26 = sshll.u32 %s4136_s25, 9  ;;  %s6899_s25 = scalar_lea.sflag [#allocation4], %s258_s10 }
 0x10c   : > { %v1699_v52 = vsel %vm1683_vm4, %v7329_v7, %v3659_v12  ;;  %v1698_v0 = vsel %vm1683_vm4, %v7309_v20, %v3658_v21  ;;  %v3669_v33 = vunpack.i.h.bf16 %v3667_v57  ;;  %v3668_v49 = vunpack.i.l.bf16 %v3667_v57  ;;  %v7340_v12 = vld [vmem:[#allocation40_spill] sm:$0xff]  ;;  %s6897_s15 = scalar_lea.hbm %s6946_s6, %s3207_s26 }
 0x10d   : > { %3951 = vrot.lane.b32.xlu1 %v3950_v43, %s4075_s18  ;;  %2383 = vmatmul.mubr.bf16.gmra.mrb[16].mxu1 %v1920_v53  ;;  %v3672_v45 = vpop.permute.xlu1 %3671  ;;  %v833_v7 = vrot.slane %v7337_v26, 4  ;;  %v834_v9 = vrot.slane %v7338_v35, 4  ;;  %v1763_v20 = vsel %vm1748_vm5, %v1698_v0, %v3663_v11  ;;  %v1764_v30 = vsel %vm1748_vm5, %v1699_v52, %v3664_v50  ;;  %s3067_s18 = sshll.u32 %s260_s17, 4  ;;  %s6892_s18 = int_to_ptr.vmem [resolvable:$true] %s3067_s18 }
 0x10e   : > { %3182 = vmatprep.mubr.msk.bf16.mxu1 %vm1683_vm4, %v1923_v55  ;;  %v3674_v29 = vunpack.i.h.bf16 %v3672_v45  ;;  %v3673_v47 = vunpack.i.l.bf16 %v3672_v45  ;;  %v1828_v6 = vsel %vm1813_vm6, %v1763_v20, %v3668_v49  ;;  %v1829_v43 = vsel %vm1813_vm6, %v1764_v30, %v3669_v33  ;;  %v7341_v20 = vld [vmem:[#allocation41_spill] sm:$0xff]  ;;  %s4002_s16 = scalar_lea.vmem %s6892_s18, 512  ;;  %p4009_p2 = scmp.lt.s32.totalorder %s6892_s18, %s4007_s20 }
 0x10f   : > { %v1895_v10 = vpack.c.bf16 %v896_v5, %v897_v16  ;;  %v3677_v25 = vpop.permute.xlu0 %3676  ;;  %v1892_v61 = vpack.c.bf16 %v1829_v43, %v1828_v6  ;;  %v866_v46 = vsel %vm850_vm3, %v833_v7, %v834_v9  ;;  %v867_v54 = vsel %vm850_vm3, %v832_v23, %v833_v7  ;;  %p4003_p6 = scmp.ne.s32.totalorder %s6892_s18, %s4002_s16  ;;  %p4010_p3 = scmp.lt.s32.totalorder %s4008_s28, %s4002_s16 }
 0x110   : > { %v3679_v17 = vunpack.i.h.bf16 %v3677_v25  ;;  %v3678_v60 = vunpack.i.l.bf16 %v3677_v25  ;;  %v1729_v18 = vsel %vm1683_vm4, %v7333_v4, %v3674_v29  ;;  %v1728_v14 = vsel %vm1683_vm4, %v7322_v48, %v3673_v47  ;;  %v7342_v29 = vld [vmem:[#allocation42_spill] sm:$0xff] }
 0x111   : > { %v3682_v63 = vpop.permute.xlu1 %3681  ;;  %2271 = vmatmul.mubr.bf16.gmra.mrb[28].mxu0 %v1892_v61  ;;  %v805_v56 = vrot.slane %v7339_v39, 4  ;;  %v1925_v4 = vpack.c.bf16 %v866_v46, %v867_v54  ;;  %v806_v21 = vrot.slane %v7340_v12, 4  ;;  %v835_v30 = vrot.slane %v7341_v20, 4  ;;  %p4004_p10 = pnand %p4003_p6, %p7360_p9  ;;  %p4011_p4 = por %p4010_p3, %p4009_p2 }
 0x112   : > { %v3684_v22 = vunpack.i.h.bf16 %v3682_v63  ;;  %v3683_v13 = vunpack.i.l.bf16 %v3682_v63  ;;  %v1794_v1 = vsel %vm1748_vm5, %v1729_v18, %v3679_v17  ;;  %v1793_v31 = vsel %vm1748_vm5, %v1728_v14, %v3678_v60  ;;  %3168 = vmatprep.mubr.msk.bf16.mxu0 %vm1683_vm4, %v1895_v10 }
 0x113   : > { %v3687_v37 = vpop.permute.xlu0 %3686  ;;  %v894_v16 = vsel %vm850_vm3, %v805_v56, %v806_v21  ;;  %v895_v33 = vsel %vm850_vm3, %v804_v59, %v805_v56  ;;  %v865_v18 = vsel %vm850_vm3, %v834_v9, %v835_v30  ;;  %p4005_p12 = pneg %p4004_p10 }
 0x114   : > { %v1858_v23 = vsel %vm1813_vm6, %v1793_v31, %v3683_v13  ;;  %v1859_v55 = vsel %vm1813_vm6, %v1794_v1, %v3684_v22  ;;  %v3689_v48 = vunpack.i.h.bf16 %v3687_v37  ;;  %v3688_v28 = vunpack.i.l.bf16 %v3687_v37  ;;  %v7343_v37 = vld [vmem:[#allocation43_spill] sm:$0xff] }
 0x115   : > { %v3692_v53 = vpop.permute.xlu1 %3691  ;;  %v1922_v50 = vpack.c.bf16 %v1859_v55, %v1858_v23  ;;  %v1897_v61 = vpack.c.bf16 %v894_v16, %v895_v33  ;;  %v807_v23 = vrot.slane %v7343_v37, 4  ;;  %p4012_p7 = pnand %p4011_p4, %p4005_p12 }
 0x116   : > { %v3694_v11 = vunpack.i.h.bf16 %v3692_v53  ;;  %v3693_v52 = vunpack.i.l.bf16 %v3692_v53  ;;  %v1701_v0 = vsel %vm1683_vm4, %v7335_v24, %v3689_v48  ;;  %v1700_v57 = vsel %vm1683_vm4, %v7332_v40, %v3688_v28  ;;  %v7344_v48 = vld [vmem:[#allocation44_spill] sm:$0xff] }
 0x117   : > { %2391 = vmatmul.mubr.bf16.gmra.mrb[20].mxu1 %v1922_v50  ;;  %v3697_v5 = vpop.permute.xlu0 %3696  ;;  %v836_v24 = vrot.slane %v7342_v29, 4  ;;  %v808_v28 = vrot.slane %v7344_v48, 4 }
 0x118   : > { %3183 = vmatprep.mubr.msk.bf16.mxu1 %vm1683_vm4, %v1925_v4  ;;  %v3699_v49 = vunpack.i.h.bf16 %v3697_v5  ;;  %v3698_v45 = vunpack.i.l.bf16 %v3697_v5  ;;  %v1765_v47 = vsel %vm1748_vm5, %v1700_v57, %v3693_v52  ;;  %v1766_v40 = vsel %vm1748_vm5, %v1701_v0, %v3694_v11 }
 0x119   : > { %v3702_v7 = vpop.permute.xlu1 %3701  ;;  %v864_v54 = vsel %vm850_vm3, %v835_v30, %v836_v24  ;;  %v892_v33 = vsel %vm850_vm3, %v807_v23, %v808_v28  ;;  %v7346_v30 = vld [vmem:[#allocation46_spill] sm:$0xff] }
 0x11a   : > { %v3704_v6 = vunpack.i.h.bf16 %v3702_v7  ;;  %v3703_v43 = vunpack.i.l.bf16 %v3702_v7  ;;  %v1830_v10 = vsel %vm1813_vm6, %v1765_v47, %v3698_v45  ;;  %v1831_v25 = vsel %vm1813_vm6, %v1766_v40, %v3699_v49  ;;  %v7345_v45 = vld [vmem:[#allocation45_spill] sm:$0xff] }
 0x11b   : > { %v3707_v17 = vpop.permute.xlu0 %3706  ;;  %v1894_v59 = vpack.c.bf16 %v1831_v25, %v1830_v10  ;;  %v893_v49 = vsel %vm850_vm3, %v806_v21, %v807_v23  ;;  %v837_v7 = vrot.slane %v7345_v45, 4  ;;  %v838_v47 = vrot.slane %v7346_v30, 4 }
 0x11c   : > { %v3709_v60 = vunpack.i.h.bf16 %v3707_v17  ;;  %v3708_v63 = vunpack.i.l.bf16 %v3707_v17  ;;  %v1731_v14 = vsel %vm1683_vm4, %v7337_v26, %v3704_v6  ;;  %v1730_v22 = vsel %vm1683_vm4, %v7334_v34, %v3703_v43 }
 0x11d   : > { %v3712_v46 = vpop.permute.xlu1 %3711  ;;  %2279 = vmatmul.mubr.bf16.gmra.mrb[32].mxu0 %v1894_v59  ;;  %v1927_v26 = vpack.c.bf16 %v864_v54, %v865_v18  ;;  %v1899_v59 = vpack.c.bf16 %v892_v33, %v893_v49 }
 0x11e   : > { %v3714_v13 = vunpack.i.h.bf16 %v3712_v46  ;;  %v3713_v1 = vunpack.i.l.bf16 %v3712_v46  ;;  %v1796_v31 = vsel %vm1748_vm5, %v1731_v14, %v3709_v60  ;;  %v1795_v56 = vsel %vm1748_vm5, %v1730_v22, %v3708_v63  ;;  %3169 = vmatprep.mubr.msk.bf16.mxu0 %vm1683_vm4, %v1897_v61 }
 0x11f   : > { %v3717_v55 = vpop.permute.xlu0 %3716  ;;  %v862_v63 = vsel %vm850_vm3, %v837_v7, %v838_v47  ;;  %v863_v46 = vsel %vm850_vm3, %v836_v24, %v837_v7 }
 0x120   : > { %v1860_v9 = vsel %vm1813_vm6, %v1795_v56, %v3713_v1  ;;  %v1861_v4 = vsel %vm1813_vm6, %v1796_v31, %v3714_v13  ;;  %v3719_v34 = vunpack.i.h.bf16 %v3717_v55  ;;  %v3718_v53 = vunpack.i.l.bf16 %v3717_v55 }
 0x121   : > { %v3722_v50 = vpop.permute.xlu1 %3721  ;;  %v1924_v11 = vpack.c.bf16 %v1861_v4, %v1860_v9  ;;  %v1929_v55 = vpack.c.bf16 %v862_v63, %v863_v46 }
 0x122   : > { %v3724_v52 = vunpack.i.h.bf16 %v3722_v50  ;;  %v3723_v0 = vunpack.i.l.bf16 %v3722_v50  ;;  %v1703_v57 = vsel %vm1683_vm4, %v7339_v39, %v3719_v34  ;;  %v1702_v5 = vsel %vm1683_vm4, %v7336_v62, %v3718_v53  ;;  %v7348_v34 = vld [vmem:[#allocation51_spill] sm:$0xff] }
 0x123   : > { %2399 = vmatmul.mubr.bf16.gmra.mrb[24].mxu1 %v1924_v11  ;;  %v3727_v16 = vpop.permute.xlu0 %3726  ;;  %v810_v53 = vrot.slane %v7348_v34, 4 }
 0x124   : > { %3184 = vmatprep.mubr.msk.bf16.mxu1 %vm1683_vm4, %v1927_v26  ;;  %v3729_v40 = vunpack.i.h.bf16 %v3727_v16  ;;  %v3728_v6 = vunpack.i.l.bf16 %v3727_v16  ;;  %v1767_v43 = vsel %vm1748_vm5, %v1702_v5, %v3723_v0  ;;  %v1768_v62 = vsel %vm1748_vm5, %v1703_v57, %v3724_v52  ;;  %v7347_v26 = vld [vmem:[#allocation50_spill] sm:$0xff] }
 0x125   : > { %v3732_v39 = vpop.permute.xlu1 %3731 }
 0x126   : > { %v3734_v10 = vunpack.i.h.bf16 %v3732_v39  ;;  %v3733_v25 = vunpack.i.l.bf16 %v3732_v39  ;;  %v1832_v61 = vsel %vm1813_vm6, %v1767_v43, %v3728_v6  ;;  %v1833_v17 = vsel %vm1813_vm6, %v1768_v62, %v3729_v40  ;;  %v7349_v40 = vld [vmem:[#allocation52_spill] sm:$0xff]  ;;  %v7350_v39 = vld [vmem:[#allocation53_spill] sm:$0xff] }
 0x127   : > { %v3737_v60 = vpop.permute.xlu0 %3736  ;;  %v1896_v21 = vpack.c.bf16 %v1833_v17, %v1832_v61  ;;  %v839_v6 = vrot.slane %v7349_v40, 4  ;;  %v840_v43 = vrot.slane %v7350_v39, 4 }
 0x128   : > { %v3739_v54 = vunpack.i.h.bf16 %v3737_v60  ;;  %v3738_v18 = vunpack.i.l.bf16 %v3737_v60  ;;  %v1733_v22 = vsel %vm1683_vm4, %v7341_v20, %v3734_v10  ;;  %v1732_v13 = vsel %vm1683_vm4, %v7338_v35, %v3733_v25 }
 0x129   : > { %v3742_v14 = vpop.permute.xlu1 %3741  ;;  %2287 = vmatmul.mubr.bf16.gmra.mrb[36].mxu0 %v1896_v21  ;;  %v809_v20 = vrot.slane %v7347_v26, 4  ;;  %v860_v46 = vsel %vm850_vm3, %v839_v6, %v840_v43 }
 0x12a   : > { %v3744_v1 = vunpack.i.h.bf16 %v3742_v14  ;;  %v3743_v31 = vunpack.i.l.bf16 %v3742_v14  ;;  %v1798_v56 = vsel %vm1748_vm5, %v1733_v22, %v3739_v54  ;;  %v1797_v23 = vsel %vm1748_vm5, %v1732_v13, %v3738_v18  ;;  %3170 = vmatprep.mubr.msk.bf16.mxu0 %vm1683_vm4, %v1899_v59 }
 0x12b   : > { %v3747_v24 = vpop.permute.xlu0 %3746  ;;  %v890_v49 = vsel %vm850_vm3, %v809_v20, %v810_v53  ;;  %v891_v7 = vsel %vm850_vm3, %v808_v28, %v809_v20  ;;  %v861_v54 = vsel %vm850_vm3, %v838_v47, %v839_v6  ;;  %v7351_v20 = vld [vmem:[#allocation54_spill] sm:$0xff] }
 0x12c   : > { %v1862_v9 = vsel %vm1813_vm6, %v1797_v23, %v3743_v31  ;;  %v1863_v4 = vsel %vm1813_vm6, %v1798_v56, %v3744_v1  ;;  %v3749_v35 = vunpack.i.h.bf16 %v3747_v24  ;;  %v3748_v50 = vunpack.i.l.bf16 %v3747_v24 }
 0x12d   : > { %v3752_v11 = vpop.permute.xlu1 %3751  ;;  %v1926_v52 = vpack.c.bf16 %v1863_v4, %v1862_v9  ;;  %v1901_v21 = vpack.c.bf16 %v890_v49, %v891_v7  ;;  %v1931_v24 = vpack.c.bf16 %v860_v46, %v861_v54 }
 0x12e   : > { %v3754_v0 = vunpack.i.h.bf16 %v3752_v11  ;;  %v3753_v57 = vunpack.i.l.bf16 %v3752_v11  ;;  %v1705_v5 = vsel %vm1683_vm4, %v7343_v37, %v3749_v35  ;;  %v1704_v16 = vsel %vm1683_vm4, %v7340_v12, %v3748_v50  ;;  %v7352_v35 = vld [vmem:[#allocation55_spill] sm:$0xff] }
 0x12f   : > { %2407 = vmatmul.mubr.bf16.gmra.mrb[28].mxu1 %v1926_v52  ;;  %v3757_v33 = vpop.permute.xlu0 %3756  ;;  %v812_v50 = vrot.slane %v7352_v35, 4 }
 0x130   : > { %3185 = vmatprep.mubr.msk.bf16.mxu1 %vm1683_vm4, %v1929_v55  ;;  %v3759_v62 = vunpack.i.h.bf16 %v3757_v33  ;;  %v3758_v10 = vunpack.i.l.bf16 %v3757_v33  ;;  %v1769_v25 = vsel %vm1748_vm5, %v1704_v16, %v3753_v57  ;;  %v1770_v12 = vsel %vm1748_vm5, %v1705_v5, %v3754_v0 }
 0x131   : > { %v3762_v37 = vpop.permute.xlu1 %3761 }
 0x132   : > { %v3764_v61 = vunpack.i.h.bf16 %v3762_v37  ;;  %v3763_v17 = vunpack.i.l.bf16 %v3762_v37  ;;  %v1834_v59 = vsel %vm1813_vm6, %v1769_v25, %v3758_v10  ;;  %v1835_v60 = vsel %vm1813_vm6, %v1770_v12, %v3759_v62  ;;  %v7353_v62 = vld [vmem:[#allocation56_spill] sm:$0xff]  ;;  %v7354_v37 = vld [vmem:[#allocation58_spill] sm:$0xff] }
 0x133   : > { %v3767_v63 = vpop.permute.xlu0 %3766  ;;  %v1898_v28 = vpack.c.bf16 %v1835_v60, %v1834_v59  ;;  %v841_v10 = vrot.slane %v7353_v62, 4  ;;  %v842_v25 = vrot.slane %v7354_v37, 4 }
 0x134   : > { %v3769_v18 = vunpack.i.h.bf16 %v3767_v63  ;;  %v3768_v14 = vunpack.i.l.bf16 %v3767_v63  ;;  %v1735_v13 = vsel %vm1683_vm4, %v7345_v45, %v3764_v61  ;;  %v1734_v1 = vsel %vm1683_vm4, %v7342_v29, %v3763_v17 }
 0x135   : > { %v3772_v22 = vpop.permute.xlu1 %3771  ;;  %2295 = vmatmul.mubr.bf16.gmra.mrb[40].mxu0 %v1898_v28  ;;  %v811_v45 = vrot.slane %v7351_v20, 4  ;;  %v858_v54 = vsel %vm850_vm3, %v841_v10, %v842_v25 }
 0x136   : > { %v3774_v31 = vunpack.i.h.bf16 %v3772_v22  ;;  %v3773_v56 = vunpack.i.l.bf16 %v3772_v22  ;;  %v1800_v23 = vsel %vm1748_vm5, %v1735_v13, %v3769_v18  ;;  %v1799_v55 = vsel %vm1748_vm5, %v1734_v1, %v3768_v14  ;;  %3171 = vmatprep.mubr.msk.bf16.mxu0 %vm1683_vm4, %v1901_v21 }
 0x137   : > { %v3777_v47 = vpop.permute.xlu0 %3776  ;;  %v888_v7 = vsel %vm850_vm3, %v811_v45, %v812_v50  ;;  %v889_v6 = vsel %vm850_vm3, %v810_v53, %v811_v45  ;;  %v859_v18 = vsel %vm850_vm3, %v840_v43, %v841_v10  ;;  %v7355_v45 = vld [vmem:[#allocation61_spill] sm:$0xff]  ;;  %v7356_v10 = vld [vmem:[#allocation16_spill] sm:$0xff] }
 0x138   : > { %v1864_v9 = vsel %vm1813_vm6, %v1799_v55, %v3773_v56  ;;  %v1865_v4 = vsel %vm1813_vm6, %v1800_v23, %v3774_v31  ;;  %v3779_v29 = vunpack.i.h.bf16 %v3777_v47  ;;  %v3778_v11 = vunpack.i.l.bf16 %v3777_v47 }
 0x139   : > { %v3782_v52 = vpop.permute.xlu1 %3781  ;;  %v1928_v0 = vpack.c.bf16 %v1865_v4, %v1864_v9  ;;  %v1903_v28 = vpack.c.bf16 %v888_v7, %v889_v6  ;;  %v1933_v47 = vpack.c.bf16 %v858_v54, %v859_v18 }
 0x13a   : > { %v3784_v57 = vunpack.i.h.bf16 %v3782_v52  ;;  %v3783_v5 = vunpack.i.l.bf16 %v3782_v52  ;;  %v1707_v16 = vsel %vm1683_vm4, %v7347_v26, %v3779_v29  ;;  %v1706_v33 = vsel %vm1683_vm4, %v7344_v48, %v3778_v11 }
 0x13b   : > { %2415 = vmatmul.mubr.bf16.gmra.mrb[32].mxu1 %v1928_v0  ;;  %v3787_v49 = vpop.permute.xlu0 %3786  ;;  %v814_v29 = vrot.slane %v5465_v32, 4 }
 0x13c   : > { %3186 = vmatprep.mubr.msk.bf16.mxu1 %vm1683_vm4, %v1931_v24  ;;  %v3789_v12 = vunpack.i.h.bf16 %v3787_v49  ;;  %v3788_v61 = vunpack.i.l.bf16 %v3787_v49  ;;  %v1771_v17 = vsel %vm1748_vm5, %v1706_v33, %v3783_v5  ;;  %v1772_v48 = vsel %vm1748_vm5, %v1707_v16, %v3784_v57 }
 0x13d   : > { %v3792_v26 = vpop.permute.xlu1 %3791 }
 0x13e   : > { %v3794_v59 = vunpack.i.h.bf16 %v3792_v26  ;;  %v3793_v60 = vunpack.i.l.bf16 %v3792_v26  ;;  %v1836_v21 = vsel %vm1813_vm6, %v1771_v17, %v3788_v61  ;;  %v1837_v63 = vsel %vm1813_vm6, %v1772_v48, %v3789_v12 }
 0x13f   : > { %v3797_v46 = vpop.permute.xlu0 %3796  ;;  %v1900_v53 = vpack.c.bf16 %v1837_v63, %v1836_v21  ;;  %v843_v12 = vrot.slane %v7356_v10, 4  ;;  %v844_v61 = vrot.slane %v5491_v8, 4 }
 0x140   : > { %v3799_v14 = vunpack.i.h.bf16 %v3797_v46  ;;  %v3798_v22 = vunpack.i.l.bf16 %v3797_v46  ;;  %v1737_v1 = vsel %vm1683_vm4, %v7349_v40, %v3794_v59  ;;  %v1736_v31 = vsel %vm1683_vm4, %v7346_v30, %v3793_v60 }
 0x141   : > { %v3802_v13 = vpop.permute.xlu1 %3801  ;;  %2303 = vmatmul.mubr.bf16.gmra.mrb[44].mxu0 %v1900_v53  ;;  %v813_v40 = vrot.slane %v7355_v45, 4  ;;  %v856_v53 = vsel %vm850_vm3, %v843_v12, %v844_v61  ;;  %v857_v54 = vsel %vm850_vm3, %v842_v25, %v843_v12 }
 0x142   : > { %v3804_v56 = vunpack.i.h.bf16 %v3802_v13  ;;  %v3803_v23 = vunpack.i.l.bf16 %v3802_v13  ;;  %v1802_v55 = vsel %vm1748_vm5, %v1737_v1, %v3799_v14  ;;  %v1801_v24 = vsel %vm1748_vm5, %v1736_v31, %v3798_v22  ;;  %3172 = vmatprep.mubr.msk.bf16.mxu0 %vm1683_vm4, %v1903_v28 }
 0x143   : > { %v3807_v43 = vpop.permute.xlu0 %3806  ;;  %v886_v7 = vsel %vm850_vm3, %v813_v40, %v814_v29  ;;  %v887_v6 = vsel %vm850_vm3, %v812_v50, %v813_v40 }
 0x144   : > { %v1866_v9 = vsel %vm1813_vm6, %v1801_v24, %v3803_v23  ;;  %v1867_v4 = vsel %vm1813_vm6, %v1802_v55, %v3804_v56  ;;  %v3809_v30 = vunpack.i.h.bf16 %v3807_v43  ;;  %v3808_v11 = vunpack.i.l.bf16 %v3807_v43 }
 0x145   : > { %v3812_v52 = vpop.permute.xlu1 %3811  ;;  %v1930_v0 = vpack.c.bf16 %v1867_v4, %v1866_v9  ;;  %v1905_v28 = vpack.c.bf16 %v886_v7, %v887_v6  ;;  %v1935_v24 = vpack.c.bf16 %v856_v53, %v857_v54  ;;  %v7357_v9 = vld [vmem:[#allocation49_spill] sm:$0xff]  ;;  %v816_v4 = vrot.slane %v5637_v51, 4 }
 0x146   : > { %v3814_v57 = vunpack.i.h.bf16 %v3812_v52  ;;  %v3813_v5 = vunpack.i.l.bf16 %v3812_v52  ;;  %v1709_v16 = vsel %vm1683_vm4, %v7351_v20, %v3809_v30  ;;  %v1708_v33 = vsel %vm1683_vm4, %v7348_v34, %v3808_v11 }
 0x147   : > { %2423 = vmatmul.mubr.bf16.gmra.mrb[36].mxu1 %v1930_v0  ;;  %v3817_v49 = vpop.permute.xlu0 %3816 }
 0x148   : > { %3187 = vmatprep.mubr.msk.bf16.mxu1 %vm1683_vm4, %v1933_v47  ;;  %v3819_v26 = vunpack.i.h.bf16 %v3817_v49  ;;  %v3818_v17 = vunpack.i.l.bf16 %v3817_v49  ;;  %v1773_v48 = vsel %vm1748_vm5, %v1708_v33, %v3813_v5  ;;  %v1774_v34 = vsel %vm1748_vm5, %v1709_v16, %v3814_v57 }
 0x149   : > { %v3822_v20 = vpop.permute.xlu1 %3821 }
 0x14a   : > { %v3824_v59 = vunpack.i.h.bf16 %v3822_v20  ;;  %v3823_v60 = vunpack.i.l.bf16 %v3822_v20  ;;  %v1838_v21 = vsel %vm1813_vm6, %v1773_v48, %v3818_v17  ;;  %v1839_v63 = vsel %vm1813_vm6, %v1774_v34, %v3819_v26 }
 0x14b   : > { %v3827_v46 = vpop.permute.xlu0 %3826  ;;  %v1902_v50 = vpack.c.bf16 %v1839_v63, %v1838_v21  ;;  %v845_v26 = vrot.slane %v5654_v58, 4 }
 0x14c   : > { %v3829_v18 = vunpack.i.h.bf16 %v3827_v46  ;;  %v3828_v14 = vunpack.i.l.bf16 %v3827_v46  ;;  %v1739_v13 = vsel %vm1683_vm4, %v7353_v62, %v3824_v59  ;;  %v1738_v1 = vsel %vm1683_vm4, %v7350_v39, %v3823_v60 }
 0x14d   : > { %v3832_v22 = vpop.permute.xlu1 %3831  ;;  %2311 = vmatmul.mubr.bf16.gmra.mrb[48].mxu0 %v1902_v50  ;;  %v815_v62 = vrot.slane %v7357_v9, 4  ;;  %v855_v53 = vsel %vm850_vm3, %v844_v61, %v845_v26 }
 0x14e   : > { %v3834_v31 = vunpack.i.h.bf16 %v3832_v22  ;;  %v3833_v56 = vunpack.i.l.bf16 %v3832_v22  ;;  %v1804_v23 = vsel %vm1748_vm5, %v1739_v13, %v3829_v18  ;;  %v1803_v55 = vsel %vm1748_vm5, %v1738_v1, %v3828_v14  ;;  %3173 = vmatprep.mubr.msk.bf16.mxu0 %vm1683_vm4, %v1905_v28 }
 0x14f   : > { %v3837_v25 = vpop.permute.xlu0 %3836  ;;  %v884_v33 = vsel %vm850_vm3, %v815_v62, %v816_v4  ;;  %v885_v49 = vsel %vm850_vm3, %v814_v29, %v815_v62 }
 0x150   : > { %v1868_v47 = vsel %vm1813_vm6, %v1803_v55, %v3833_v56  ;;  %v1869_v43 = vsel %vm1813_vm6, %v1804_v23, %v3834_v31  ;;  %v3839_v39 = vunpack.i.h.bf16 %v3837_v25  ;;  %v3838_v40 = vunpack.i.l.bf16 %v3837_v25 }
 0x151   : > { %v3842_v30 = vpop.permute.xlu1 %3841  ;;  %v1932_v11 = vpack.c.bf16 %v1869_v43, %v1868_v47  ;;  %v1907_v60 = vpack.c.bf16 %v884_v33, %v885_v49  ;;  %v817_v31 = vrot.slane %v5852_v38, 4  ;;  %v818_v55 = vrot.slane %v5865_v27, 4 }
 0x152   : > { %v3844_v52 = vunpack.i.h.bf16 %v3842_v30  ;;  %v3843_v0 = vunpack.i.l.bf16 %v3842_v30  ;;  %v1711_v57 = vsel %vm1683_vm4, %v7355_v45, %v3839_v39  ;;  %v1710_v5 = vsel %vm1683_vm4, %v7352_v35, %v3838_v40 }
 0x153   : > { %2431 = vmatmul.mubr.bf16.gmra.mrb[40].mxu1 %v1932_v11  ;;  %v3847_v16 = vpop.permute.xlu0 %3846  ;;  %v846_v45 = vrot.slane %v5720_v19, 4  ;;  %v882_v11 = vsel %vm850_vm3, %v817_v31, %v818_v55 }
 0x154   : > { %3188 = vmatprep.mubr.msk.bf16.mxu1 %vm1683_vm4, %v1935_v24  ;;  %v3849_v7 = vunpack.i.h.bf16 %v3847_v16  ;;  %v3848_v6 = vunpack.i.l.bf16 %v3847_v16  ;;  %v1775_v17 = vsel %vm1748_vm5, %v1710_v5, %v3843_v0  ;;  %v1776_v35 = vsel %vm1748_vm5, %v1711_v57, %v3844_v52 }
 0x155   : > { %v3852_v12 = vpop.permute.xlu1 %3851  ;;  %v854_v50 = vsel %vm850_vm3, %v845_v26, %v846_v45  ;;  %v883_v52 = vsel %vm850_vm3, %v816_v4, %v817_v31  ;;  %v847_v16 = vrot.slane %v5973_v3, 4 }
 0x156   : > { %v3854_v20 = vunpack.i.h.bf16 %v3852_v12  ;;  %v3853_v48 = vunpack.i.l.bf16 %v3852_v12  ;;  %v1840_v34 = vsel %vm1813_vm6, %v1775_v17, %v3848_v6  ;;  %v1841_v59 = vsel %vm1813_vm6, %v1776_v35, %v3849_v7 }
 0x157   : > { %v3857_v21 = vpop.permute.xlu0 %3856  ;;  %v1904_v29 = vpack.c.bf16 %v1841_v59, %v1840_v34  ;;  %v1909_v26 = vpack.c.bf16 %v882_v11, %v883_v52  ;;  %v853_v59 = vsel %vm850_vm3, %v846_v45, %v847_v16 }
 0x158   : > { %v3859_v63 = vunpack.i.h.bf16 %v3857_v21  ;;  %v3858_v28 = vunpack.i.l.bf16 %v3857_v21  ;;  %v1741_v54 = vsel %vm1683_vm4, %v7356_v10, %v3854_v20  ;;  %v1740_v18 = vsel %vm1683_vm4, %v7354_v37, %v3853_v48 }
 0x159   : > { %v3862_v46 = vpop.permute.xlu1 %3861  ;;  %2319 = vmatmul.mubr.bf16.gmra.mrb[52].mxu0 %v1904_v29  ;;  %v1937_v10 = vpack.c.bf16 %v854_v50, %v855_v53 }
 0x15a   : > { %v3864_v14 = vunpack.i.h.bf16 %v3862_v46  ;;  %v3863_v22 = vunpack.i.l.bf16 %v3862_v46  ;;  %v1806_v13 = vsel %vm1748_vm5, %v1741_v54, %v3859_v63  ;;  %v1805_v1 = vsel %vm1748_vm5, %v1740_v18, %v3858_v28  ;;  %3174 = vmatprep.mubr.msk.bf16.mxu0 %vm1683_vm4, %v1907_v60 }
 0x15b   : > { %v3867_v56 = vpop.permute.xlu0 %3866 }
 0x15c   : > { %v1870_v61 = vsel %vm1813_vm6, %v1805_v1, %v3863_v22  ;;  %v1871_v23 = vsel %vm1813_vm6, %v1806_v13, %v3864_v14  ;;  %v3869_v37 = vunpack.i.h.bf16 %v3867_v56  ;;  %v3868_v24 = vunpack.i.l.bf16 %v3867_v56 }
 0x15d   : > { %v3872_v25 = vpop.permute.xlu1 %3871  ;;  %v1934_v47 = vpack.c.bf16 %v1871_v23, %v1870_v61  ;;  %v7358_v23 = vrot.slane %v4233_v15, 4 }
 0x15e   : > { %v3874_v43 = vunpack.i.h.bf16 %v3872_v25  ;;  %v3873_v62 = vunpack.i.l.bf16 %v3872_v25  ;;  %v1713_v39 = vsel %vm1683_vm4, %v7357_v9, %v3869_v37  ;;  %v1712_v40 = vsel %vm1683_vm4, %v5465_v32, %v3868_v24 }
 0x15f   : > { %2439 = vmatmul.mubr.bf16.gmra.mrb[44].mxu1 %v1934_v47  ;;  %v3877_v30 = vpop.permute.xlu0 %3876  ;;  %v848_v9 = vrot.slane %v5986_v41, 4 }
 0x160   : > { %3189 = vmatprep.mubr.msk.bf16.mxu1 %vm1683_vm4, %v1937_v10  ;;  %v3879_v0 = vunpack.i.h.bf16 %v3877_v30  ;;  %v3878_v57 = vunpack.i.l.bf16 %v3877_v30  ;;  %v1777_v33 = vsel %vm1748_vm5, %v1712_v40, %v3873_v62  ;;  %v1778_v32 = vsel %vm1748_vm5, %v1713_v39, %v3874_v43 }
 0x161   : > { %v3882_v5 = vpop.permute.xlu1 %3881  ;;  %v852_v34 = vsel %vm850_vm3, %v847_v16, %v848_v9  ;;  %v7359_v16 = vrot.slane %v7325_v36, 4 }
 0x162   : > { %v3884_v49 = vunpack.i.h.bf16 %v3882_v5  ;;  %v3883_v7 = vunpack.i.l.bf16 %v3882_v5  ;;  %v1842_v6 = vsel %vm1813_vm6, %v1777_v33, %v3878_v57  ;;  %v1843_v12 = vsel %vm1813_vm6, %v1778_v32, %v3879_v0 }
 0x163   : > { %v3887_v17 = vpop.permute.xlu0 %3886  ;;  %v1906_v4 = vpack.c.bf16 %v1843_v12, %v1842_v6  ;;  %v1939_v54 = vpack.c.bf16 %v852_v34, %v853_v59 }
 0x164   : > { %v3889_v35 = vunpack.i.h.bf16 %v3887_v17  ;;  %v3888_v20 = vunpack.i.l.bf16 %v3887_v17  ;;  %v1743_v60 = vsel %vm1683_vm4, %v5654_v58, %v3884_v49  ;;  %v1742_v21 = vsel %vm1683_vm4, %v5491_v8, %v3883_v7 }
 0x165   : > { %v3892_v48 = vpop.permute.xlu1 %3891  ;;  %2327 = vmatmul.mubr.bf16.gmra.mrb[56].mxu0 %v1906_v4  ;;  %v819_v58 = vrot.slane %v6089_v44, 4 }
 0x166   : > { %v3894_v29 = vunpack.i.h.bf16 %v3892_v48  ;;  %v3893_v63 = vunpack.i.l.bf16 %v3892_v48  ;;  %v1808_v28 = vsel %vm1748_vm5, %v1743_v60, %v3889_v35  ;;  %v1807_v46 = vsel %vm1748_vm5, %v1742_v21, %v3888_v20  ;;  %3175 = vmatprep.mubr.msk.bf16.mxu0 %vm1683_vm4, %v1909_v26 }
 0x167   : > { %v880_v10 = vsel %vm850_vm3, %v819_v58, %v7358_v23  ;;  %v881_v37 = vsel %vm850_vm3, %v818_v55, %v819_v58 }
 0x168   : > { %v1872_v53 = vsel %vm1813_vm6, %v1807_v46, %v3893_v63  ;;  %v1873_v45 = vsel %vm1813_vm6, %v1808_v28, %v3894_v29  ;;  %v1911_v30 = vpack.c.bf16 %v880_v10, %v881_v37  ;;  %v3965_v37 = vld [vmem:[#allocation2] sm:$0xff]  }
 0x169   : > { %v3897_v50 = vpop.permute.xlu0 %3896  ;;  %v1936_v22 = vpack.c.bf16 %v1873_v45, %v1872_v53  ;;  %3377 = vmatprep.subr.bf16.mxu1 %v3965_v37 }
 0x16a   : > { %v3899_v18 = vunpack.i.h.bf16 %v3897_v50  ;;  %v3898_v14 = vunpack.i.l.bf16 %v3897_v50  ;;  %v3902_v8 = vpop.permute.xlu1 %3901  ;;  %3378 = vmatpush3.bf16.msra.mxu1 %v3965_v37 }
 0x16b   : > { %v3904_v13 = vunpack.i.h.bf16 %v3902_v8  ;;  %v3903_v1 = vunpack.i.l.bf16 %v3902_v8  ;;  %2447 = vmatmul.mubr.bf16.gmra.mrb[48].mxu1 %v1936_v22 }
 0x16c   : > { %v1715_v31 = vsel %vm1683_vm4, %v5852_v38, %v3899_v18  ;;  %v1714_v56 = vsel %vm1683_vm4, %v5637_v51, %v3898_v14  ;;  %3190 = vmatprep.mubr.msk.bf16.mxu1 %vm1683_vm4, %v1939_v54  ;;  %v849_v38 = vrot.slane %v6190_v42, 4 }
 0x16d   : > { %v3907_v61 = vpop.permute.xlu0 %3906  ;;  %v1779_v43 = vsel %vm1748_vm5, %v1714_v56, %v3903_v1  ;;  %v1780_v51 = vsel %vm1748_vm5, %v1715_v31, %v3904_v13 }
 0x16e   : > { %v3909_v24 = vunpack.i.h.bf16 %v3907_v61  ;;  %v3908_v25 = vunpack.i.l.bf16 %v3907_v61  ;;  %v851_v5 = vsel %vm850_vm3, %v848_v9, %v849_v38  ;;  %v914_v33 = vsel %vm850_vm3, %v849_v38, %v7359_v16 }
 0x16f   : > { %v3912_v47 = vpop.permute.xlu1 %3911  ;;  %v1941_v17 = vpack.c.bf16 %v914_v33, %v851_v5 }
 0x170   : > { %v3914_v62 = vunpack.i.h.bf16 %v3912_v47  ;;  %v3913_v39 = vunpack.i.l.bf16 %v3912_v47  ;;  %v1844_v40 = vsel %vm1813_vm6, %v1779_v43, %v3908_v25  ;;  %v1845_v15 = vsel %vm1813_vm6, %v1780_v51, %v3909_v24  ;;  %v1963_v24 = vld [vmem:[%s6942_s2 + $0x8] sm:$0xff] }
 0x171   : > { %v3917_v11 = vpop.permute.xlu0 %3916  ;;  %v1908_v52 = vpack.c.bf16 %v1845_v15, %v1844_v40  ;;  %v1964_v15 = vld [vmem:[%s6942_s2 + $0x10] sm:$0xff] }
 0x172   : > { %v3919_v0 = vunpack.i.h.bf16 %v3917_v11  ;;  %v3918_v55 = vunpack.i.l.bf16 %v3917_v11  ;;  %v1745_v32 = vsel %vm1683_vm4, %v5973_v3, %v3914_v62  ;;  %v1744_v49 = vsel %vm1683_vm4, %v5720_v19, %v3913_v39  ;;  %v3966_v39 = vld [vmem:[#allocation2 + $0x8] sm:$0xff]   ;;  %v1965_v11 = vld [vmem:[%s6942_s2 + $0x18] sm:$0xff] }
 0x173   : > { %v3922_v57 = vpop.permute.xlu1 %3921  ;;  %2335 = vmatmul.mubr.bf16.gmra.mrb[60].mxu0 %v1908_v52  ;;  %3379 = vmatprep.subr.bf16.mxu1 %v3966_v39 }
 0x174   : > { %v3924_v7 = vunpack.i.h.bf16 %v3922_v57  ;;  %v3923_v6 = vunpack.i.l.bf16 %v3922_v57  ;;  %v1810_v12 = vsel %vm1748_vm5, %v1745_v32, %v3919_v0  ;;  %v1809_v26 = vsel %vm1748_vm5, %v1744_v49, %v3918_v55  ;;  %3176 = vmatprep.mubr.msk.bf16.mxu0 %vm1683_vm4, %v1911_v30  ;;  %3380 = vmatpush3.bf16.msra.mxu1 %v3966_v39 }
 0x175   : > { %v3927_v9 = vpop.permute.xlu0 %3926 }
 0x176   : > { %v1874_v36 = vsel %vm1813_vm6, %v1809_v26, %v3923_v6  ;;  %v1875_v2 = vsel %vm1813_vm6, %v1810_v12, %v3924_v7  ;;  %v3929_v4 = vunpack.i.h.bf16 %v3927_v9  ;;  %v3928_v3 = vunpack.i.l.bf16 %v3927_v9  ;;  %v1966_v12 = vld [vmem:[%s6942_s2 + $0x20] sm:$0xff]  ;;  %v1967_v9 = vld [vmem:[%s6942_s2 + $0x28] sm:$0xff] }
 0x177   : > { %v3932_v35 = vpop.permute.xlu1 %3931  ;;  %v1938_v20 = vpack.c.bf16 %v1875_v2, %v1874_v36  ;;  %v1996_v2 = vld [vmem:[%s6942_s2 + $0x110] sm:$0xff] }
 0x178   : > { %v3934_v19 = vunpack.i.h.bf16 %v3932_v35  ;;  %v3933_v48 = vunpack.i.l.bf16 %v3932_v35  ;;  %v1717_v34 = vsel %vm1683_vm4, %v6089_v44, %v3929_v4  ;;  %v1716_v59 = vsel %vm1683_vm4, %v5865_v27, %v3928_v3  ;;  %v1997_v3 = vld [vmem:[%s6942_s2 + $0x118] sm:$0xff] }
 0x179   : > { %2455 = vmatmul.mubr.bf16.gmra.mrb[52].mxu1 %v1938_v20  ;;  %v3937_v60 = vpop.permute.xlu0 %3936 }
 0x17a   : > { %3191 = vmatprep.mubr.msk.bf16.mxu1 %vm1683_vm4, %v1941_v17  ;;  %v3939_v21 = vunpack.i.h.bf16 %v3937_v60  ;;  %v3938_v29 = vunpack.i.l.bf16 %v3937_v60  ;;  %v1781_v28 = vsel %vm1748_vm5, %v1716_v59, %v3933_v48  ;;  %v1782_v46 = vsel %vm1748_vm5, %v1717_v34, %v3934_v19  ;;  %v3967_v48 = vld [vmem:[#allocation2 + $0x10] sm:$0xff]   ;;  %v6621_v34 = vld [vmem:[%s6943_s3] ss:$0 sm:$0xff] }
 0x17b   : > { %v3942_v63 = vpop.permute.xlu1 %3941  ;;  %3381 = vmatprep.subr.bf16.mxu1 %v3967_v48 }
 0x17c   : > { %v3944_v50 = vunpack.i.h.bf16 %v3942_v63  ;;  %v3943_v53 = vunpack.i.l.bf16 %v3942_v63  ;;  %v1846_v45 = vsel %vm1813_vm6, %v1781_v28, %v3938_v29  ;;  %v1847_v44 = vsel %vm1813_vm6, %v1782_v46, %v3939_v21  ;;  %3382 = vmatpush3.bf16.msra.mxu1 %v3967_v48 }
 0x17d   : > { %v3947_v54 = vpop.permute.xlu0 %3946  ;;  %v1910_v58 = vpack.c.bf16 %v1847_v44, %v1846_v45 }
 0x17e   : > { %v3949_v27 = vunpack.i.h.bf16 %v3947_v54  ;;  %v3948_v18 = vunpack.i.l.bf16 %v3947_v54  ;;  %v1747_v8 = vsel %vm1683_vm4, %v6190_v42, %v3944_v50  ;;  %v1746_v22 = vsel %vm1683_vm4, %v5986_v41, %v3943_v53  ;;  %v1962_v41 = vld [vmem:[%s6942_s2] sm:$0xff] }
 0x17f   : > { %v3952_v14 = vpop.permute.xlu1 %3951  ;;  %2343 = vmatmul.mubr.bf16.gmra.mrb[64].mxu0 %v1910_v58 }
 0x180   : > { %v3954_v13 = vunpack.i.h.bf16 %v3952_v14  ;;  %v3953_v1 = vunpack.i.l.bf16 %v3952_v14  ;;  %v1812_v31 = vsel %vm1748_vm5, %v1747_v8, %v3949_v27  ;;  %v1811_v56 = vsel %vm1748_vm5, %v1746_v22, %v3948_v18  ;;  %v1968_v18 = vld [vmem:[%s6942_s2 + $0x30] sm:$0xff]  ;;  %v1969_v8 = vld [vmem:[%s6942_s2 + $0x38] sm:$0xff] }
 0x182   : > { %v1876_v61 = vsel %vm1813_vm6, %v1811_v56, %v3953_v1  ;;  %v1877_v23 = vsel %vm1813_vm6, %v1812_v31, %v3954_v13 }
 0x183   : > { %v1940_v10 = vpack.c.bf16 %v1877_v23, %v1876_v61 }
 0x185   : > { %2463 = vmatmul.mubr.bf16.gmra.mrb[56].mxu1 %v1940_v10 }
 0x195   : > { %v2216_v42 = vpop.f32.mrb[0].mxu0 }
 0x196   : > { %v2218_v25 = vpop.f32.mrb[1].mxu0  ;;  %v2217_v38 = vadd.f32 %v2216_v42, %v1962_v41  ;;  %v1998_v42 = vld [vmem:[%s6942_s2 + $0x120] sm:$0xff] }
 0x197   : > { %v2219_v47 = vpop.f32.mrb[2].mxu0  ;;  %v1999_v25 = vld [vmem:[%s6942_s2 + $0x128] sm:$0xff] }
 0x198   : > { %v2220_v43 = vadd.f32 %v2219_v47, %v1963_v24  ;;  %v2221_v51 = vpop.f32.mrb[3].mxu0 }
 0x19a   : > { %v2471_v62 = vmax.f32 %v2217_v38, %v2220_v43 }
 0x19c   : > { %v2472_v40 = vrot.slane %v2471_v62, 4 }
 0x19d   : > { %v2224_v30 = vpop.f32.mrb[4].mxu0 }
 0x19e   : > { %v2473_v52 = vmax.f32 %v2471_v62, %v2472_v40  ;;  %v2226_v0 = vpop.f32.mrb[5].mxu0  ;;  %v2225_v5 = vadd.f32 %v2224_v30, %v1964_v15 }
 0x19f   : > { %v2227_v55 = vpop.f32.mrb[6].mxu0 }
 0x1a0   : > { %v2474_v57 = vrot.slane %v2473_v52, 2  ;;  %v2228_v16 = vadd.f32 %v2227_v55, %v1965_v11  ;;  %v2229_v33 = vpop.f32.mrb[7].mxu0 }
 0x1a2   : > { %v2475_v32 = vmax.f32 %v2473_v52, %v2474_v57  ;;  %v2478_v49 = vmax.f32 %v2225_v5, %v2228_v16 }
 0x1a4   : > { %v2476_v7 = vrot.slane %v2475_v32, 1  ;;  %v2479_v6 = vrot.slane %v2478_v49, 4 }
 0x1a5   : > { %v2232_v26 = vpop.f32.mrb[8].mxu0 }
 0x1a6   : > { %v2480_v36 = vmax.f32 %v2478_v49, %v2479_v6  ;;  %v2234_v4 = vpop.f32.mrb[9].mxu0  ;;  %v2477_v35 = vmax.f32 %v2475_v32, %v2476_v7  ;;  %v2233_v60 = vadd.f32 %v2232_v26, %v1966_v12  ;;  %v1970_v6 = vld [vmem:[%s6942_s2 + $0x40] sm:$0xff]  ;;  %v1971_v26 = vld [vmem:[%s6942_s2 + $0x48] sm:$0xff] }
 0x1a7   : > { %v2235_v19 = vpop.f32.mrb[10].mxu0 }
 0x1a8   : > { %v2352_v17 = vpop.f32.mrb[0].mxu1  ;;  %v2481_v59 = vrot.slane %v2480_v36, 2  ;;  %v2236_v21 = vadd.f32 %v2235_v19, %v1967_v9  ;;  %v2237_v63 = vpop.f32.mrb[11].mxu0  ;;  %v2702_v44 = vadd.f32 %v6621_v34, %v2477_v35 }
 0x1a9   : > { %v2354_v20 = vpop.f32.mrb[1].mxu1  ;;  %v2353_v28 = vadd.f32 %v2352_v17, %v1996_v2  ;;  %v2001_v63 = vld [vmem:[%s6942_s2 + $0x138] sm:$0xff] }
 0x1aa   : > { %v2355_v29 = vpop.f32.mrb[2].mxu1  ;;  %v2482_v53 = vmax.f32 %v2480_v36, %v2481_v59  ;;  %v2485_v45 = vmax.f32 %v2233_v60, %v2236_v21  ;;  %v2734_v31 = vmax.f32 %v2702_v44, 0.0  ;;  %v2000_v21 = vld [vmem:[%s6942_s2 + $0x130] sm:$0xff] }
 0x1ab   : > { %v2356_v46 = vadd.f32 %v2355_v29, %v1997_v3  ;;  %v2357_v50 = vpop.f32.mrb[3].mxu1  ;;  %v3968_v3 = vld [vmem:[#allocation2 + $0x18] sm:$0xff]  }
 0x1ac   : > { %v2483_v58 = vrot.slane %v2482_v53, 1  ;;  %v2486_v27 = vrot.slane %v2485_v45, 4  ;;  %v2766_v62 = vpack.c.bf16 %v2734_v31, %v2734_v31  ;;  %3383 = vmatprep.subr.bf16.mxu1 %v3968_v3 }
 0x1ad   : > { %v6624_v54 = vmax.f32 %v2353_v28, %v2356_v46  ;;  %3384 = vmatpush3.bf16.msra.mxu1 %v3968_v3 }
 0x1ae   : > { %v2484_v22 = vmax.f32 %v2482_v53, %v2483_v58  ;;  %v2487_v13 = vmax.f32 %v2485_v45, %v2486_v27  ;;  %v2853_v33 = vunpack.c.l.b16 %v2766_v62 }
 0x1b0   : > { %v2240_v14 = vpop.f32.mrb[12].mxu0  ;;  %v2703_v61 = vadd.f32 %v6621_v34, %v2484_v22  ;;  %v2488_v23 = vrot.slane %v2487_v13, 2 }
 0x1b1   : > { %v2242_v1 = vpop.f32.mrb[13].mxu0  ;;  %v2241_v10 = vadd.f32 %v2240_v14, %v1968_v18 }
 0x1b2   : > { %v2243_v56 = vpop.f32.mrb[14].mxu0  ;;  %v2735_v47 = vmax.f32 %v2703_v61, 0.0  ;;  %v2489_v38 = vmax.f32 %v2487_v13, %v2488_v23  ;;  %v1972_v61 = vld [vmem:[%s6942_s2 + $0x50] sm:$0xff] }
 0x1b3   : > { %v2244_v37 = vadd.f32 %v2243_v56, %v1969_v8  ;;  %v2245_v41 = vpop.f32.mrb[15].mxu0 }
 0x1b4   : > { %v2767_v15 = vpack.c.bf16 %v2735_v47, %v2735_v47  ;;  %v2490_v30 = vrot.slane %v2489_v38, 1 }
 0x1b5   : > { %v2492_v43 = vmax.f32 %v2241_v10, %v2244_v37  ;;  %v1973_v10 = vld [vmem:[%s6942_s2 + $0x58] sm:$0xff]  ;;  %v3969_v37 = vld [vmem:[#allocation2 + $0x20] sm:$0xff]  }
 0x1b6   : > { %v2360_v24 = vpop.f32.mrb[4].mxu1  ;;  %v2854_v55 = vunpack.c.l.b16 %v2767_v15  ;;  %v2491_v57 = vmax.f32 %v2489_v38, %v2490_v30  ;;  %3385 = vmatprep.subr.bf16.mxu1 %v3969_v37  ;;  %v2002_v15 = vld [vmem:[%s6942_s2 + $0x140] sm:$0xff] }
 0x1b7   : > { %v2362_v51 = vpop.f32.mrb[5].mxu1  ;;  %v2361_v39 = vadd.f32 %v2360_v24, %v1998_v42  ;;  %v2493_v11 = vrot.slane %v2492_v43, 4  ;;  %3386 = vmatpush3.bf16.msra.mxu1 %v3969_v37 }
 0x1b8   : > { %v2363_v40 = vpop.f32.mrb[6].mxu1  ;;  %v2885_v32 = vrot.slane %v2854_v55, 7  ;;  %v2704_v49 = vadd.f32 %v6621_v34, %v2491_v57 }
 0x1b9   : > { %v2364_v52 = vadd.f32 %v2363_v40, %v1999_v25  ;;  %v2365_v0 = vpop.f32.mrb[7].mxu1  ;;  %v2494_v5 = vmax.f32 %v2492_v43, %v2493_v11  ;;  %v2003_v11 = vld [vmem:[%s6942_s2 + $0x148] sm:$0xff] }
 0x1ba   : > { %v2887_v36 = vsel %vm2886_vm7, %v2885_v32, %v2853_v33  ;;  %v2736_v2 = vmax.f32 %v2704_v49, 0.0 }
 0x1bb   : > { %v6639_v16 = vmax.f32 %v2361_v39, %v2364_v52  ;;  %v2495_v7 = vrot.slane %v2494_v5, 2 }
 0x1bc   : > { %v2768_v48 = vpack.c.bf16 %v2736_v2, %v2736_v2 }
 0x1bd   : > { %v2248_v12 = vpop.f32.mrb[16].mxu0  ;;  %v2496_v17 = vmax.f32 %v2494_v5, %v2495_v7 }
 0x1be   : > { %v2250_v9 = vpop.f32.mrb[17].mxu0  ;;  %v2249_v35 = vadd.f32 %v2248_v12, %v1970_v6  ;;  %v2855_v28 = vunpack.c.l.b16 %v2768_v48 }
 0x1bf   : > { %v2251_v4 = vpop.f32.mrb[18].mxu0  ;;  %v2497_v59 = vrot.slane %v2496_v17, 1 }
 0x1c0   : > { %v2252_v20 = vadd.f32 %v2251_v4, %v1971_v26  ;;  %v2253_v19 = vpop.f32.mrb[19].mxu0  ;;  %v2888_v44 = vrot.slane %v2855_v28, 6  ;;  %v3970_v4 = vld [vmem:[#allocation2 + $0x28] sm:$0xff]  }
 0x1c1   : > { %v2498_v46 = vmax.f32 %v2496_v17, %v2497_v59  ;;  %v1975_v17 = vld [vmem:[%s6942_s2 + $0x68] sm:$0xff]  ;;  %3387 = vmatprep.subr.bf16.mxu1 %v3970_v4 }
 0x1c2   : > { %v2499_v60 = vmax.f32 %v2249_v35, %v2252_v20  ;;  %v2890_v1 = vsel %vm2889_vm8, %v2888_v44, %v2887_v36  ;;  %v1974_v36 = vld [vmem:[%s6942_s2 + $0x60] sm:$0xff]  ;;  %3388 = vmatpush3.bf16.msra.mxu1 %v3970_v4 }
 0x1c3   : > { %v2368_v29 = vpop.f32.mrb[8].mxu1  ;;  %v2705_v58 = vadd.f32 %v6621_v34, %v2498_v46  ;;  %v2004_v46 = vld [vmem:[%s6942_s2 + $0x150] sm:$0xff]  ;;  %v1978_v4 = vld [vmem:[%s6942_s2 + $0x80] sm:$0xff] }
 0x1c4   : > { %v2370_v50 = vpop.f32.mrb[9].mxu1  ;;  %v2500_v53 = vrot.slane %v2499_v60, 4  ;;  %v2369_v27 = vadd.f32 %v2368_v29, %v2000_v21 }
 0x1c5   : > { %v2371_v45 = vpop.f32.mrb[10].mxu1  ;;  %v2737_v22 = vmax.f32 %v2705_v58, 0.0 }
 0x1c6   : > { %v2372_v18 = vadd.f32 %v2371_v45, %v2001_v63  ;;  %v2373_v14 = vpop.f32.mrb[11].mxu1  ;;  %v2501_v8 = vmax.f32 %v2499_v60, %v2500_v53  ;;  %v2005_v53 = vld [vmem:[%s6942_s2 + $0x158] sm:$0xff] }
 0x1c7   : > { %v2769_v56 = vpack.c.bf16 %v2737_v22, %v2737_v22 }
 0x1c8   : > { %v6656_v13 = vmax.f32 %v2369_v27, %v2372_v18  ;;  %v2502_v31 = vrot.slane %v2501_v8, 2 }
 0x1c9   : > { %v2856_v24 = vunpack.c.l.b16 %v2769_v56 }
 0x1ca   : > { %v2503_v41 = vmax.f32 %v2501_v8, %v2502_v31 }
 0x1cb   : > { %v2891_v62 = vrot.slane %v2856_v24, 5 }
 0x1cc   : > { %v2504_v47 = vrot.slane %v2503_v41, 1 }
 0x1cd   : > { %v2256_v23 = vpop.f32.mrb[20].mxu0  ;;  %v2893_v0 = vsel %vm2892_vm9, %v2891_v62, %v2890_v1 }
 0x1ce   : > { %v2258_v42 = vpop.f32.mrb[21].mxu0  ;;  %v2257_v38 = vadd.f32 %v2256_v23, %v1972_v61  ;;  %v2505_v39 = vmax.f32 %v2503_v41, %v2504_v47  ;;  %v1977_v41 = vld [vmem:[%s6942_s2 + $0x78] sm:$0xff] }
 0x1cf   : > { %v2259_v25 = vpop.f32.mrb[22].mxu0 }
 0x1d0   : > { %v2260_v43 = vadd.f32 %v2259_v25, %v1973_v10  ;;  %v2261_v51 = vpop.f32.mrb[23].mxu0  ;;  %v2706_v55 = vadd.f32 %v6621_v34, %v2505_v39  ;;  %v1976_v10 = vld [vmem:[%s6942_s2 + $0x70] sm:$0xff] }
 0x1d2   : > { %v2506_v40 = vmax.f32 %v2257_v38, %v2260_v43  ;;  %v2738_v7 = vmax.f32 %v2706_v55, 0.0 }
 0x1d3   : > { %v2376_v30 = vpop.f32.mrb[12].mxu1 }
 0x1d4   : > { %v2378_v52 = vpop.f32.mrb[13].mxu1  ;;  %v2507_v57 = vrot.slane %v2506_v40, 4  ;;  %v2377_v33 = vadd.f32 %v2376_v30, %v2002_v15  ;;  %v2770_v26 = vpack.c.bf16 %v2738_v7, %v2738_v7  ;;  %v2006_v30 = vld [vmem:[%s6942_s2 + $0x160] sm:$0xff] }
 0x1d5   : > { %v2379_v5 = vpop.f32.mrb[14].mxu1  ;;  %v2007_v52 = vld [vmem:[%s6942_s2 + $0x168] sm:$0xff] }
 0x1d6   : > { %v2380_v32 = vadd.f32 %v2379_v5, %v2003_v11  ;;  %v2381_v49 = vpop.f32.mrb[15].mxu1  ;;  %v2508_v6 = vmax.f32 %v2506_v40, %v2507_v57  ;;  %v2857_v3 = vunpack.c.l.b16 %v2770_v26 }
 0x1d8   : > { %v6673_v12 = vmax.f32 %v2377_v33, %v2380_v32  ;;  %v2509_v9 = vrot.slane %v2508_v6, 2  ;;  %v2894_v48 = vrot.slane %v2857_v3, 4 }
 0x1da   : > { %v2264_v2 = vpop.f32.mrb[24].mxu0  ;;  %v2510_v35 = vmax.f32 %v2508_v6, %v2509_v9  ;;  %v2896_v45 = vsel %vm2895_vm10, %v2894_v48, %v2893_v0  ;;  %v3971_v6 = vld [vmem:[#allocation2 + $0x30] sm:$0xff]  }
 0x1db   : > { %v2266_v20 = vpop.f32.mrb[25].mxu0  ;;  %v2265_v60 = vadd.f32 %v2264_v2, %v1974_v36  ;;  %3389 = vmatprep.subr.bf16.mxu1 %v3971_v6 }
 0x1dc   : > { %v2267_v19 = vpop.f32.mrb[26].mxu0  ;;  %v2511_v59 = vrot.slane %v2510_v35, 1  ;;  %3390 = vmatpush3.bf16.msra.mxu1 %v3971_v6  ;;  %v3972_v20 = vld [vmem:[#allocation2 + $0x38] sm:$0xff]  }
 0x1dd   : > { %v2268_v21 = vadd.f32 %v2267_v19, %v1975_v17  ;;  %v2269_v29 = vpop.f32.mrb[27].mxu0  ;;  %3391 = vmatprep.subr.bf16.mxu1 %v3972_v20 }
 0x1de   : > { %v2512_v63 = vmax.f32 %v2510_v35, %v2511_v59  ;;  %v1979_v35 = vld [vmem:[%s6942_s2 + $0x88] sm:$0xff] }
 0x1df   : > { %v2513_v28 = vmax.f32 %v2265_v60, %v2268_v21 }
 0x1e0   : > { %v2384_v50 = vpop.f32.mrb[16].mxu1  ;;  %v2707_v58 = vadd.f32 %v6621_v34, %v2512_v63  ;;  %3392 = vmatpush3.bf16.msra.mxu1 %v3972_v20 }
 0x1e1   : > { %v2386_v44 = vpop.f32.mrb[17].mxu1  ;;  %v2514_v27 = vrot.slane %v2513_v28, 4  ;;  %v2385_v14 = vadd.f32 %v2384_v50, %v2004_v46 }
 0x1e2   : > { %v2387_v18 = vpop.f32.mrb[18].mxu1  ;;  %v2739_v1 = vmax.f32 %v2707_v58, 0.0  ;;  %v2009_v58 = vld [vmem:[%s6942_s2 + $0x178] sm:$0xff] }
 0x1e3   : > { %v2388_v8 = vadd.f32 %v2387_v18, %v2005_v53  ;;  %v2389_v22 = vpop.f32.mrb[19].mxu1  ;;  %v2515_v31 = vmax.f32 %v2513_v28, %v2514_v27 }
 0x1e4   : > { %v2771_v61 = vpack.c.bf16 %v2739_v1, %v2739_v1  ;;  %v2272_v37 = vpop.f32.mrb[28].mxu0 }
 0x1e5   : > { %v6689_v56 = vmax.f32 %v2385_v14, %v2388_v8  ;;  %v2516_v23 = vrot.slane %v2515_v31, 2  ;;  %v2274_v25 = vpop.f32.mrb[29].mxu0  ;;  %v2273_v51 = vadd.f32 %v2272_v37, %v1976_v10 }
 0x1e6   : > { %v2858_v42 = vunpack.c.l.b16 %v2771_v61  ;;  %v2275_v47 = vpop.f32.mrb[30].mxu0 }
 0x1e7   : > { %v2517_v24 = vmax.f32 %v2515_v31, %v2516_v23  ;;  %v2276_v62 = vadd.f32 %v2275_v47, %v1977_v41  ;;  %v2277_v39 = vpop.f32.mrb[31].mxu0  ;;  %v1981_v47 = vld [vmem:[%s6942_s2 + $0x98] sm:$0xff] }
 0x1e8   : > { %v2897_v38 = vrot.slane %v2858_v42, 3 }
 0x1e9   : > { %v2518_v43 = vrot.slane %v2517_v24, 1  ;;  %v2520_v15 = vmax.f32 %v2273_v51, %v2276_v62 }
 0x1ea   : > { %v2392_v11 = vpop.f32.mrb[20].mxu1  ;;  %v2899_v0 = vsel %vm2898_vm11, %v2897_v38, %v2896_v45  ;;  %v2008_v45 = vld [vmem:[%s6942_s2 + $0x170] sm:$0xff] }
 0x1eb   : > { %v2519_v40 = vmax.f32 %v2517_v24, %v2518_v43  ;;  %v2394_v55 = vpop.f32.mrb[21].mxu1  ;;  %v2521_v5 = vrot.slane %v2520_v15, 4  ;;  %v2393_v32 = vadd.f32 %v2392_v11, %v2006_v30  ;;  %v1980_v24 = vld [vmem:[%s6942_s2 + $0x90] sm:$0xff] }
 0x1ec   : > { %v2395_v33 = vpop.f32.mrb[22].mxu1  ;;  %v2011_v55 = vld [vmem:[%s6942_s2 + $0x188] sm:$0xff] }
 0x1ed   : > { %v2708_v57 = vadd.f32 %v6621_v34, %v2519_v40  ;;  %v2396_v49 = vadd.f32 %v2395_v33, %v2007_v52  ;;  %v2397_v7 = vpop.f32.mrb[23].mxu1  ;;  %v2522_v9 = vmax.f32 %v2520_v15, %v2521_v5  ;;  %v2010_v52 = vld [vmem:[%s6942_s2 + $0x180] sm:$0xff] }
 0x1ef   : > { %v2740_v26 = vmax.f32 %v2708_v57, 0.0  ;;  %v6705_v36 = vmax.f32 %v2393_v32, %v2396_v49  ;;  %v2523_v17 = vrot.slane %v2522_v9, 2 }
 0x1f0   : > { %v2280_v3 = vpop.f32.mrb[32].mxu0 }
 0x1f1   : > { %v2772_v2 = vpack.c.bf16 %v2740_v26, %v2740_v26  ;;  %v2524_v48 = vmax.f32 %v2522_v9, %v2523_v17  ;;  %v2282_v59 = vpop.f32.mrb[33].mxu0  ;;  %v2281_v29 = vadd.f32 %v2280_v3, %v1978_v4 }
 0x1f2   : > { %v2283_v60 = vpop.f32.mrb[34].mxu0 }
 0x1f3   : > { %v2859_v19 = vunpack.c.l.b16 %v2772_v2  ;;  %v2525_v21 = vrot.slane %v2524_v48, 1  ;;  %v2284_v63 = vadd.f32 %v2283_v60, %v1979_v35  ;;  %v2285_v28 = vpop.f32.mrb[35].mxu0  ;;  %v1982_v35 = vld [vmem:[%s6942_s2 + $0xa0] sm:$0xff] }
 0x1f5   : > { %v2900_v46 = vrot.slane %v2859_v19, 2  ;;  %v2526_v50 = vmax.f32 %v2524_v48, %v2525_v21  ;;  %v2527_v53 = vmax.f32 %v2281_v29, %v2284_v63  ;;  %v1983_v19 = vld [vmem:[%s6942_s2 + $0xa8] sm:$0xff] }
 0x1f6   : > { %v2400_v44 = vpop.f32.mrb[24].mxu1 }
 0x1f7   : > { %v2902_v27 = vsel %vm2901_vm12, %v2900_v46, %v2899_v0  ;;  %v2402_v18 = vpop.f32.mrb[25].mxu1  ;;  %v2709_v14 = vadd.f32 %v6621_v34, %v2526_v50  ;;  %v2528_v8 = vrot.slane %v2527_v53, 4  ;;  %v2401_v1 = vadd.f32 %v2400_v44, %v2008_v45 }
 0x1f8   : > { %v2403_v22 = vpop.f32.mrb[26].mxu1  ;;  %v2013_v18 = vld [vmem:[%s6942_s2 + $0x198] sm:$0xff] }
 0x1f9   : > { %v2404_v31 = vadd.f32 %v2403_v22, %v2009_v58  ;;  %v2405_v61 = vpop.f32.mrb[27].mxu1  ;;  %v2529_v23 = vmax.f32 %v2527_v53, %v2528_v8  ;;  %v2741_v10 = vmax.f32 %v2709_v14, 0.0  ;;  %v2012_v58 = vld [vmem:[%s6942_s2 + $0x190] sm:$0xff] }
 0x1fb   : > { %v6721_v37 = vmax.f32 %v2401_v1, %v2404_v31  ;;  %v2530_v41 = vrot.slane %v2529_v23, 2  ;;  %v2773_v42 = vpack.c.bf16 %v2741_v10, %v2741_v10 }
 0x1fc   : > { %v2288_v25 = vpop.f32.mrb[36].mxu0 }
 0x1fd   : > { %v2290_v38 = vpop.f32.mrb[37].mxu0  ;;  %v2860_v43 = vunpack.c.l.b16 %v2773_v42  ;;  %v2531_v51 = vmax.f32 %v2529_v23, %v2530_v41  ;;  %v2289_v39 = vadd.f32 %v2288_v25, %v1980_v24 }
 0x1fe   : > { %v2291_v62 = vpop.f32.mrb[38].mxu0 }
 0x1ff   : > { %v2292_v40 = vadd.f32 %v2291_v62, %v1981_v47  ;;  %v2293_v15 = vpop.f32.mrb[39].mxu0  ;;  %v2903_v30 = vrot.slane %v2860_v43, 1  ;;  %v2532_v5 = vrot.slane %v2531_v51, 1 }
 0x200   : > { %v1985_v15 = vld [vmem:[%s6942_s2 + $0xb8] sm:$0xff] }
 0x201   : > { %v2534_v11 = vmax.f32 %v2289_v39, %v2292_v40  ;;  %v6736_v57 = vsel %vm2904_vm13, %v2903_v30, %v2902_v27  ;;  %v2533_v2 = vmax.f32 %v2531_v51, %v2532_v5  ;;  %v1984_v39 = vld [vmem:[%s6942_s2 + $0xb0] sm:$0xff] }
 0x202   : > { %v2408_v0 = vpop.f32.mrb[28].mxu1 }
 0x203   : > { %v2410_v33 = vpop.f32.mrb[29].mxu1  ;;  %v2535_v32 = vrot.slane %v2534_v11, 4  ;;  %v2409_v7 = vadd.f32 %v2408_v0, %v2010_v52  ;;  %v2710_v60 = vadd.f32 %v6621_v34, %v2533_v2 }
 0x204   : > { %v2411_v49 = vpop.f32.mrb[30].mxu1 }
 0x205   : > { %v2412_v6 = vadd.f32 %v2411_v49, %v2011_v55  ;;  %v2413_v26 = vpop.f32.mrb[31].mxu1  ;;  %v2536_v9 = vmax.f32 %v2534_v11, %v2535_v32  ;;  %v2742_v14 = vmax.f32 %v2710_v60, 0.0 }
 0x207   : > { %v2639_v17 = vmax.f32 %v2409_v7, %v2412_v6  ;;  %v2537_v4 = vrot.slane %v2536_v9, 2  ;;  %v2774_v25 = vpack.c.bf16 %v2742_v14, %v2742_v14 }
 0x208   : > { %v2296_v20 = vpop.f32.mrb[40].mxu0 }
 0x209   : > { %v2640_v3 = vrot.slane %v2639_v17, 4  ;;  %v2538_v48 = vmax.f32 %v2536_v9, %v2537_v4  ;;  %v2298_v59 = vpop.f32.mrb[41].mxu0  ;;  %v2297_v28 = vadd.f32 %v2296_v20, %v1982_v35  ;;  %v2861_v0 = vunpack.c.l.b16 %v2774_v25  ;;  %v2015_v20 = vld [vmem:[%s6942_s2 + $0x1a8] sm:$0xff] }
 0x20a   : > { %v2299_v29 = vpop.f32.mrb[42].mxu0 }
 0x20b   : > { %v2641_v21 = vmax.f32 %v2639_v17, %v2640_v3  ;;  %v2539_v63 = vrot.slane %v2538_v48, 1  ;;  %v2300_v46 = vadd.f32 %v2299_v29, %v1983_v19  ;;  %v2301_v50 = vpop.f32.mrb[43].mxu0  ;;  %v2014_v3 = vld [vmem:[%s6942_s2 + $0x1a0] sm:$0xff] }
 0x20d   : > { %v2642_v53 = vrot.slane %v2641_v21, 2  ;;  %v2540_v45 = vmax.f32 %v2538_v48, %v2539_v63  ;;  %v2541_v44 = vmax.f32 %v2297_v28, %v2300_v46 }
 0x20e   : > { %v2416_v27 = vpop.f32.mrb[32].mxu1 }
 0x20f   : > { %v2643_v8 = vmax.f32 %v2641_v21, %v2642_v53  ;;  %v2418_v22 = vpop.f32.mrb[33].mxu1  ;;  %v2711_v1 = vadd.f32 %v6621_v34, %v2540_v45  ;;  %v2542_v31 = vrot.slane %v2541_v44, 4  ;;  %v2417_v23 = vadd.f32 %v2416_v27, %v2012_v58 }
 0x210   : > { %v2419_v61 = vpop.f32.mrb[34].mxu1 }
 0x211   : > { %v2420_v10 = vadd.f32 %v2419_v61, %v2013_v18  ;;  %v2421_v41 = vpop.f32.mrb[35].mxu1  ;;  %v2743_v42 = vmax.f32 %v2711_v1, 0.0  ;;  %v2543_v24 = vmax.f32 %v2541_v44, %v2542_v31  ;;  %v2644_v47 = vrot.slane %v2643_v8, 1  ;;  %v1986_v1 = vld [vmem:[%s6942_s2 + $0xc0] sm:$0xff]  ;;  %v1987_v61 = vld [vmem:[%s6942_s2 + $0xc8] sm:$0xff] }
 0x213   : > { %v2646_v38 = vmax.f32 %v2417_v23, %v2420_v10  ;;  %v2775_v43 = vpack.c.bf16 %v2743_v42, %v2743_v42  ;;  %v2544_v51 = vrot.slane %v2543_v24, 2  ;;  %v2645_v55 = vmax.f32 %v2643_v8, %v2644_v47 }
 0x214   : > { %v2304_v40 = vpop.f32.mrb[44].mxu0 }
 0x215   : > { %v2647_v62 = vrot.slane %v2646_v38, 4  ;;  %v2862_v30 = vunpack.c.l.b16 %v2775_v43  ;;  %v2545_v11 = vmax.f32 %v2543_v24, %v2544_v51  ;;  %v2306_v52 = vpop.f32.mrb[45].mxu0  ;;  %v2305_v7 = vadd.f32 %v2304_v40, %v1984_v39 }
 0x216   : > { %v2307_v33 = vpop.f32.mrb[46].mxu0  ;;  %v2726_v19 = vadd.f32 %v6621_v34, %v2645_v55  ;;  %v2016_v52 = vld [vmem:[%s6942_s2 + $0x1b0] sm:$0xff]  ;;  %v2017_v55 = vld [vmem:[%s6942_s2 + $0x1b8] sm:$0xff] }
 0x217   : > { %v2648_v5 = vmax.f32 %v2646_v38, %v2647_v62  ;;  %v2906_v32 = vrot.slane %v2862_v30, 7  ;;  %v2546_v49 = vrot.slane %v2545_v11, 1  ;;  %v2308_v6 = vadd.f32 %v2307_v33, %v1985_v15  ;;  %v2309_v26 = vpop.f32.mrb[47].mxu0 }
 0x218   : > { %v2758_v44 = vmax.f32 %v2726_v19, 0.0 }
 0x219   : > { %v2649_v9 = vrot.slane %v2648_v5, 2  ;;  %v2907_v2 = vsel %vm2886_vm7, %v2906_v32, %v2861_v0  ;;  %v2547_v17 = vmax.f32 %v2545_v11, %v2546_v49  ;;  %v2548_v4 = vmax.f32 %v2305_v7, %v2308_v6 }
 0x21a   : > { %v2424_v35 = vpop.f32.mrb[36].mxu1  ;;  %v2790_v42 = vpack.c.bf16 %v2758_v44, %v2758_v44 }
 0x21b   : > { %v2650_v48 = vmax.f32 %v2648_v5, %v2649_v9  ;;  %v2426_v59 = vpop.f32.mrb[37].mxu1  ;;  %v2712_v60 = vadd.f32 %v6621_v34, %v2547_v17  ;;  %v2549_v21 = vrot.slane %v2548_v4, 4  ;;  %v2425_v28 = vadd.f32 %v2424_v35, %v2014_v3 }
 0x21c   : > { %v2427_v29 = vpop.f32.mrb[38].mxu1  ;;  %v2877_v7 = vunpack.c.l.b16 %v2790_v42 }
 0x21d   : > { %v2651_v63 = vrot.slane %v2650_v48, 1  ;;  %v2428_v46 = vadd.f32 %v2427_v29, %v2015_v20  ;;  %v2429_v50 = vpop.f32.mrb[39].mxu1  ;;  %v2744_v53 = vmax.f32 %v2712_v60, 0.0  ;;  %v2550_v45 = vmax.f32 %v2548_v4, %v2549_v21 }
 0x21f   : > { %v2652_v58 = vmax.f32 %v2650_v48, %v2651_v63  ;;  %v2653_v27 = vmax.f32 %v2425_v28, %v2428_v46  ;;  %v2776_v18 = vpack.c.bf16 %v2744_v53, %v2744_v53  ;;  %v2551_v14 = vrot.slane %v2550_v45, 2  ;;  %v1988_v46 = vld [vmem:[%s6942_s2 + $0xd0] sm:$0xff]  ;;  %v1989_v53 = vld [vmem:[%s6942_s2 + $0xd8] sm:$0xff] }
 0x220   : > { %v2312_v31 = vpop.f32.mrb[48].mxu0 }
 0x221   : > { %v2727_v8 = vadd.f32 %v6621_v34, %v2652_v58  ;;  %v2654_v22 = vrot.slane %v2653_v27, 4  ;;  %v2863_v23 = vunpack.c.l.b16 %v2776_v18  ;;  %v2552_v10 = vmax.f32 %v2550_v45, %v2551_v14  ;;  %v2314_v41 = vpop.f32.mrb[49].mxu0 }
 0x222   : > { %v2315_v47 = vpop.f32.mrb[50].mxu0  ;;  %v2313_v51 = vadd.f32 %v2312_v31, %v1986_v1 }
 0x223   : > { %v2759_v24 = vmax.f32 %v2727_v8, 0.0  ;;  %v2655_v25 = vmax.f32 %v2653_v27, %v2654_v22  ;;  %v2908_v38 = vrot.slane %v2863_v23, 6  ;;  %v2553_v43 = vrot.slane %v2552_v10, 1  ;;  %v2317_v39 = vpop.f32.mrb[51].mxu0 }
 0x224   : > { %v2316_v62 = vadd.f32 %v2315_v47, %v1987_v61  ;;  %v2019_v47 = vld [vmem:[%s6942_s2 + $0x1c8] sm:$0xff] }
 0x225   : > { %v2791_v40 = vpack.c.bf16 %v2759_v24, %v2759_v24  ;;  %v2656_v15 = vrot.slane %v2655_v25, 2  ;;  %v2554_v30 = vmax.f32 %v2552_v10, %v2553_v43  ;;  %v2909_v5 = vsel %vm2889_vm8, %v2908_v38, %v2907_v2  ;;  %v2018_v24 = vld [vmem:[%s6942_s2 + $0x1c0] sm:$0xff] }
 0x226   : > { %v2555_v11 = vmax.f32 %v2313_v51, %v2316_v62  ;;  %v2432_v0 = vpop.f32.mrb[40].mxu1 }
 0x227   : > { %v2878_v33 = vunpack.c.l.b16 %v2791_v40  ;;  %v2657_v32 = vmax.f32 %v2655_v25, %v2656_v15  ;;  %v2434_v49 = vpop.f32.mrb[41].mxu1  ;;  %v2713_v6 = vadd.f32 %v6621_v34, %v2554_v30  ;;  %v2433_v3 = vadd.f32 %v2432_v0, %v2016_v52 }
 0x228   : > { %v2556_v26 = vrot.slane %v2555_v11, 4  ;;  %v2435_v9 = vpop.f32.mrb[42].mxu1  ;;  %v2591_v49 = vrot.slane %v6624_v54, 4 }
 0x229   : > { %v2934_v17 = vrot.slane %v2878_v33, 7  ;;  %v2658_v4 = vrot.slane %v2657_v32, 1  ;;  %v2436_v35 = vadd.f32 %v2435_v9, %v2017_v55  ;;  %v2437_v20 = vpop.f32.mrb[43].mxu1  ;;  %v2745_v19 = vmax.f32 %v2713_v6, 0.0 }
 0x22a   : > { %v2557_v48 = vmax.f32 %v2555_v11, %v2556_v26  ;;  %v1991_v20 = vld [vmem:[%s6942_s2 + $0xe8] sm:$0xff] }
 0x22b   : > { %v2935_v59 = vsel %vm2886_vm7, %v2934_v17, %v2877_v7  ;;  %v2659_v60 = vmax.f32 %v2657_v32, %v2658_v4  ;;  %v2660_v21 = vmax.f32 %v2433_v3, %v2436_v35  ;;  %v2777_v2 = vpack.c.bf16 %v2745_v19, %v2745_v19  ;;  %v1990_v3 = vld [vmem:[%s6942_s2 + $0xe0] sm:$0xff] }
 0x22c   : > { %v2558_v29 = vrot.slane %v2557_v48, 2  ;;  %v2320_v50 = vpop.f32.mrb[52].mxu0 }
 0x22d   : > { %v2728_v63 = vadd.f32 %v6621_v34, %v2659_v60  ;;  %v2661_v28 = vrot.slane %v2660_v21, 4  ;;  %v2864_v45 = vunpack.c.l.b16 %v2777_v2  ;;  %v2322_v58 = vpop.f32.mrb[53].mxu0  ;;  %v2321_v1 = vadd.f32 %v2320_v50, %v1988_v46 }
 0x22e   : > { %v2559_v44 = vmax.f32 %v2557_v48, %v2558_v29  ;;  %v2323_v14 = vpop.f32.mrb[54].mxu0 }
 0x22f   : > { %v2760_v27 = vmax.f32 %v2728_v63, 0.0  ;;  %v2662_v18 = vmax.f32 %v2660_v21, %v2661_v28  ;;  %v2910_v8 = vrot.slane %v2864_v45, 5  ;;  %v2324_v31 = vadd.f32 %v2323_v14, %v1989_v53  ;;  %v2325_v61 = vpop.f32.mrb[55].mxu0 }
 0x230   : > { %v2560_v22 = vrot.slane %v2559_v44, 1  ;;  %v2598_v21 = vrot.slane %v6639_v16, 4 }
 0x231   : > { %v2792_v23 = vpack.c.bf16 %v2760_v27, %v2760_v27  ;;  %v2663_v10 = vrot.slane %v2662_v18, 2  ;;  %v2562_v42 = vmax.f32 %v2321_v1, %v2324_v31  ;;  %v2911_v38 = vsel %vm2892_vm9, %v2910_v8, %v2909_v5 }
 0x232   : > { %v2561_v41 = vmax.f32 %v2559_v44, %v2560_v22  ;;  %v2440_v25 = vpop.f32.mrb[44].mxu1  ;;  %v2605_v27 = vrot.slane %v6656_v13, 4  ;;  %v2021_v22 = vld [vmem:[%s6942_s2 + $0x1d8] sm:$0xff]  ;;  %v2612_v31 = vrot.slane %v6673_v12, 4 }
 0x233   : > { %v2879_v43 = vunpack.c.l.b16 %v2792_v23  ;;  %v2664_v51 = vmax.f32 %v2662_v18, %v2663_v10  ;;  %v2442_v62 = vpop.f32.mrb[45].mxu1  ;;  %v2563_v40 = vrot.slane %v2562_v42, 4  ;;  %v2441_v52 = vadd.f32 %v2440_v25, %v2018_v24 }
 0x234   : > { %v2714_v39 = vadd.f32 %v6621_v34, %v2561_v41  ;;  %v2443_v15 = vpop.f32.mrb[46].mxu1 }
 0x235   : > { %v2936_v30 = vrot.slane %v2879_v43, 6  ;;  %v2665_v11 = vrot.slane %v2664_v51, 1  ;;  %v2444_v0 = vadd.f32 %v2443_v15, %v2019_v47  ;;  %v2445_v55 = vpop.f32.mrb[47].mxu1  ;;  %v2564_v32 = vmax.f32 %v2562_v42, %v2563_v40 }
 0x236   : > { %v2746_v33 = vmax.f32 %v2714_v39, 0.0  ;;  %v2599_v42 = vmax.f32 %v6639_v16, %v2598_v21  ;;  %v2606_v15 = vmax.f32 %v6656_v13, %v2605_v27  ;;  %v1992_v13 = vld [vmem:[%s6942_s2 + $0xf0] sm:$0xff] }
 0x237   : > { %v2937_v7 = vsel %vm2889_vm8, %v2936_v30, %v2935_v59  ;;  %v2666_v6 = vmax.f32 %v2664_v51, %v2665_v11  ;;  %v2667_v5 = vmax.f32 %v2441_v52, %v2444_v0  ;;  %v2565_v9 = vrot.slane %v2564_v32, 2 }
 0x238   : > { %v2778_v26 = vpack.c.bf16 %v2746_v33, %v2746_v33  ;;  %v2328_v35 = vpop.f32.mrb[56].mxu0  ;;  %v2592_v59 = vmax.f32 %v6624_v54, %v2591_v49  ;;  %v2020_v54 = vld [vmem:[%s6942_s2 + $0x1d0] sm:$0xff]  ;;  %v2613_v11 = vmax.f32 %v6673_v12, %v2612_v31  ;;  %v2600_v49 = vrot.slane %v2599_v42, 2  ;;  %v1993_v12 = vld [vmem:[%s6942_s2 + $0xf8] sm:$0xff] }
 0x239   : > { %v2729_v17 = vadd.f32 %v6621_v34, %v2666_v6  ;;  %v2668_v4 = vrot.slane %v2667_v5, 4  ;;  %v2566_v48 = vmax.f32 %v2564_v32, %v2565_v9  ;;  %v2330_v60 = vpop.f32.mrb[57].mxu0  ;;  %v2329_v50 = vadd.f32 %v2328_v35, %v1990_v3 }
 0x23a   : > { %v2865_v19 = vunpack.c.l.b16 %v2778_v26  ;;  %v2331_v63 = vpop.f32.mrb[58].mxu0  ;;  %v2593_v41 = vrot.slane %v2592_v59, 2  ;;  %v2619_v6 = vrot.slane %v6689_v56, 4 }
 0x23b   : > { %v2761_v2 = vmax.f32 %v2729_v17, 0.0  ;;  %v2669_v29 = vmax.f32 %v2667_v5, %v2668_v4  ;;  %v2567_v46 = vrot.slane %v2566_v48, 1  ;;  %v2332_v53 = vadd.f32 %v2331_v63, %v1991_v20  ;;  %v2333_v45 = vpop.f32.mrb[59].mxu0 }
 0x23c   : > { %v2912_v28 = vrot.slane %v2865_v19, 4  ;;  %v2594_v16 = vmax.f32 %v2592_v59, %v2593_v41  ;;  %v2626_v17 = vrot.slane %v6705_v36, 4  ;;  %v2614_v20 = vrot.slane %v2613_v11, 2 }
 0x23d   : > { %v2793_v44 = vpack.c.bf16 %v2761_v2, %v2761_v2  ;;  %v2670_v58 = vrot.slane %v2669_v29, 2  ;;  %v2568_v18 = vmax.f32 %v2566_v48, %v2567_v46  ;;  %v2569_v14 = vmax.f32 %v2329_v50, %v2332_v53 }
 0x23e   : > { %v2448_v8 = vpop.f32.mrb[48].mxu1  ;;  %v2913_v1 = vsel %vm2895_vm10, %v2912_v28, %v2911_v38  ;;  %v2633_v19 = vrot.slane %v6721_v37, 4  ;;  %v2595_v46 = vrot.slane %v2594_v16, 1  ;;  %v2620_v50 = vmax.f32 %v6689_v56, %v2619_v6 }
 0x23f   : > { %v2880_v61 = vunpack.c.l.b16 %v2793_v44  ;;  %v2671_v23 = vmax.f32 %v2669_v29, %v2670_v58  ;;  %v2450_v10 = vpop.f32.mrb[49].mxu1  ;;  %v2715_v24 = vadd.f32 %v6621_v34, %v2568_v18  ;;  %v2570_v25 = vrot.slane %v2569_v14, 4  ;;  %v2022_v18 = vld [vmem:[%s6942_s2 + $0x1e0] sm:$0xff] }
 0x240   : > { %v2451_v47 = vpop.f32.mrb[50].mxu1  ;;  %v2449_v62 = vadd.f32 %v2448_v8, %v2020_v54  ;;  %v2627_v44 = vmax.f32 %v6705_v36, %v2626_v17  ;;  %v2023_v54 = vld [vmem:[%s6942_s2 + $0x1e8] sm:$0xff]  ;;  %v2634_v56 = vmax.f32 %v6721_v37, %v2633_v19  ;;  %v2615_v10 = vmax.f32 %v2613_v11, %v2614_v20 }
 0x241   : > { %v2938_v43 = vrot.slane %v2880_v61, 5  ;;  %v2672_v51 = vrot.slane %v2671_v23, 1  ;;  %v2452_v39 = vadd.f32 %v2451_v47, %v2021_v22  ;;  %v2453_v40 = vpop.f32.mrb[51].mxu1  ;;  %v2747_v38 = vmax.f32 %v2715_v24, 0.0 }
 0x242   : > { %v2571_v30 = vmax.f32 %v2569_v14, %v2570_v25  ;;  %v2601_v22 = vmax.f32 %v2599_v42, %v2600_v49  ;;  %v2621_v40 = vrot.slane %v2620_v50, 2  ;;  %v6848_v49 = vld [vmem:[%s6943_s3] ss:$0 sm:$0xff] }
 0x243   : > { %v2939_v52 = vsel %vm2892_vm9, %v2938_v43, %v2937_v7  ;;  %v2673_v0 = vmax.f32 %v2671_v23, %v2672_v51  ;;  %v2674_v55 = vmax.f32 %v2449_v62, %v2452_v39  ;;  %v2779_v33 = vpack.c.bf16 %v2747_v38, %v2747_v38 }
 0x244   : > { %v2572_v32 = vrot.slane %v2571_v30, 2  ;;  %v2607_v7 = vrot.slane %v2606_v15, 2  ;;  %v2628_v38 = vrot.slane %v2627_v44, 2 }
 0x245   : > { %v2730_v5 = vadd.f32 %v6621_v34, %v2673_v0  ;;  %v2675_v26 = vrot.slane %v2674_v55, 4  ;;  %v2866_v4 = vunpack.c.l.b16 %v2779_v33 }
 0x246   : > { %v2336_v9 = vpop.f32.mrb[60].mxu0  ;;  %v2573_v3 = vmax.f32 %v2571_v30, %v2572_v32  ;;  %v2608_v36 = vmax.f32 %v2606_v15, %v2607_v7  ;;  %v2635_v30 = vrot.slane %v2634_v56, 2  ;;  %v2596_v15 = vmax.f32 %v2594_v16, %v2595_v46 }
 0x247   : > { %v2338_v35 = vpop.f32.mrb[61].mxu0  ;;  %v2762_v48 = vmax.f32 %v2730_v5, 0.0  ;;  %v2676_v60 = vmax.f32 %v2674_v55, %v2675_v26  ;;  %v2914_v21 = vrot.slane %v2866_v4, 3  ;;  %v2337_v29 = vadd.f32 %v2336_v9, %v1992_v13  ;;  %v1994_v26 = vld [vmem:[%s6942_s2 + $0x100] sm:$0xff] }
 0x248   : > { %v2339_v59 = vpop.f32.mrb[62].mxu0  ;;  %v2574_v2 = vrot.slane %v2573_v3, 1  ;;  %v2609_v32 = vrot.slane %v2608_v36, 1  ;;  %v2616_v16 = vrot.slane %v2615_v10, 1  ;;  %v2622_v9 = vmax.f32 %v2620_v50, %v2621_v40 }
 0x249   : > { %v2340_v63 = vadd.f32 %v2339_v59, %v1993_v12  ;;  %v2341_v28 = vpop.f32.mrb[63].mxu0  ;;  %v2794_v53 = vpack.c.bf16 %v2762_v48, %v2762_v48  ;;  %v2677_v45 = vrot.slane %v2676_v60, 2  ;;  %v2915_v8 = vsel %vm2898_vm11, %v2914_v21, %v2913_v1 }
 0x24a   : > { %v2575_v58 = vmax.f32 %v2573_v3, %v2574_v2  ;;  %v2629_v4 = vmax.f32 %v2627_v44, %v2628_v38  ;;  %v2636_v3 = vmax.f32 %v2634_v56, %v2635_v30  ;;  %v2024_v44 = vld [vmem:[%s6942_s2 + $0x1f0] sm:$0xff] }
 0x24b   : > { %v2576_v27 = vmax.f32 %v2337_v29, %v2340_v63  ;;  %v2881_v31 = vunpack.c.l.b16 %v2794_v53  ;;  %v2678_v61 = vmax.f32 %v2676_v60, %v2677_v45  ;;  %v2719_v29 = vadd.f32 %v6848_v49, %v2596_v15 }
 0x24c   : > { %v2456_v14 = vpop.f32.mrb[52].mxu1  ;;  %v2716_v41 = vadd.f32 %v6621_v34, %v2575_v58  ;;  %v2602_v34 = vrot.slane %v2601_v22, 1  ;;  %v2623_v53 = vrot.slane %v2622_v9, 1 }
 0x24d   : > { %v2458_v23 = vpop.f32.mrb[53].mxu1  ;;  %v2577_v24 = vrot.slane %v2576_v27, 4  ;;  %v2940_v47 = vrot.slane %v2881_v31, 4  ;;  %v2679_v43 = vrot.slane %v2678_v61, 1  ;;  %v2457_v51 = vadd.f32 %v2456_v14, %v2022_v18 }
 0x24e   : > { %v2459_v25 = vpop.f32.mrb[54].mxu1  ;;  %v2748_v1 = vmax.f32 %v2716_v41, 0.0  ;;  %v2603_v63 = vmax.f32 %v2601_v22, %v2602_v34  ;;  %v2610_v14 = vmax.f32 %v2608_v36, %v2609_v32  ;;  %v2637_v23 = vrot.slane %v2636_v3, 1 }
 0x24f   : > { %v2460_v62 = vadd.f32 %v2459_v25, %v2023_v54  ;;  %v2461_v39 = vpop.f32.mrb[55].mxu1  ;;  %v2578_v42 = vmax.f32 %v2576_v27, %v2577_v24  ;;  %v2680_v37 = vmax.f32 %v2678_v61, %v2679_v43  ;;  %v2941_v55 = vsel %vm2895_vm10, %v2940_v47, %v2939_v52  ;;  %v1995_v52 = vld [vmem:[%s6942_s2 + $0x108] sm:$0xff]  ;;  %v2025_v27 = vld [vmem:[%s6942_s2 + $0x1f8] sm:$0xff] }
 0x250   : > { %v2780_v11 = vpack.c.bf16 %v2748_v1, %v2748_v1  ;;  %v2630_v54 = vrot.slane %v2629_v4, 1  ;;  %v2617_v61 = vmax.f32 %v2615_v10, %v2616_v16  ;;  %v2720_v40 = vadd.f32 %v6848_v49, %v2603_v63 }
 0x251   : > { %v2681_v0 = vmax.f32 %v2457_v51, %v2460_v62  ;;  %v2579_v33 = vrot.slane %v2578_v42, 2  ;;  %v2731_v6 = vadd.f32 %v6848_v49, %v2680_v37  ;;  %v2624_v38 = vmax.f32 %v2622_v9, %v2623_v53 }
 0x252   : > { %v2344_v13 = vpop.f32.mrb[64].mxu0  ;;  %v2867_v12 = vunpack.c.l.b16 %v2780_v11  ;;  %v2631_v1 = vmax.f32 %v2629_v4, %v2630_v54  ;;  %v2721_v37 = vadd.f32 %v6848_v49, %v2610_v14  ;;  %v2722_v34 = vadd.f32 %v6848_v49, %v2617_v61 }
 0x253   : > { %v2682_v5 = vrot.slane %v2681_v0, 4  ;;  %v2580_v7 = vmax.f32 %v2578_v42, %v2579_v33  ;;  %v2346_v17 = vpop.f32.mrb[65].mxu0  ;;  %v2763_v35 = vmax.f32 %v2731_v6, 0.0  ;;  %v2345_v60 = vadd.f32 %v2344_v13, %v1994_v26 }
 0x254   : > { %v2347_v19 = vpop.f32.mrb[66].mxu0  ;;  %v2916_v2 = vrot.slane %v2867_v12, 2  ;;  %v2751_v33 = vmax.f32 %v2719_v29, 0.0  ;;  %v2723_v26 = vadd.f32 %v6848_v49, %v2624_v38  ;;  %v2724_v16 = vadd.f32 %v6848_v49, %v2631_v1 }
 0x255   : > { %v2683_v20 = vmax.f32 %v2681_v0, %v2682_v5  ;;  %v2581_v48 = vrot.slane %v2580_v7, 1  ;;  %v2348_v59 = vadd.f32 %v2347_v19, %v1995_v52  ;;  %v2349_v21 = vpop.f32.mrb[67].mxu0  ;;  %v2795_v28 = vpack.c.bf16 %v2763_v35, %v2763_v35 }
 0x256   : > { %v2917_v18 = vsel %vm2901_vm12, %v2916_v2, %v2915_v8  ;;  %v2638_v0 = vmax.f32 %v2636_v3, %v2637_v23  ;;  %v2752_v5 = vmax.f32 %v2720_v40, 0.0  ;;  %v2753_v12 = vmax.f32 %v2721_v37, 0.0 }
 0x257   : > { %v2684_v46 = vrot.slane %v2683_v20, 2  ;;  %v2582_v50 = vmax.f32 %v2580_v7, %v2581_v48  ;;  %v2583_v45 = vmax.f32 %v2345_v60, %v2348_v59  ;;  %v2882_v56 = vunpack.c.l.b16 %v2795_v28 }
 0x258   : > { %v2464_v58 = vpop.f32.mrb[56].mxu1  ;;  %v2725_v7 = vadd.f32 %v6848_v49, %v2638_v0  ;;  %v2783_v3 = vpack.c.bf16 %v2751_v33, %v2751_v33  ;;  %v2754_v35 = vmax.f32 %v2722_v34, 0.0  ;;  %v2784_v48 = vpack.c.bf16 %v2752_v5, %v2752_v5 }
 0x259   : > { %v2685_v22 = vmax.f32 %v2683_v20, %v2684_v46  ;;  %v2466_v31 = vpop.f32.mrb[57].mxu1  ;;  %v2717_v41 = vadd.f32 %v6848_v49, %v2582_v50  ;;  %v2584_v24 = vrot.slane %v2583_v45, 4  ;;  %v2942_v47 = vrot.slane %v2882_v56, 3 }
 0x25a   : > { %v2467_v25 = vpop.f32.mrb[58].mxu1  ;;  %v2465_v51 = vadd.f32 %v2464_v58, %v2024_v44  ;;  %v2755_v60 = vmax.f32 %v2723_v26, 0.0  ;;  %v2756_v2 = vmax.f32 %v2724_v16, 0.0  ;;  %v2785_v46 = vpack.c.bf16 %v2753_v12, %v2753_v12  ;;  %v3193_v26 = vld [vmem:[%s6945_s5] ss:$0 sm:$0xff] }
 0x25b   : > { %v2686_v43 = vrot.slane %v2685_v22, 1  ;;  %v2468_v62 = vadd.f32 %v2467_v25, %v2025_v27  ;;  %v2469_v39 = vpop.f32.mrb[59].mxu1  ;;  %v2585_v8 = vmax.f32 %v2583_v45, %v2584_v24  ;;  %v2749_v36 = vmax.f32 %v2717_v41, 0.0 }
 0x25c   : > { %v2943_v10 = vsel %vm2898_vm11, %v2942_v47, %v2941_v55  ;;  %v2757_v53 = vmax.f32 %v2725_v7, 0.0  ;;  %v2786_v45 = vpack.c.bf16 %v2754_v35, %v2754_v35  ;;  %v2870_v27 = vunpack.c.l.b16 %v2783_v3 }
 0x25d   : > { %v2687_v42 = vmax.f32 %v2685_v22, %v2686_v43  ;;  %v2688_v30 = vmax.f32 %v2465_v51, %v2468_v62  ;;  %v2586_v15 = vrot.slane %v2585_v8, 2  ;;  %v2781_v11 = vpack.c.bf16 %v2749_v36, %v2749_v36 }
 0x25e   : > { %v2787_v14 = vpack.c.bf16 %v2755_v60, %v2755_v60  ;;  %v2871_v56 = vunpack.c.l.b16 %v2784_v48  ;;  %v2788_v22 = vpack.c.bf16 %v2756_v2, %v2756_v2  ;;  %v2872_v61 = vunpack.c.l.b16 %v2785_v46 }
 0x25f   : > { %v2732_v32 = vadd.f32 %v6848_v49, %v2687_v42  ;;  %v2689_v6 = vrot.slane %v2688_v30, 4  ;;  %v2587_v13 = vmax.f32 %v2585_v8, %v2586_v15  ;;  %v2868_v52 = vunpack.c.l.b16 %v2781_v11 }
 0x260   : > { %v2789_v23 = vpack.c.bf16 %v2757_v53, %v2757_v53  ;;  %v2920_v25 = vrot.slane %v2870_v27, 7  ;;  %v2874_v47 = vunpack.c.l.b16 %v2787_v14  ;;  %v2922_v51 = vrot.slane %v2871_v56, 6 }
 0x261   : > { %v2764_v9 = vmax.f32 %v2732_v32, 0.0  ;;  %v2690_v55 = vmax.f32 %v2688_v30, %v2689_v6  ;;  %v2588_v17 = vrot.slane %v2587_v13, 1  ;;  %v2918_v4 = vrot.slane %v2868_v52, 1 }
 0x262   : > { %v2875_v62 = vunpack.c.l.b16 %v2788_v22  ;;  %v2924_v40 = vrot.slane %v2872_v61, 5  ;;  %v2876_v38 = vunpack.c.l.b16 %v2789_v23  ;;  %v2928_v30 = vrot.slane %v2874_v47, 3 }
 0x263   : > { %v2796_v20 = vpack.c.bf16 %v2764_v9, %v2764_v9  ;;  %v2691_v19 = vrot.slane %v2690_v55, 2  ;;  %v2589_v59 = vmax.f32 %v2587_v13, %v2588_v17  ;;  %v2919_v21 = vsel %vm2904_vm13, %v2918_v4, %v2917_v18 }
 0x264   : > { %v2948_v28 = vpack.c.b16 %v2919_v21, %v6736_v57  ;;  %v2873_v57 = vunpack.c.l.b16 %v2786_v45  ;;  %v2930_v37 = vrot.slane %v2875_v62, 2  ;;  %v2932_v15 = vrot.slane %v2876_v38, 1 }
 0x265   : > { %v2883_v29 = vunpack.c.l.b16 %v2796_v20  ;;  %v2692_v63 = vmax.f32 %v2690_v55, %v2691_v19  ;;  %v2718_v50 = vadd.f32 %v6848_v49, %v2589_v59 }
 0x266   : > { %3393 = vmatprep.mubr.bf16.mxu1 %v2948_v28  ;;  %v2926_v36 = vrot.slane %v2873_v57, 4 }
 0x267   : > { %v2944_v44 = vrot.slane %v2883_v29, 2  ;;  %v2693_v58 = vrot.slane %v2692_v63, 1  ;;  %v2750_v54 = vmax.f32 %v2718_v50, 0.0 }
 0x269   : > { %v2694_v31 = vmax.f32 %v2692_v63, %v2693_v58  ;;  %v2945_v18 = vsel %vm2901_vm12, %v2944_v44, %v2943_v10  ;;  %v2782_v41 = vpack.c.bf16 %v2750_v54, %v2750_v54 }
 0x26b   : > { %v2733_v24 = vadd.f32 %v6848_v49, %v2694_v31  ;;  %v2869_v43 = vunpack.c.l.b16 %v2782_v41 }
 0x26d   : > { %v2765_v39 = vmax.f32 %v2733_v24, 0.0  ;;  %v2921_v8 = vsel %vm2886_vm7, %v2920_v25, %v2869_v43 }
 0x26e   : > { %v2923_v1 = vsel %vm2889_vm8, %v2922_v51, %v2921_v8 }
 0x26f   : > { %v2797_v42 = vpack.c.bf16 %v2765_v39, %v2765_v39  ;;  %v2925_v10 = vsel %vm2892_vm9, %v2924_v40, %v2923_v1 }
 0x270   : > { %v2927_v0 = vsel %vm2895_vm10, %v2926_v36, %v2925_v10 }
 0x271   : > { %v2884_v49 = vunpack.c.l.b16 %v2797_v42  ;;  %v2929_v11 = vsel %vm2898_vm11, %v2928_v30, %v2927_v0 }
 0x272   : > { %v2931_v34 = vsel %vm2901_vm12, %v2930_v37, %v2929_v11 }
 0x273   : > { %v2946_v33 = vrot.slane %v2884_v49, 1  ;;  %v2933_v32 = vsel %vm2904_vm13, %v2932_v15, %v2931_v34 }
 0x275   : > { %v2947_v6 = vsel %vm2904_vm13, %v2946_v33, %v2945_v18 }
 0x276   : > { %v2949_v5 = vpack.c.b16 %v2947_v6, %v2933_v32 }
 0x278   : > { %3394 = vmatmul.mubr.bf16.vlgmr.msra.gmra.mrb[60].mxu1 %v2949_v5 }
 0x34b   : > { %v3395_v13 = vpop.f32.mrb[60].mxu1 }
 0x34c   : > { %v3043_v52 = vadd.f32 %v3395_v13, %v3193_v26  ;;  %v3034_v16 = vpop.f32.mrb[61].mxu1 }
 0x34d   : > { %v3035_v9 = vadd.f32 %v3193_v26, %v3034_v16  ;;  %v3396_v55 = vpop.f32.mrb[62].mxu1 }
 0x34e   : > { %3051 = vst [vmem:[%s260_s17 + $0x10] sm:$0xff] %v3043_v52  ;;  %v3046_v12 = vadd.f32 %v3396_v55, %v3193_v26  ;;  %v3037_v7 = vpop.f32.mrb[63].mxu1 }
 0x34f   : > { %3049 = vst [vmem:[%s260_s17] sm:$0xff] %v3035_v9  ;;  %v3038_v17 = vadd.f32 %v3193_v26, %v3037_v7 }
 0x350   : > { %3052 = vst [vmem:[%s260_s17 + $0x18] sm:$0xff] %v3046_v12 }
 0x351   : > { %3050 = vst [vmem:[%s260_s17 + $0x8] sm:$0xff] %v3038_v17 }
 0x352   : > { %4015 = shalt.err (!%p4012_p7)
}
 0x353   : > { %s4016_s29 = scalar_lea.hbm %s6897_s15, 512  ;;  %s4020_s9 = scalar_lea.hbm %s6946_s6, 1024 }
 0x354   : > { %p4017_p8 = scmp.ne.s32.totalorder %s6897_s15, %s4016_s29  ;;  %p4021_p1 = scmp.lt.u32.totalorder %s6897_s15, %s6946_s6 }
 0x355   : > { %p4022_p0 = scmp.lt.u32.totalorder %s4020_s9, %s4016_s29  ;;  %p4024_p6 = scmp.lt.u32.totalorder %s4016_s29, %s6897_s15 }
 0x356   : > { %p4018_p11 = pnand %p4017_p8, %p7360_p9 }
 0x357   : > { %p4023_p5 = por %p4022_p0, %p4021_p1 }
 0x358   : > { %p4019_p13 = pneg %p4018_p11 }
 0x359   : > { %p4025_p10 = por %p4024_p6, %p4023_p5 }
 0x35b   : > { %p4026_p12 = pnand %p4025_p10, %p4019_p13 }
 0x35d   : > { %4029 = shalt.err (!%p4026_p12)
}
 0x35e   : > { %s4078_s26 = smov 128   ;;  %s4079_s11 = smov 8  }
 0x35f   : > { %3421 = dma.vmem_to_hbm [thread:$0]  (%p7360_p9), %s6892_s18, 512, %s6897_s15, %s6899_s25, %s4078_s26, %s4078_s26, %s4079_s11  }
 0x360 PF: > { %p3433_p2 = scmp.ge.s32.totalorder %s4068_s24, 2  ;;  %s3082_s12 = sand.u32 1, %s4056_s21  }
 0x361   : > { %p7361_p3 = scmp.ne.s32.totalorder %s7093_s8, 0  ;;  %s3083_s16 = scalar_lea.sflag [#allocation4], %s3082_s12 }
 0x363   : > { %p3428_p4 = pnand %p3433_p2, %p7361_p3 }
 0x365   : > { %4051 = dma.done.wait (!%p3428_p4), %s3083_s16, 512  }
 0x366   : > { %4053 = vsyncadd (!%p3428_p4), %s3083_s16, 4294966784  ;;  %p17_p7 = scmp.ge.s32.totalorder %s4140_s27, 4   ;;  %s7362_s21 = smov %s4060_s22 }
 0x367   : > { %s7363_s22 = smov %s4064_s23  ;;  %s7364_s23 = smov %s4151_s30 }
 0x368   : > { %s7365_s24 = smov %s4140_s27  ;;  %19 = sbr.rel (!%p17_p7) target bundleno = 4 (0x4), region = 84 }
 0x36f   :  { %3088 = vsyncpa [#allocation3], 1 }
 0x370   :  { %3090 = vsyncpa [#allocation3 + $0x1], 1 }
 0x371   :  { %3091 = vsyncpa [#allocation4], 1 }
 0x372   :  { %3093 = vsyncpa [#allocation4 + $0x1], 1 }

</bundles_post_ra>
